<compile_context>
chip_gen: v5e
topology: v5e:2x2
jax: 0.10.0
libtpu: 0.0.40
codegen_flags: <defaults>
</compile_context>

<pallas_src>
import jax
import jax.numpy as jnp
from jax.experimental import pallas as pl
from jax.experimental.pallas import tpu as pltpu


_VMEM = pl.BlockSpec(memory_space=pltpu.MemorySpace.VMEM)
_SMEM = pl.BlockSpec(memory_space=pltpu.MemorySpace.SMEM)


def _round_up(x, m):
    return ((x + m - 1) // m) * m


def _pad_to(a, shape):
    return jnp.pad(a, [(0, s - d) for d, s in zip(a.shape, shape)])


def _pad_gate_cols(w, H, Hp):
    """Pad the trailing 4H gate axis to 4Hp, zero-padding each gate chunk."""
    lead = w.shape[:-1]
    w4 = w.reshape(lead + (4, H))
    w4 = jnp.pad(w4, [(0, 0)] * len(lead) + [(0, 0), (0, Hp - H)])
    return w4.reshape(lead + (4 * Hp,))


# ----------------------------- Pallas kernels ------------------------------


def _gate_update(gates, c_prev, Hp):
    # PyTorch gate order: input, forget, cell(g), output. Slices are Hp(=128k)-lane
    # aligned so no cross-lane shuffles are needed. All math in f32.
    i = jax.nn.sigmoid(gates[:, 0 * Hp:1 * Hp])
    f = jax.nn.sigmoid(gates[:, 1 * Hp:2 * Hp])
    g = jnp.tanh(gates[:, 2 * Hp:3 * Hp])
    o = jax.nn.sigmoid(gates[:, 3 * Hp:4 * Hp])
    c_new = f * c_prev + i * g
    h_new = o * jnp.tanh(c_new)
    return h_new, c_new


def _make_encoder_kernel(n_layers, lGet):
    def kernel(*refs):
        x_ref, w0_ref, b0_ref, whh0_ref = refs[:4]
        layer_refs = refs[4:4 + 2 * (n_layers - 1)]
        rest = refs[4 + 2 * (n_layers - 1):]
        h_out, c_out, proj_s, h_s, c_s = rest[:5]
        xh_list = rest[5:]                       # one (Bp, 2Hp) bf16 scratch per layer>0

        Bp = h_s.shape[1]
        Hp = h_s.shape[2]

        # Hoisted preproc: encoder embedding Linear folded into layer-0 W_ih offline,
        # so this is a single big (lGet*Bp, Fp) @ (Fp, 4Hp) bf16 matmul (f32 accum).
        proj_s[...] = (jnp.dot(x_ref[...], w0_ref[...],
                               preferred_element_type=jnp.float32) + b0_ref[...])

        h_s[...] = jnp.zeros_like(h_s)
        c_s[...] = jnp.zeros_like(c_s)

        @pl.loop(0, lGet)
        def _(t):
            row = pl.multiple_of(t * Bp, 8)
            # Layer 0: only the h-recurrence matmul remains per step.
            gates = proj_s[pl.ds(row, Bp), :] + jnp.dot(
                h_s[0].astype(jnp.bfloat16), whh0_ref[...],
                preferred_element_type=jnp.float32)
            h_new, c_new = _gate_update(gates, c_s[0], Hp)
            h_s[0] = h_new
            c_s[0] = c_new

            # Layers 1..n-1: persistent [x|h] staging buffer (no per-step concat),
            # one fused K=2Hp matmul per layer.
            for l in range(1, n_layers):
                w_ref = layer_refs[2 * (l - 1)]
                b_ref = layer_refs[2 * (l - 1) + 1]
                xh = xh_list[l - 1]
                xh[:, :Hp] = h_new.astype(jnp.bfloat16)
                xh[:, Hp:] = h_s[l].astype(jnp.bfloat16)
                gates = (jnp.dot(xh[...], w_ref[...],
                                 preferred_element_type=jnp.float32) + b_ref[...])
                h_new, c_new = _gate_update(gates, c_s[l], Hp)
                h_s[l] = h_new
                c_s[l] = c_new

        h_out[...] = h_s[...]
        c_out[...] = c_s[...]

    return kernel


def _make_decoder_kernel(n_layers, lPre):
    def kernel(*refs):
        tf_ref, y_ref, xlast_ref, h0_ref, c0_ref, w0_ref, b0_ref = refs[:7]
        layer_refs = refs[7:7 + 2 * (n_layers - 1)]
        rest = refs[7 + 2 * (n_layers - 1):]
        wfc_ref, bfc_ref, out_ref, h_s, c_s, prev_s, xh0_s = rest[:7]
        xh_list = rest[7:]

        Hp = h_s.shape[-1]
        Fp = prev_s.shape[-1]

        h_s[...] = h0_ref[...]
        c_s[...] = c0_ref[...]
        prev_s[...] = xlast_ref[...]

        @pl.loop(0, lPre)
        def _(t):
            # Layer 0: decoder embedding Linear folded into W_ih offline, so the raw
            # previous prediction/target feeds the fused [prev|h] matmul directly.
            xh0_s[:, :Fp] = prev_s[...].astype(jnp.bfloat16)
            xh0_s[:, Fp:] = h_s[0].astype(jnp.bfloat16)
            gates = (jnp.dot(xh0_s[...], w0_ref[...],
                             preferred_element_type=jnp.float32) + b0_ref[...])
            h_new, c_new = _gate_update(gates, c_s[0], Hp)
            h_s[0] = h_new
            c_s[0] = c_new

            for l in range(1, n_layers):
                w_ref = layer_refs[2 * (l - 1)]
                b_ref = layer_refs[2 * (l - 1) + 1]
                xh = xh_list[l - 1]
                xh[:, :Hp] = h_new.astype(jnp.bfloat16)
                xh[:, Hp:] = h_s[l].astype(jnp.bfloat16)
                gates = (jnp.dot(xh[...], w_ref[...],
                                 preferred_element_type=jnp.float32) + b_ref[...])
                h_new, c_new = _gate_update(gates, c_s[l], Hp)
                h_s[l] = h_new
                c_s[l] = c_new

            pre = (jnp.dot(h_new.astype(jnp.bfloat16), wfc_ref[...],
                           preferred_element_type=jnp.float32) + bfc_ref[...])
            out_ref[t] = pre

            # Teacher forcing select for the next step (0/1 mask from SMEM; exact
            # arithmetic blend for finite f32 operands).
            tf = tf_ref[t].astype(jnp.float32)
            prev_s[...] = tf * y_ref[t] + (1.0 - tf) * pre

    return kernel


# ------------------------------ forward pass -------------------------------


def _seq2seq_forward(params, x, y, tf_mask):
    lGet, B, F = x.shape
    lPre = y.shape[0]
    enc_rest = params["enc_layers_rest"]        # encoder layers 1..n-1
    dec_rest = params["dec_layers_rest"]        # decoder layers 1..n-1
    n_layers = len(enc_rest) + 1

    Hp = params["enc_whh0"].shape[0]
    H4p = 4 * Hp
    Fp = params["fc_w"].shape[1]
    Bp = _round_up(B, 8)
    n_xh = max(n_layers - 1, 1)

    # ---- layout padding (batch -> 8 sublanes, features -> 128 lanes) ----
    x_p = jnp.pad(x, ((0, 0), (0, Bp - B), (0, Fp - F)))     # (lGet, Bp, Fp) f32
    y_p = jnp.pad(y, ((0, 0), (0, Bp - B), (0, Fp - F)))     # (lPre, Bp, Fp) f32
    x_last_p = x_p[-1]                                        # (Bp, Fp) f32
    x_flat = x_p.reshape(lGet * Bp, Fp).astype(jnp.bfloat16)  # bf16 matmul operand

    # ---- encoder: one kernel (hoisted big matmul + in-kernel time loop) ----
    enc_args = [x_flat, params["enc_w0"], params["enc_b0"], params["enc_whh0"]]
    for (w, b) in enc_rest:
        enc_args += [w, b]

    h_enc, c_enc = pl.pallas_call(
        _make_encoder_kernel(n_layers, lGet),
        out_shape=(jax.ShapeDtypeStruct((n_layers, Bp, Hp), jnp.float32),
                   jax.ShapeDtypeStruct((n_layers, Bp, Hp), jnp.float32)),
        in_specs=[_VMEM] * len(enc_args),
        out_specs=(_VMEM, _VMEM),
        scratch_shapes=(
            [pltpu.VMEM((lGet * Bp, H4p), jnp.float32),           # hoisted proj
             pltpu.VMEM((n_layers, Bp, Hp), jnp.float32),         # h
             pltpu.VMEM((n_layers, Bp, Hp), jnp.float32)]         # c
            + [pltpu.VMEM((Bp, 2 * Hp), jnp.bfloat16) for _ in range(n_xh)]
        ),
        compiler_params=pltpu.CompilerParams(vmem_limit_bytes=64 * 1024 * 1024),
    )(*enc_args)

    # ---- decoder: one kernel (in-kernel time loop, tf mask in SMEM) ----
    dec_args = [tf_mask, y_p, x_last_p, h_enc, c_enc,
                params["dec_w0"], params["dec_b0"]]
    for (w, b) in dec_rest:
        dec_args += [w, b]
    dec_args += [params["fc_w"], params["fc_b"]]

    dec_in_specs = [_SMEM] + [_VMEM] * (len(dec_args) - 1)

    preds_p = pl.pallas_call(
        _make_decoder_kernel(n_layers, lPre),
        out_shape=jax.ShapeDtypeStruct((lPre, Bp, Fp), jnp.float32),
        in_specs=dec_in_specs,
        out_specs=_VMEM,
        scratch_shapes=(
            [pltpu.VMEM((n_layers, Bp, Hp), jnp.float32),         # h
             pltpu.VMEM((n_layers, Bp, Hp), jnp.float32),         # c
             pltpu.VMEM((Bp, Fp), jnp.float32),                   # prev (raw features)
             pltpu.VMEM((Bp, Fp + Hp), jnp.bfloat16)]             # [prev|h0] staging
            + [pltpu.VMEM((Bp, 2 * Hp), jnp.bfloat16) for _ in range(n_xh)]
        ),
        compiler_params=pltpu.CompilerParams(vmem_limit_bytes=64 * 1024 * 1024),
    )(*dec_args)

    return preds_p[:, :B, :F]


seq2seq_forward = jax.jit(_seq2seq_forward)


# ------------------------------ parameters ---------------------------------


def init_params(key, features, hidsize, Eembsize, Dembsize, n_layers):
    """Random params stored pre-transposed, gate-wise zero-padded, embedding
    Linears folded into layer-0 W_ih, fused [W_ih; W_hh], weights cast to bf16."""
    H, Hp = hidsize, _round_up(hidsize, 128)
    Fp = _round_up(features, 128)

    def uni(k, shape):
        return jax.random.uniform(k, shape, jnp.float32, -0.1, 0.1)

    keys = iter(jax.random.split(key, 8 * n_layers + 8))
    p = {}

    # ---- Encoder ----
    enc_emb_w = uni(next(keys), (features, Eembsize))
    enc_emb_b = uni(next(keys), (1, Eembsize))
    wih0 = uni(next(keys), (Eembsize, 4 * H))
    whh0 = uni(next(keys), (H, 4 * H))
    b0 = uni(next(keys), (1, 4 * H)) + uni(next(keys), (1, 4 * H))
    # Fold the embedding Linear into the layer-0 input projection (exact in eval).
    wcomb = enc_emb_w @ wih0                      # (F, 4H)
    bcomb = enc_emb_b @ wih0 + b0                 # (1, 4H)
    p["enc_w0"] = _pad_to(_pad_gate_cols(wcomb, H, Hp), (Fp, 4 * Hp)).astype(jnp.bfloat16)
    p["enc_b0"] = _pad_gate_cols(bcomb, H, Hp)
    p["enc_whh0"] = _pad_to(_pad_gate_cols(whh0, H, Hp), (Hp, 4 * Hp)).astype(jnp.bfloat16)

    enc_rest = []
    for _ in range(1, n_layers):
        wih = uni(next(keys), (H, 4 * H))
        whh = uni(next(keys), (H, 4 * H))
        b = uni(next(keys), (1, 4 * H)) + uni(next(keys), (1, 4 * H))
        W = jnp.concatenate(
            [_pad_to(_pad_gate_cols(wih, H, Hp), (Hp, 4 * Hp)),
             _pad_to(_pad_gate_cols(whh, H, Hp), (Hp, 4 * Hp))], axis=0)
        enc_rest.append((W.astype(jnp.bfloat16), _pad_gate_cols(b, H, Hp)))
    p["enc_layers_rest"] = enc_rest

    # ---- Decoder ----
    dec_emb_w = uni(next(keys), (features, Dembsize))
    dec_emb_b = uni(next(keys), (1, Dembsize))

    dec_rest = []
    for l in range(n_layers):
        in_dim = Dembsize if l == 0 else H
        wih = uni(next(keys), (in_dim, 4 * H))
        whh = uni(next(keys), (H, 4 * H))
        b = uni(next(keys), (1, 4 * H)) + uni(next(keys), (1, 4 * H))
        if l == 0:
            # Fold decoder embedding Linear into layer-0 W_ih: per-step input is the
            # raw previous prediction/target (features), no embedding matmul needed.
            wih_f = dec_emb_w @ wih               # (F, 4H)
            b = dec_emb_b @ wih + b               # (1, 4H)
            W = jnp.concatenate(
                [_pad_to(_pad_gate_cols(wih_f, H, Hp), (Fp, 4 * Hp)),
                 _pad_to(_pad_gate_cols(whh, H, Hp), (Hp, 4 * Hp))], axis=0)
            p["dec_w0"] = W.astype(jnp.bfloat16)
            p["dec_b0"] = _pad_gate_cols(b, H, Hp)
        else:
            W = jnp.concatenate(
                [_pad_to(_pad_gate_cols(wih, H, Hp), (Hp, 4 * Hp)),
                 _pad_to(_pad_gate_cols(whh, H, Hp), (Hp, 4 * Hp))], axis=0)
            dec_rest.append((W.astype(jnp.bfloat16), _pad_gate_cols(b, H, Hp)))
    p["dec_layers_rest"] = dec_rest

    # Decoder fc_out Linear(hidsize -> features)
    p["fc_w"] = _pad_to(uni(next(keys), (hidsize, features)), (Hp, Fp)).astype(jnp.bfloat16)
    p["fc_b"] = _pad_to(uni(next(keys), (1, features)), (1, Fp))
    return p


# --------------------------------- main ------------------------------------

if __name__ == "__main__":
    features = 8
    hidsize = 32
    Eembsize = 16
    Dembsize = 16
    n_layers = 2
    lGet, lPre, B = 6, 4, 2
    teach_forcing_ratio = 0.5

    key = jax.random.PRNGKey(0)
    kx, ky, kp, ktf = jax.random.split(key, 4)
    x = jax.random.normal(kx, (lGet, B, features), jnp.float32)
    y = jax.random.normal(ky, (lPre, B, features), jnp.float32)
    params = init_params(kp, features, hidsize, Eembsize, Dembsize, n_layers)

    # Deterministic stand-in for Python's `random() < teach_forcing_ratio`.
    tf_mask = (jax.random.uniform(ktf, (lPre,)) < teach_forcing_ratio).astype(jnp.int32)

    preds = seq2seq_forward(params, x, y, tf_mask)
    preds = jax.block_until_ready(preds)

    assert preds.shape == (lPre, B, features)
    assert preds.dtype == jnp.float32
    assert bool(jnp.all(jnp.isfinite(preds)))
    print("KERNEL_OK")
</pallas_src>

<mosaic_0001>
module attributes {stable_mosaic.version = 11 : i64} {
  func.func @kernel(%arg0: memref<48x128xbf16, #tpu.memory_space<vmem>>, %arg1: memref<128x512xbf16, #tpu.memory_space<vmem>>, %arg2: memref<1x512xf32, #tpu.memory_space<vmem>>, %arg3: memref<128x512xbf16, #tpu.memory_space<vmem>>, %arg4: memref<256x512xbf16, #tpu.memory_space<vmem>>, %arg5: memref<1x512xf32, #tpu.memory_space<vmem>>, %arg6: memref<2x8x128xf32, #tpu.memory_space<vmem>>, %arg7: memref<2x8x128xf32, #tpu.memory_space<vmem>>, %arg8: memref<48x512xf32, #tpu.memory_space<vmem>>, %arg9: memref<2x8x128xf32, #tpu.memory_space<vmem>>, %arg10: memref<2x8x128xf32, #tpu.memory_space<vmem>>, %arg11: memref<8x256xbf16, #tpu.memory_space<vmem>>) attributes {dimension_semantics = [], scalar_prefetch = 0 : i64, scratch_operands = 4 : i64, tpu.core_type = #tpu.core_type<tc>} {
    %c0 = arith.constant 0 : index
    %c0_0 = arith.constant 0 : index
    %0 = vector.load %arg0[%c0, %c0_0] : memref<48x128xbf16, #tpu.memory_space<vmem>>, vector<48x128xbf16>
    %c0_1 = arith.constant 0 : index
    %c0_2 = arith.constant 0 : index
    %1 = vector.load %arg1[%c0_1, %c0_2] : memref<128x512xbf16, #tpu.memory_space<vmem>>, vector<128x512xbf16>
    %cst = arith.constant dense<0.000000e+00> : vector<48x512xf32>
    %2 = tpu.matmul %0, %1, %cst {dimension_numbers = #tpu.dot_dimension_numbers<[1], [0], [0], [1], [0, 0, 1, 1], [], []>} : vector<48x128xbf16>, vector<128x512xbf16>, vector<48x512xf32> -> vector<48x512xf32>
    %c0_3 = arith.constant 0 : index
    %c0_4 = arith.constant 0 : index
    %3 = vector.load %arg2[%c0_3, %c0_4] : memref<1x512xf32, #tpu.memory_space<vmem>>, vector<1x512xf32>
    %4 = vector.broadcast %3 : vector<1x512xf32> to vector<48x512xf32>
    %5 = arith.addf %2, %4 : vector<48x512xf32>
    %c0_5 = arith.constant 0 : index
    %c0_6 = arith.constant 0 : index
    %6 = vector.load %arg8[%c0_5, %c0_6] : memref<48x512xf32, #tpu.memory_space<vmem>>, vector<48x512xf32>
    tpu.vector_store %arg8[%c0_5, %c0_6], %5 {strides = array<i32>} : memref<48x512xf32, #tpu.memory_space<vmem>>, vector<48x512xf32>,
    %cst_7 = arith.constant 0.000000e+00 : f32
    %7 = vector.broadcast %cst_7 : f32 to vector<2x8x128xf32>
    %c0_8 = arith.constant 0 : index
    %c0_9 = arith.constant 0 : index
    %c0_10 = arith.constant 0 : index
    %8 = vector.load %arg9[%c0_8, %c0_9, %c0_10] : memref<2x8x128xf32, #tpu.memory_space<vmem>>, vector<2x8x128xf32>
    tpu.vector_store %arg9[%c0_8, %c0_9, %c0_10], %7 {strides = array<i32>} : memref<2x8x128xf32, #tpu.memory_space<vmem>>, vector<2x8x128xf32>,
    %cst_11 = arith.constant 0.000000e+00 : f32
    %9 = vector.broadcast %cst_11 : f32 to vector<2x8x128xf32>
    %c0_12 = arith.constant 0 : index
    %c0_13 = arith.constant 0 : index
    %c0_14 = arith.constant 0 : index
    %10 = vector.load %arg10[%c0_12, %c0_13, %c0_14] : memref<2x8x128xf32, #tpu.memory_space<vmem>>, vector<2x8x128xf32>
    tpu.vector_store %arg10[%c0_12, %c0_13, %c0_14], %9 {strides = array<i32>} : memref<2x8x128xf32, #tpu.memory_space<vmem>>, vector<2x8x128xf32>,
    %c0_i32 = arith.constant 0 : i32
    %c6_i32 = arith.constant 6 : i32
    %11 = arith.addi %c0_i32, %c6_i32 : i32
    %c1_i32 = arith.constant 1 : i32
    scf.for %arg12 = %c0_i32 to %11 step %c1_i32  : i32 {
      %c1_i32_28 = arith.constant 1 : i32
      %16 = arith.muli %arg12, %c1_i32_28 : i32
      %c0_i32_29 = arith.constant 0 : i32
      %17 = arith.addi %c0_i32_29, %16 : i32
      %c8_i32 = arith.constant 8 : i32
      %18 = arith.muli %17, %c8_i32 : i32
      %19 = tpu.assume_multiple %18, 8 : i32
      %20 = arith.index_cast %19 : i32 to index
      %c0_30 = arith.constant 0 : index
      %21 = vector.load %arg8[%20, %c0_30] : memref<48x512xf32, #tpu.memory_space<vmem>>, vector<8x512xf32>
      %c0_31 = arith.constant 0 : index
      %c0_32 = arith.constant 0 : index
      %c0_33 = arith.constant 0 : index
      %22 = vector.load %arg9[%c0_31, %c0_32, %c0_33] : memref<2x8x128xf32, #tpu.memory_space<vmem>>, vector<1x8x128xf32>
      %23 = vector.shape_cast %22 : vector<1x8x128xf32> to vector<8x128xf32>
      %24 = arith.truncf %23 : vector<8x128xf32> to vector<8x128xbf16>
      %c0_34 = arith.constant 0 : index
      %c0_35 = arith.constant 0 : index
      %25 = vector.load %arg3[%c0_34, %c0_35] : memref<128x512xbf16, #tpu.memory_space<vmem>>, vector<128x512xbf16>
      %cst_36 = arith.constant dense<0.000000e+00> : vector<8x512xf32>
      %26 = tpu.matmul %24, %25, %cst_36 {dimension_numbers = #tpu.dot_dimension_numbers<[1], [0], [0], [1], [0, 0, 1, 1], [], []>} : vector<8x128xbf16>, vector<128x512xbf16>, vector<8x512xf32> -> vector<8x512xf32>
      %27 = arith.addf %21, %26 : vector<8x512xf32>
      %c0_37 = arith.constant 0 : index
      %c0_38 = arith.constant 0 : index
      %c0_39 = arith.constant 0 : index
      %28 = vector.load %arg10[%c0_37, %c0_38, %c0_39] : memref<2x8x128xf32, #tpu.memory_space<vmem>>, vector<1x8x128xf32>
      %29 = vector.shape_cast %28 : vector<1x8x128xf32> to vector<8x128xf32>
      %30 = vector.extract_strided_slice %27 {offsets = [0, 0], sizes = [8, 128], strides = [1, 1]} : vector<8x512xf32> to vector<8x128xf32>
      %31 = arith.negf %30 : vector<8x128xf32>
      %32 = math.exp %31 : vector<8x128xf32>
      %cst_40 = arith.constant 1.000000e+00 : f32
      %33 = vector.broadcast %cst_40 : f32 to vector<8x128xf32>
      %34 = arith.addf %33, %32 : vector<8x128xf32>
      %35 = arith.divf %33, %34 : vector<8x128xf32>
      %36 = vector.extract_strided_slice %27 {offsets = [0, 128], sizes = [8, 128], strides = [1, 1]} : vector<8x512xf32> to vector<8x128xf32>
      %37 = arith.negf %36 : vector<8x128xf32>
      %38 = math.exp %37 : vector<8x128xf32>
      %cst_41 = arith.constant 1.000000e+00 : f32
      %39 = vector.broadcast %cst_41 : f32 to vector<8x128xf32>
      %40 = arith.addf %39, %38 : vector<8x128xf32>
      %41 = arith.divf %39, %40 : vector<8x128xf32>
      %42 = vector.extract_strided_slice %27 {offsets = [0, 256], sizes = [8, 128], strides = [1, 1]} : vector<8x512xf32> to vector<8x128xf32>
      %43 = math.tanh %42 : vector<8x128xf32>
      %44 = vector.extract_strided_slice %27 {offsets = [0, 384], sizes = [8, 128], strides = [1, 1]} : vector<8x512xf32> to vector<8x128xf32>
      %45 = arith.negf %44 : vector<8x128xf32>
      %46 = math.exp %45 : vector<8x128xf32>
      %cst_42 = arith.constant 1.000000e+00 : f32
      %47 = vector.broadcast %cst_42 : f32 to vector<8x128xf32>
      %48 = arith.addf %47, %46 : vector<8x128xf32>
      %49 = arith.divf %47, %48 : vector<8x128xf32>
      %50 = arith.mulf %41, %29 : vector<8x128xf32>
      %51 = arith.mulf %35, %43 : vector<8x128xf32>
      %52 = arith.addf %50, %51 : vector<8x128xf32>
      %53 = math.tanh %52 : vector<8x128xf32>
      %54 = arith.mulf %49, %53 : vector<8x128xf32>
      %c0_43 = arith.constant 0 : index
      %c0_44 = arith.constant 0 : index
      %c0_45 = arith.constant 0 : index
      %55 = vector.load %arg9[%c0_43, %c0_44, %c0_45] : memref<2x8x128xf32, #tpu.memory_space<vmem>>, vector<1x8x128xf32>
      %56 = vector.shape_cast %55 : vector<1x8x128xf32> to vector<8x128xf32>
      %57 = vector.shape_cast %54 : vector<8x128xf32> to vector<1x8x128xf32>
      tpu.vector_store %arg9[%c0_43, %c0_44, %c0_45], %57 {strides = array<i32>} : memref<2x8x128xf32, #tpu.memory_space<vmem>>, vector<1x8x128xf32>,
      %c0_46 = arith.constant 0 : index
      %c0_47 = arith.constant 0 : index
      %c0_48 = arith.constant 0 : index
      %58 = vector.load %arg10[%c0_46, %c0_47, %c0_48] : memref<2x8x128xf32, #tpu.memory_space<vmem>>, vector<1x8x128xf32>
      %59 = vector.shape_cast %58 : vector<1x8x128xf32> to vector<8x128xf32>
      %60 = vector.shape_cast %52 : vector<8x128xf32> to vector<1x8x128xf32>
      tpu.vector_store %arg10[%c0_46, %c0_47, %c0_48], %60 {strides = array<i32>} : memref<2x8x128xf32, #tpu.memory_space<vmem>>, vector<1x8x128xf32>,
      %61 = arith.truncf %54 : vector<8x128xf32> to vector<8x128xbf16>
      %c0_49 = arith.constant 0 : index
      %c0_50 = arith.constant 0 : index
      %62 = vector.load %arg11[%c0_49, %c0_50] : memref<8x256xbf16, #tpu.memory_space<vmem>>, vector<8x128xbf16>
      tpu.vector_store %arg11[%c0_49, %c0_50], %61 {strides = array<i32>} : memref<8x256xbf16, #tpu.memory_space<vmem>>, vector<8x128xbf16>,
      %c1 = arith.constant 1 : index
      %c0_51 = arith.constant 0 : index
      %c0_52 = arith.constant 0 : index
      %63 = vector.load %arg9[%c1, %c0_51, %c0_52] : memref<2x8x128xf32, #tpu.memory_space<vmem>>, vector<1x8x128xf32>
      %64 = vector.shape_cast %63 : vector<1x8x128xf32> to vector<8x128xf32>
      %65 = arith.truncf %64 : vector<8x128xf32> to vector<8x128xbf16>
      %c0_53 = arith.constant 0 : index
      %c128 = arith.constant 128 : index
      %66 = vector.load %arg11[%c0_53, %c128] : memref<8x256xbf16, #tpu.memory_space<vmem>>, vector<8x128xbf16>
      tpu.vector_store %arg11[%c0_53, %c128], %65 {strides = array<i32>} : memref<8x256xbf16, #tpu.memory_space<vmem>>, vector<8x128xbf16>,
      %c0_54 = arith.constant 0 : index
      %c0_55 = arith.constant 0 : index
      %67 = vector.load %arg11[%c0_54, %c0_55] : memref<8x256xbf16, #tpu.memory_space<vmem>>, vector<8x256xbf16>
      %c0_56 = arith.constant 0 : index
      %c0_57 = arith.constant 0 : index
      %68 = vector.load %arg4[%c0_56, %c0_57] : memref<256x512xbf16, #tpu.memory_space<vmem>>, vector<256x512xbf16>
      %cst_58 = arith.constant dense<0.000000e+00> : vector<8x512xf32>
      %69 = tpu.matmul %67, %68, %cst_58 {dimension_numbers = #tpu.dot_dimension_numbers<[1], [0], [0], [1], [0, 0, 1, 1], [], []>} : vector<8x256xbf16>, vector<256x512xbf16>, vector<8x512xf32> -> vector<8x512xf32>
      %c0_59 = arith.constant 0 : index
      %c0_60 = arith.constant 0 : index
      %70 = vector.load %arg5[%c0_59, %c0_60] : memref<1x512xf32, #tpu.memory_space<vmem>>, vector<1x512xf32>
      %71 = vector.broadcast %70 : vector<1x512xf32> to vector<8x512xf32>
      %72 = arith.addf %69, %71 : vector<8x512xf32>
      %c1_61 = arith.constant 1 : index
      %c0_62 = arith.constant 0 : index
      %c0_63 = arith.constant 0 : index
      %73 = vector.load %arg10[%c1_61, %c0_62, %c0_63] : memref<2x8x128xf32, #tpu.memory_space<vmem>>, vector<1x8x128xf32>
      %74 = vector.shape_cast %73 : vector<1x8x128xf32> to vector<8x128xf32>
      %75 = vector.extract_strided_slice %72 {offsets = [0, 0], sizes = [8, 128], strides = [1, 1]} : vector<8x512xf32> to vector<8x128xf32>
      %76 = arith.negf %75 : vector<8x128xf32>
      %77 = math.exp %76 : vector<8x128xf32>
      %cst_64 = arith.constant 1.000000e+00 : f32
      %78 = vector.broadcast %cst_64 : f32 to vector<8x128xf32>
      %79 = arith.addf %78, %77 : vector<8x128xf32>
      %80 = arith.divf %78, %79 : vector<8x128xf32>
      %81 = vector.extract_strided_slice %72 {offsets = [0, 128], sizes = [8, 128], strides = [1, 1]} : vector<8x512xf32> to vector<8x128xf32>
      %82 = arith.negf %81 : vector<8x128xf32>
      %83 = math.exp %82 : vector<8x128xf32>
      %cst_65 = arith.constant 1.000000e+00 : f32
      %84 = vector.broadcast %cst_65 : f32 to vector<8x128xf32>
      %85 = arith.addf %84, %83 : vector<8x128xf32>
      %86 = arith.divf %84, %85 : vector<8x128xf32>
      %87 = vector.extract_strided_slice %72 {offsets = [0, 256], sizes = [8, 128], strides = [1, 1]} : vector<8x512xf32> to vector<8x128xf32>
      %88 = math.tanh %87 : vector<8x128xf32>
      %89 = vector.extract_strided_slice %72 {offsets = [0, 384], sizes = [8, 128], strides = [1, 1]} : vector<8x512xf32> to vector<8x128xf32>
      %90 = arith.negf %89 : vector<8x128xf32>
      %91 = math.exp %90 : vector<8x128xf32>
      %cst_66 = arith.constant 1.000000e+00 : f32
      %92 = vector.broadcast %cst_66 : f32 to vector<8x128xf32>
      %93 = arith.addf %92, %91 : vector<8x128xf32>
      %94 = arith.divf %92, %93 : vector<8x128xf32>
      %95 = arith.mulf %86, %74 : vector<8x128xf32>
      %96 = arith.mulf %80, %88 : vector<8x128xf32>
      %97 = arith.addf %95, %96 : vector<8x128xf32>
      %98 = math.tanh %97 : vector<8x128xf32>
      %99 = arith.mulf %94, %98 : vector<8x128xf32>
      %c1_67 = arith.constant 1 : index
      %c0_68 = arith.constant 0 : index
      %c0_69 = arith.constant 0 : index
      %100 = vector.load %arg9[%c1_67, %c0_68, %c0_69] : memref<2x8x128xf32, #tpu.memory_space<vmem>>, vector<1x8x128xf32>
      %101 = vector.shape_cast %100 : vector<1x8x128xf32> to vector<8x128xf32>
      %102 = vector.shape_cast %99 : vector<8x128xf32> to vector<1x8x128xf32>
      tpu.vector_store %arg9[%c1_67, %c0_68, %c0_69], %102 {strides = array<i32>} : memref<2x8x128xf32, #tpu.memory_space<vmem>>, vector<1x8x128xf32>,
      %c1_70 = arith.constant 1 : index
      %c0_71 = arith.constant 0 : index
      %c0_72 = arith.constant 0 : index
      %103 = vector.load %arg10[%c1_70, %c0_71, %c0_72] : memref<2x8x128xf32, #tpu.memory_space<vmem>>, vector<1x8x128xf32>
      %104 = vector.shape_cast %103 : vector<1x8x128xf32> to vector<8x128xf32>
      %105 = vector.shape_cast %97 : vector<8x128xf32> to vector<1x8x128xf32>
      tpu.vector_store %arg10[%c1_70, %c0_71, %c0_72], %105 {strides = array<i32>} : memref<2x8x128xf32, #tpu.memory_space<vmem>>, vector<1x8x128xf32>,
    }
    %c6_i32_15 = arith.constant 6 : i32
    %c0_16 = arith.constant 0 : index
    %c0_17 = arith.constant 0 : index
    %c0_18 = arith.constant 0 : index
    %12 = vector.load %arg9[%c0_16, %c0_17, %c0_18] : memref<2x8x128xf32, #tpu.memory_space<vmem>>, vector<2x8x128xf32>
    %c0_19 = arith.constant 0 : index
    %c0_20 = arith.constant 0 : index
    %c0_21 = arith.constant 0 : index
    %13 = vector.load %arg6[%c0_19, %c0_20, %c0_21] : memref<2x8x128xf32, #tpu.memory_space<vmem>>, vector<2x8x128xf32>
    tpu.vector_store %arg6[%c0_19, %c0_20, %c0_21], %12 {strides = array<i32>} : memref<2x8x128xf32, #tpu.memory_space<vmem>>, vector<2x8x128xf32>,
    %c0_22 = arith.constant 0 : index
    %c0_23 = arith.constant 0 : index
    %c0_24 = arith.constant 0 : index
    %14 = vector.load %arg10[%c0_22, %c0_23, %c0_24] : memref<2x8x128xf32, #tpu.memory_space<vmem>>, vector<2x8x128xf32>
    %c0_25 = arith.constant 0 : index
    %c0_26 = arith.constant 0 : index
    %c0_27 = arith.constant 0 : index
    %15 = vector.load %arg7[%c0_25, %c0_26, %c0_27] : memref<2x8x128xf32, #tpu.memory_space<vmem>>, vector<2x8x128xf32>
    tpu.vector_store %arg7[%c0_25, %c0_26, %c0_27], %14 {strides = array<i32>} : memref<2x8x128xf32, #tpu.memory_space<vmem>>, vector<2x8x128xf32>,
    return
  }
}

module attributes {stable_mosaic.version = 11 : i64} {
  func.func @kernel(%arg0: memref<4xi32, #tpu.memory_space<smem>>, %arg1: memref<4x8x128xf32, #tpu.memory_space<vmem>>, %arg2: memref<8x128xf32, #tpu.memory_space<vmem>>, %arg3: memref<2x8x128xf32, #tpu.memory_space<vmem>>, %arg4: memref<2x8x128xf32, #tpu.memory_space<vmem>>, %arg5: memref<256x512xbf16, #tpu.memory_space<vmem>>, %arg6: memref<1x512xf32, #tpu.memory_space<vmem>>, %arg7: memref<256x512xbf16, #tpu.memory_space<vmem>>, %arg8: memref<1x512xf32, #tpu.memory_space<vmem>>, %arg9: memref<128x128xbf16, #tpu.memory_space<vmem>>, %arg10: memref<1x128xf32, #tpu.memory_space<vmem>>, %arg11: memref<4x8x128xf32, #tpu.memory_space<vmem>>, %arg12: memref<2x8x128xf32, #tpu.memory_space<vmem>>, %arg13: memref<2x8x128xf32, #tpu.memory_space<vmem>>, %arg14: memref<8x128xf32, #tpu.memory_space<vmem>>, %arg15: memref<8x256xbf16, #tpu.memory_space<vmem>>, %arg16: memref<8x256xbf16, #tpu.memory_space<vmem>>) attributes {dimension_semantics = [], scalar_prefetch = 0 : i64, scratch_operands = 5 : i64, tpu.core_type = #tpu.core_type<tc>} {
    %c0 = arith.constant 0 : index
    %c0_0 = arith.constant 0 : index
    %c0_1 = arith.constant 0 : index
    %0 = vector.load %arg3[%c0, %c0_0, %c0_1] : memref<2x8x128xf32, #tpu.memory_space<vmem>>, vector<2x8x128xf32>
    %c0_2 = arith.constant 0 : index
    %c0_3 = arith.constant 0 : index
    %c0_4 = arith.constant 0 : index
    %1 = vector.load %arg12[%c0_2, %c0_3, %c0_4] : memref<2x8x128xf32, #tpu.memory_space<vmem>>, vector<2x8x128xf32>
    tpu.vector_store %arg12[%c0_2, %c0_3, %c0_4], %0 {strides = array<i32>} : memref<2x8x128xf32, #tpu.memory_space<vmem>>, vector<2x8x128xf32>,
    %c0_5 = arith.constant 0 : index
    %c0_6 = arith.constant 0 : index
    %c0_7 = arith.constant 0 : index
    %2 = vector.load %arg4[%c0_5, %c0_6, %c0_7] : memref<2x8x128xf32, #tpu.memory_space<vmem>>, vector<2x8x128xf32>
    %c0_8 = arith.constant 0 : index
    %c0_9 = arith.constant 0 : index
    %c0_10 = arith.constant 0 : index
    %3 = vector.load %arg13[%c0_8, %c0_9, %c0_10] : memref<2x8x128xf32, #tpu.memory_space<vmem>>, vector<2x8x128xf32>
    tpu.vector_store %arg13[%c0_8, %c0_9, %c0_10], %2 {strides = array<i32>} : memref<2x8x128xf32, #tpu.memory_space<vmem>>, vector<2x8x128xf32>,
    %c0_11 = arith.constant 0 : index
    %c0_12 = arith.constant 0 : index
    %4 = vector.load %arg2[%c0_11, %c0_12] : memref<8x128xf32, #tpu.memory_space<vmem>>, vector<8x128xf32>
    %c0_13 = arith.constant 0 : index
    %c0_14 = arith.constant 0 : index
    %5 = vector.load %arg14[%c0_13, %c0_14] : memref<8x128xf32, #tpu.memory_space<vmem>>, vector<8x128xf32>
    tpu.vector_store %arg14[%c0_13, %c0_14], %4 {strides = array<i32>} : memref<8x128xf32, #tpu.memory_space<vmem>>, vector<8x128xf32>,
    %c0_i32 = arith.constant 0 : i32
    %c4_i32 = arith.constant 4 : i32
    %6 = arith.addi %c0_i32, %c4_i32 : i32
    %c1_i32 = arith.constant 1 : i32
    scf.for %arg17 = %c0_i32 to %6 step %c1_i32  : i32 {
      %c1_i32_16 = arith.constant 1 : i32
      %7 = arith.muli %arg17, %c1_i32_16 : i32
      %c0_i32_17 = arith.constant 0 : i32
      %8 = arith.addi %c0_i32_17, %7 : i32
      %c0_18 = arith.constant 0 : index
      %c0_19 = arith.constant 0 : index
      %9 = vector.load %arg14[%c0_18, %c0_19] : memref<8x128xf32, #tpu.memory_space<vmem>>, vector<8x128xf32>
      %10 = arith.truncf %9 : vector<8x128xf32> to vector<8x128xbf16>
      %c0_20 = arith.constant 0 : index
      %c0_21 = arith.constant 0 : index
      %11 = vector.load %arg15[%c0_20, %c0_21] : memref<8x256xbf16, #tpu.memory_space<vmem>>, vector<8x128xbf16>
      tpu.vector_store %arg15[%c0_20, %c0_21], %10 {strides = array<i32>} : memref<8x256xbf16, #tpu.memory_space<vmem>>, vector<8x128xbf16>,
      %c0_22 = arith.constant 0 : index
      %c0_23 = arith.constant 0 : index
      %c0_24 = arith.constant 0 : index
      %12 = vector.load %arg12[%c0_22, %c0_23, %c0_24] : memref<2x8x128xf32, #tpu.memory_space<vmem>>, vector<1x8x128xf32>
      %13 = vector.shape_cast %12 : vector<1x8x128xf32> to vector<8x128xf32>
      %14 = arith.truncf %13 : vector<8x128xf32> to vector<8x128xbf16>
      %c0_25 = arith.constant 0 : index
      %c128 = arith.constant 128 : index
      %15 = vector.load %arg15[%c0_25, %c128] : memref<8x256xbf16, #tpu.memory_space<vmem>>, vector<8x128xbf16>
      tpu.vector_store %arg15[%c0_25, %c128], %14 {strides = array<i32>} : memref<8x256xbf16, #tpu.memory_space<vmem>>, vector<8x128xbf16>,
      %c0_26 = arith.constant 0 : index
      %c0_27 = arith.constant 0 : index
      %16 = vector.load %arg15[%c0_26, %c0_27] : memref<8x256xbf16, #tpu.memory_space<vmem>>, vector<8x256xbf16>
      %c0_28 = arith.constant 0 : index
      %c0_29 = arith.constant 0 : index
      %17 = vector.load %arg5[%c0_28, %c0_29] : memref<256x512xbf16, #tpu.memory_space<vmem>>, vector<256x512xbf16>
      %cst = arith.constant dense<0.000000e+00> : vector<8x512xf32>
      %18 = tpu.matmul %16, %17, %cst {dimension_numbers = #tpu.dot_dimension_numbers<[1], [0], [0], [1], [0, 0, 1, 1], [], []>} : vector<8x256xbf16>, vector<256x512xbf16>, vector<8x512xf32> -> vector<8x512xf32>
      %c0_30 = arith.constant 0 : index
      %c0_31 = arith.constant 0 : index
      %19 = vector.load %arg6[%c0_30, %c0_31] : memref<1x512xf32, #tpu.memory_space<vmem>>, vector<1x512xf32>
      %20 = vector.broadcast %19 : vector<1x512xf32> to vector<8x512xf32>
      %21 = arith.addf %18, %20 : vector<8x512xf32>
      %c0_32 = arith.constant 0 : index
      %c0_33 = arith.constant 0 : index
      %c0_34 = arith.constant 0 : index
      %22 = vector.load %arg13[%c0_32, %c0_33, %c0_34] : memref<2x8x128xf32, #tpu.memory_space<vmem>>, vector<1x8x128xf32>
      %23 = vector.shape_cast %22 : vector<1x8x128xf32> to vector<8x128xf32>
      %24 = vector.extract_strided_slice %21 {offsets = [0, 0], sizes = [8, 128], strides = [1, 1]} : vector<8x512xf32> to vector<8x128xf32>
      %25 = arith.negf %24 : vector<8x128xf32>
      %26 = math.exp %25 : vector<8x128xf32>
      %cst_35 = arith.constant 1.000000e+00 : f32
      %27 = vector.broadcast %cst_35 : f32 to vector<8x128xf32>
      %28 = arith.addf %27, %26 : vector<8x128xf32>
      %29 = arith.divf %27, %28 : vector<8x128xf32>
      %30 = vector.extract_strided_slice %21 {offsets = [0, 128], sizes = [8, 128], strides = [1, 1]} : vector<8x512xf32> to vector<8x128xf32>
      %31 = arith.negf %30 : vector<8x128xf32>
      %32 = math.exp %31 : vector<8x128xf32>
      %cst_36 = arith.constant 1.000000e+00 : f32
      %33 = vector.broadcast %cst_36 : f32 to vector<8x128xf32>
      %34 = arith.addf %33, %32 : vector<8x128xf32>
      %35 = arith.divf %33, %34 : vector<8x128xf32>
      %36 = vector.extract_strided_slice %21 {offsets = [0, 256], sizes = [8, 128], strides = [1, 1]} : vector<8x512xf32> to vector<8x128xf32>
      %37 = math.tanh %36 : vector<8x128xf32>
      %38 = vector.extract_strided_slice %21 {offsets = [0, 384], sizes = [8, 128], strides = [1, 1]} : vector<8x512xf32> to vector<8x128xf32>
      %39 = arith.negf %38 : vector<8x128xf32>
      %40 = math.exp %39 : vector<8x128xf32>
      %cst_37 = arith.constant 1.000000e+00 : f32
      %41 = vector.broadcast %cst_37 : f32 to vector<8x128xf32>
      %42 = arith.addf %41, %40 : vector<8x128xf32>
      %43 = arith.divf %41, %42 : vector<8x128xf32>
      %44 = arith.mulf %35, %23 : vector<8x128xf32>
      %45 = arith.mulf %29, %37 : vector<8x128xf32>
      %46 = arith.addf %44, %45 : vector<8x128xf32>
      %47 = math.tanh %46 : vector<8x128xf32>
      %48 = arith.mulf %43, %47 : vector<8x128xf32>
      %c0_38 = arith.constant 0 : index
      %c0_39 = arith.constant 0 : index
      %c0_40 = arith.constant 0 : index
      %49 = vector.load %arg12[%c0_38, %c0_39, %c0_40] : memref<2x8x128xf32, #tpu.memory_space<vmem>>, vector<1x8x128xf32>
      %50 = vector.shape_cast %49 : vector<1x8x128xf32> to vector<8x128xf32>
      %51 = vector.shape_cast %48 : vector<8x128xf32> to vector<1x8x128xf32>
      tpu.vector_store %arg12[%c0_38, %c0_39, %c0_40], %51 {strides = array<i32>} : memref<2x8x128xf32, #tpu.memory_space<vmem>>, vector<1x8x128xf32>,
      %c0_41 = arith.constant 0 : index
      %c0_42 = arith.constant 0 : index
      %c0_43 = arith.constant 0 : index
      %52 = vector.load %arg13[%c0_41, %c0_42, %c0_43] : memref<2x8x128xf32, #tpu.memory_space<vmem>>, vector<1x8x128xf32>
      %53 = vector.shape_cast %52 : vector<1x8x128xf32> to vector<8x128xf32>
      %54 = vector.shape_cast %46 : vector<8x128xf32> to vector<1x8x128xf32>
      tpu.vector_store %arg13[%c0_41, %c0_42, %c0_43], %54 {strides = array<i32>} : memref<2x8x128xf32, #tpu.memory_space<vmem>>, vector<1x8x128xf32>,
      %55 = arith.truncf %48 : vector<8x128xf32> to vector<8x128xbf16>
      %c0_44 = arith.constant 0 : index
      %c0_45 = arith.constant 0 : index
      %56 = vector.load %arg16[%c0_44, %c0_45] : memref<8x256xbf16, #tpu.memory_space<vmem>>, vector<8x128xbf16>
      tpu.vector_store %arg16[%c0_44, %c0_45], %55 {strides = array<i32>} : memref<8x256xbf16, #tpu.memory_space<vmem>>, vector<8x128xbf16>,
      %c1 = arith.constant 1 : index
      %c0_46 = arith.constant 0 : index
      %c0_47 = arith.constant 0 : index
      %57 = vector.load %arg12[%c1, %c0_46, %c0_47] : memref<2x8x128xf32, #tpu.memory_space<vmem>>, vector<1x8x128xf32>
      %58 = vector.shape_cast %57 : vector<1x8x128xf32> to vector<8x128xf32>
      %59 = arith.truncf %58 : vector<8x128xf32> to vector<8x128xbf16>
      %c0_48 = arith.constant 0 : index
      %c128_49 = arith.constant 128 : index
      %60 = vector.load %arg16[%c0_48, %c128_49] : memref<8x256xbf16, #tpu.memory_space<vmem>>, vector<8x128xbf16>
      tpu.vector_store %arg16[%c0_48, %c128_49], %59 {strides = array<i32>} : memref<8x256xbf16, #tpu.memory_space<vmem>>, vector<8x128xbf16>,
      %c0_50 = arith.constant 0 : index
      %c0_51 = arith.constant 0 : index
      %61 = vector.load %arg16[%c0_50, %c0_51] : memref<8x256xbf16, #tpu.memory_space<vmem>>, vector<8x256xbf16>
      %c0_52 = arith.constant 0 : index
      %c0_53 = arith.constant 0 : index
      %62 = vector.load %arg7[%c0_52, %c0_53] : memref<256x512xbf16, #tpu.memory_space<vmem>>, vector<256x512xbf16>
      %cst_54 = arith.constant dense<0.000000e+00> : vector<8x512xf32>
      %63 = tpu.matmul %61, %62, %cst_54 {dimension_numbers = #tpu.dot_dimension_numbers<[1], [0], [0], [1], [0, 0, 1, 1], [], []>} : vector<8x256xbf16>, vector<256x512xbf16>, vector<8x512xf32> -> vector<8x512xf32>
      %c0_55 = arith.constant 0 : index
      %c0_56 = arith.constant 0 : index
      %64 = vector.load %arg8[%c0_55, %c0_56] : memref<1x512xf32, #tpu.memory_space<vmem>>, vector<1x512xf32>
      %65 = vector.broadcast %64 : vector<1x512xf32> to vector<8x512xf32>
      %66 = arith.addf %63, %65 : vector<8x512xf32>
      %c1_57 = arith.constant 1 : index
      %c0_58 = arith.constant 0 : index
      %c0_59 = arith.constant 0 : index
      %67 = vector.load %arg13[%c1_57, %c0_58, %c0_59] : memref<2x8x128xf32, #tpu.memory_space<vmem>>, vector<1x8x128xf32>
      %68 = vector.shape_cast %67 : vector<1x8x128xf32> to vector<8x128xf32>
      %69 = vector.extract_strided_slice %66 {offsets = [0, 0], sizes = [8, 128], strides = [1, 1]} : vector<8x512xf32> to vector<8x128xf32>
      %70 = arith.negf %69 : vector<8x128xf32>
      %71 = math.exp %70 : vector<8x128xf32>
      %cst_60 = arith.constant 1.000000e+00 : f32
      %72 = vector.broadcast %cst_60 : f32 to vector<8x128xf32>
      %73 = arith.addf %72, %71 : vector<8x128xf32>
      %74 = arith.divf %72, %73 : vector<8x128xf32>
      %75 = vector.extract_strided_slice %66 {offsets = [0, 128], sizes = [8, 128], strides = [1, 1]} : vector<8x512xf32> to vector<8x128xf32>
      %76 = arith.negf %75 : vector<8x128xf32>
      %77 = math.exp %76 : vector<8x128xf32>
      %cst_61 = arith.constant 1.000000e+00 : f32
      %78 = vector.broadcast %cst_61 : f32 to vector<8x128xf32>
      %79 = arith.addf %78, %77 : vector<8x128xf32>
      %80 = arith.divf %78, %79 : vector<8x128xf32>
      %81 = vector.extract_strided_slice %66 {offsets = [0, 256], sizes = [8, 128], strides = [1, 1]} : vector<8x512xf32> to vector<8x128xf32>
      %82 = math.tanh %81 : vector<8x128xf32>
      %83 = vector.extract_strided_slice %66 {offsets = [0, 384], sizes = [8, 128], strides = [1, 1]} : vector<8x512xf32> to vector<8x128xf32>
      %84 = arith.negf %83 : vector<8x128xf32>
      %85 = math.exp %84 : vector<8x128xf32>
      %cst_62 = arith.constant 1.000000e+00 : f32
      %86 = vector.broadcast %cst_62 : f32 to vector<8x128xf32>
      %87 = arith.addf %86, %85 : vector<8x128xf32>
      %88 = arith.divf %86, %87 : vector<8x128xf32>
      %89 = arith.mulf %80, %68 : vector<8x128xf32>
      %90 = arith.mulf %74, %82 : vector<8x128xf32>
      %91 = arith.addf %89, %90 : vector<8x128xf32>
      %92 = math.tanh %91 : vector<8x128xf32>
      %93 = arith.mulf %88, %92 : vector<8x128xf32>
      %c1_63 = arith.constant 1 : index
      %c0_64 = arith.constant 0 : index
      %c0_65 = arith.constant 0 : index
      %94 = vector.load %arg12[%c1_63, %c0_64, %c0_65] : memref<2x8x128xf32, #tpu.memory_space<vmem>>, vector<1x8x128xf32>
      %95 = vector.shape_cast %94 : vector<1x8x128xf32> to vector<8x128xf32>
      %96 = vector.shape_cast %93 : vector<8x128xf32> to vector<1x8x128xf32>
      tpu.vector_store %arg12[%c1_63, %c0_64, %c0_65], %96 {strides = array<i32>} : memref<2x8x128xf32, #tpu.memory_space<vmem>>, vector<1x8x128xf32>,
      %c1_66 = arith.constant 1 : index
      %c0_67 = arith.constant 0 : index
      %c0_68 = arith.constant 0 : index
      %97 = vector.load %arg13[%c1_66, %c0_67, %c0_68] : memref<2x8x128xf32, #tpu.memory_space<vmem>>, vector<1x8x128xf32>
      %98 = vector.shape_cast %97 : vector<1x8x128xf32> to vector<8x128xf32>
      %99 = vector.shape_cast %91 : vector<8x128xf32> to vector<1x8x128xf32>
      tpu.vector_store %arg13[%c1_66, %c0_67, %c0_68], %99 {strides = array<i32>} : memref<2x8x128xf32, #tpu.memory_space<vmem>>, vector<1x8x128xf32>,
      %100 = arith.truncf %93 : vector<8x128xf32> to vector<8x128xbf16>
      %c0_69 = arith.constant 0 : index
      %c0_70 = arith.constant 0 : index
      %101 = vector.load %arg9[%c0_69, %c0_70] : memref<128x128xbf16, #tpu.memory_space<vmem>>, vector<128x128xbf16>
      %cst_71 = arith.constant dense<0.000000e+00> : vector<8x128xf32>
      %102 = tpu.matmul %100, %101, %cst_71 {dimension_numbers = #tpu.dot_dimension_numbers<[1], [0], [0], [1], [0, 0, 1, 1], [], []>} : vector<8x128xbf16>, vector<128x128xbf16>, vector<8x128xf32> -> vector<8x128xf32>
      %c0_72 = arith.constant 0 : index
      %c0_73 = arith.constant 0 : index
      %103 = vector.load %arg10[%c0_72, %c0_73] : memref<1x128xf32, #tpu.memory_space<vmem>>, vector<1x128xf32>
      %104 = vector.broadcast %103 : vector<1x128xf32> to vector<8x128xf32>
      %105 = arith.addf %102, %104 : vector<8x128xf32>
      %106 = arith.index_cast %8 : i32 to index
      %c0_74 = arith.constant 0 : index
      %c0_75 = arith.constant 0 : index
      %107 = vector.load %arg11[%106, %c0_74, %c0_75] : memref<4x8x128xf32, #tpu.memory_space<vmem>>, vector<1x8x128xf32>
      %108 = vector.shape_cast %107 : vector<1x8x128xf32> to vector<8x128xf32>
      %109 = vector.shape_cast %105 : vector<8x128xf32> to vector<1x8x128xf32>
      tpu.vector_store %arg11[%106, %c0_74, %c0_75], %109 {strides = array<i32>} : memref<4x8x128xf32, #tpu.memory_space<vmem>>, vector<1x8x128xf32>,
      %110 = arith.index_cast %8 : i32 to index
      %111 = memref.load %arg0[%110] : memref<4xi32, #tpu.memory_space<smem>>
      %112 = arith.sitofp %111 : i32 to f32
      %113 = arith.index_cast %8 : i32 to index
      %c0_76 = arith.constant 0 : index
      %c0_77 = arith.constant 0 : index
      %114 = vector.load %arg1[%113, %c0_76, %c0_77] : memref<4x8x128xf32, #tpu.memory_space<vmem>>, vector<1x8x128xf32>
      %115 = vector.shape_cast %114 : vector<1x8x128xf32> to vector<8x128xf32>
      %116 = vector.broadcast %112 : f32 to vector<8x128xf32>
      %117 = arith.mulf %116, %115 : vector<8x128xf32>
      %cst_78 = arith.constant 1.000000e+00 : f32
      %118 = arith.subf %cst_78, %112 : f32
      %119 = vector.broadcast %118 : f32 to vector<8x128xf32>
      %120 = arith.mulf %119, %105 : vector<8x128xf32>
      %121 = arith.addf %117, %120 : vector<8x128xf32>
      %c0_79 = arith.constant 0 : index
      %c0_80 = arith.constant 0 : index
      %122 = vector.load %arg14[%c0_79, %c0_80] : memref<8x128xf32, #tpu.memory_space<vmem>>, vector<8x128xf32>
      tpu.vector_store %arg14[%c0_79, %c0_80], %121 {strides = array<i32>} : memref<8x128xf32, #tpu.memory_space<vmem>>, vector<8x128xf32>,
    }
    %c4_i32_15 = arith.constant 4 : i32
    return
  }
}

</mosaic_0001>

<bundles_post_ra>
// kernel: _seq2seq_forward.2
= control target key start
LH: loop header
LB: loop body
LE: loop exit
PB: predicated region body
PF: predicated region fallthrough
CT: control target
= control target key end

     0   :  { %13 = vsyncpa [#allocation7], 0  ;;  %s2356_s0 = inlined_call_operand.vmem [shape: bf16[48,128], index: 0, kind: input, shape index: {}]   ;;  %s2357_s1 = inlined_call_operand.hbm [shape: bf16[128,512], index: 1, kind: input, shape index: {}]   ;;  %s2358_s2 = inlined_call_operand.vmem [shape: f32[1,512], index: 2, kind: input, shape index: {}]   ;;  %s2359_s3 = inlined_call_operand.hbm [shape: bf16[128,512], index: 3, kind: input, shape index: {}]   ;;  %s2360_s4 = inlined_call_operand.hbm [shape: bf16[256,512], index: 4, kind: input, shape index: {}]   ;;  %s2361_s5 = inlined_call_operand.vmem [shape: f32[1,512], index: 5, kind: input, shape index: {}]   ;;  %s2362_s6 = inlined_call_operand.vmem [shape: f32[2,8,128], index: 6, kind: output, shape index: {0}]   ;;  %s2363_s7 = inlined_call_operand.vmem [shape: f32[2,8,128], index: 7, kind: output, shape index: {1}]  }
   0x1   :  { %14 = vsyncpa [#allocation9], 0  ;;  %s36_s26 = sshll.u32 %s2359_s3, 4  ;;  %s2158_s27 = smov [#allocation8]   ;;  %s37_s26 = int_to_ptr.hbm [resolvable:$true] %s36_s26 }
   0x2   :  { %s38_s28 = sshll.u32 %s2158_s27, 4  ;;  %s21_s8 = sshll.u32 %s2357_s1, 4  ;;  %s39_s28 = int_to_ptr.vmem [resolvable:$true] %s38_s28  ;;  %s22_s8 = int_to_ptr.hbm [resolvable:$true] %s21_s8 }
   0x3   :  { %s2159_s9 = smov 256   ;;  %s2160_s10 = smov 16  }
   0x4   :  { %44 = dma.hbm_to_vmem [thread:$0]  %s37_s26, 4096, %s39_s28, [#allocation9], %s2159_s9, %s2159_s9, %s2160_s10  }
   0x5   :  { %s2161_s11 = smov [#allocation6]   ;;  %s49_s15 = sshll.u32 %s2360_s4, 4  ;;  %s50_s15 = int_to_ptr.hbm [resolvable:$true] %s49_s15 }
   0x6   :  { %s23_s12 = sshll.u32 %s2161_s11, 4  ;;  %s2162_s3 = smov [#allocation10]   ;;  %s24_s12 = int_to_ptr.vmem [resolvable:$true] %s23_s12 }
   0x7   :  { %29 = dma.hbm_to_vmem [thread:$0]  %s22_s8, 4096, %s24_s12, [#allocation7], %s2159_s9, %s2159_s9, %s2160_s10  }
   0x8   :  { %s51_s16 = sshll.u32 %s2162_s3, 4  ;;  %s52_s16 = int_to_ptr.vmem [resolvable:$true] %s51_s16 }
   0x9   :  { %57 = dma.hbm_to_vmem [thread:$0]  %s50_s15, 8192, %s52_s16, [#allocation9], %s2159_s9, %s2159_s9, %s2160_s10  }
   0xa   :  { %2150 = dma.done.wait [#allocation7], 4096  }
   0xb   :  { %2151 = vsyncadd [#allocation7], 4294963200 }
   0xc   :  { %2152 = dma.done.wait [#allocation9], 12288  }
   0xd   :  { %2153 = vsyncadd [#allocation9], 4294955008  ;;  %v2163_v0 = vmov 0.0   ;;  %v1484_v1 = vld [vmem:[#allocation6 + $0xe0] sm:$0xf] }
   0xe   :  { %418 = vst [vmem:[#allocation3] sm:$0xff] %v2163_v0  ;;  %v1924_v2 = vld [vmem:[#allocation6 + $0xec] sm:$0xf0]  ;;  %v1922_v3 = vld [vmem:[#allocation6 + $0xe4] sm:$0xf] }
   0xf   :  { %419 = vst [vmem:[#allocation3 + $0x8] sm:$0xff] %v2163_v0  ;;  %v1485_v4 = vor.u32 %v1924_v2, %v1484_v1  ;;  %v1486_v5 = vld [vmem:[#allocation6 + $0xf0] sm:$0xf0]  ;;  %v1492_v6 = vld [vmem:[#allocation6 + $0xe8] sm:$0xf] }
  0x10   :  { %420 = vst [vmem:[#allocation4 + $0x8] sm:$0xff] %v2163_v0  ;;  %v1925_v7 = vld [vmem:[#allocation6 + $0xf4] sm:$0xf0]  ;;  %v1489_v8 = vor.u32 %v1922_v3, %v1486_v5  ;;  %v1923_v10 = vld [vmem:[#allocation6 + $0xec] sm:$0xf] }
  0x11   :  { %421 = vst [vmem:[#allocation4] sm:$0xff] %v2163_v0  ;;  %v1493_v9 = vor.u32 %v1925_v7, %v1492_v6  ;;  %v1494_v11 = vld [vmem:[#allocation6 + $0xf8] sm:$0xf0]  ;;  %v1468_v12 = vld [vmem:[#allocation6 + $0xc0] sm:$0xf]  ;;  %298 = vmatpush.bf16.msra.mxu0 %v1485_v4 }
  0x12   :  { %v1497_v13 = vor.u32 %v1923_v10, %v1494_v11  ;;  %v1920_v14 = vld [vmem:[#allocation6 + $0xcc] sm:$0xf0]  ;;  %v1918_v15 = vld [vmem:[#allocation6 + $0xc4] sm:$0xf]  ;;  %v1470_v16 = vld [vmem:[#allocation6 + $0xd0] sm:$0xf0]  ;;  %322 = vmatpush.bf16.msra.mxu1 %v1489_v8 }
  0x13   :  { %346 = vmatpush.bf16.msra.mxu2 %v1493_v9  ;;  %v1469_v17 = vor.u32 %v1920_v14, %v1468_v12  ;;  %v1473_v18 = vor.u32 %v1918_v15, %v1470_v16  ;;  %v1476_v19 = vld [vmem:[#allocation6 + $0xc8] sm:$0xf]  ;;  %v1921_v20 = vld [vmem:[#allocation6 + $0xd4] sm:$0xf0]  ;;  %v1919_v21 = vld [vmem:[#allocation6 + $0xcc] sm:$0xf] }
  0x14   :  { %370 = vmatpush.bf16.msra.mxu3 %v1497_v13  ;;  %v1477_v22 = vor.u32 %v1921_v20, %v1476_v19  ;;  %v1478_v23 = vld [vmem:[#allocation6 + $0xd8] sm:$0xf0]  ;;  %v1452_v24 = vld [vmem:[#allocation6 + $0xa0] sm:$0xf]  ;;  %v1916_v25 = vld [vmem:[#allocation6 + $0xac] sm:$0xf0] }
  0x15   :  { %v1481_v26 = vor.u32 %v1919_v21, %v1478_v23  ;;  %v1914_v27 = vld [vmem:[#allocation6 + $0xa4] sm:$0xf]  ;;  %v1454_v28 = vld [vmem:[#allocation6 + $0xb0] sm:$0xf0]  ;;  %v1460_v29 = vld [vmem:[#allocation6 + $0xa8] sm:$0xf]  ;;  %299 = vmatpush.bf16.msra.mxu0 %v1469_v17  ;;  %v1453_v30 = vor.u32 %v1916_v25, %v1452_v24 }
  0x16   :  { %v1917_v31 = vld [vmem:[#allocation6 + $0xb4] sm:$0xf0]  ;;  %v1915_v32 = vld [vmem:[#allocation6 + $0xac] sm:$0xf]  ;;  %v1462_v33 = vld [vmem:[#allocation6 + $0xb8] sm:$0xf0]  ;;  %323 = vmatpush.bf16.msra.mxu1 %v1473_v18  ;;  %v1457_v34 = vor.u32 %v1914_v27, %v1454_v28 }
  0x17   :  { %347 = vmatpush.bf16.msra.mxu2 %v1477_v22  ;;  %v1461_v35 = vor.u32 %v1917_v31, %v1460_v29  ;;  %v1436_v36 = vld [vmem:[#allocation6 + $0x80] sm:$0xf]  ;;  %v1912_v37 = vld [vmem:[#allocation6 + $0x8c] sm:$0xf0]  ;;  %v1910_v38 = vld [vmem:[#allocation6 + $0x84] sm:$0xf]  ;;  %v1465_v39 = vor.u32 %v1915_v32, %v1462_v33 }
  0x18   :  { %371 = vmatpush.bf16.msra.mxu3 %v1481_v26  ;;  %v1438_v40 = vld [vmem:[#allocation6 + $0x90] sm:$0xf0]  ;;  %v1444_v41 = vld [vmem:[#allocation6 + $0x88] sm:$0xf]  ;;  %v1913_v42 = vld [vmem:[#allocation6 + $0x94] sm:$0xf0]  ;;  %v1437_v45 = vor.u32 %v1912_v37, %v1436_v36 }
  0x19   :  { %v1911_v43 = vld [vmem:[#allocation6 + $0x8c] sm:$0xf]  ;;  %v1446_v44 = vld [vmem:[#allocation6 + $0x98] sm:$0xf0]  ;;  %300 = vmatpush.bf16.msra.mxu0 %v1453_v30  ;;  %v1441_v46 = vor.u32 %v1910_v38, %v1438_v40  ;;  %v1445_v47 = vor.u32 %v1913_v42, %v1444_v41  ;;  %v1420_v48 = vld [vmem:[#allocation6 + $0x60] sm:$0xf] }
  0x1a   :  { %324 = vmatpush.bf16.msra.mxu1 %v1457_v34  ;;  %v1908_v49 = vld [vmem:[#allocation6 + $0x6c] sm:$0xf0]  ;;  %v1906_v50 = vld [vmem:[#allocation6 + $0x64] sm:$0xf]  ;;  %v1449_v51 = vor.u32 %v1911_v43, %v1446_v44  ;;  %v1422_v52 = vld [vmem:[#allocation6 + $0x70] sm:$0xf0] }
  0x1b   :  { %348 = vmatpush.bf16.msra.mxu2 %v1461_v35  ;;  %v1428_v53 = vld [vmem:[#allocation6 + $0x68] sm:$0xf]  ;;  %v1909_v54 = vld [vmem:[#allocation6 + $0x74] sm:$0xf0]  ;;  %v1907_v55 = vld [vmem:[#allocation6 + $0x6c] sm:$0xf]  ;;  %v1421_v57 = vor.u32 %v1908_v49, %v1420_v48  ;;  %v1425_v58 = vor.u32 %v1906_v50, %v1422_v52 }
  0x1c   :  { %372 = vmatpush.bf16.msra.mxu3 %v1465_v39  ;;  %v1430_v56 = vld [vmem:[#allocation6 + $0x78] sm:$0xf0]  ;;  %v1429_v59 = vor.u32 %v1909_v54, %v1428_v53  ;;  %v1404_v60 = vld [vmem:[#allocation6 + $0x40] sm:$0xf]  ;;  %v1904_v61 = vld [vmem:[#allocation6 + $0x4c] sm:$0xf0] }
  0x1d   :  { %301 = vmatpush.bf16.msra.mxu0 %v1437_v45  ;;  %v1902_v62 = vld [vmem:[#allocation6 + $0x44] sm:$0xf]  ;;  %v1433_v63 = vor.u32 %v1907_v55, %v1430_v56  ;;  %v1406_v0 = vld [vmem:[#allocation6 + $0x50] sm:$0xf0]  ;;  %v1412_v1 = vld [vmem:[#allocation6 + $0x48] sm:$0xf]  ;;  %v1405_v5 = vor.u32 %v1904_v61, %v1404_v60 }
  0x1e   :  { %325 = vmatpush.bf16.msra.mxu1 %v1441_v46  ;;  %v1905_v2 = vld [vmem:[#allocation6 + $0x54] sm:$0xf0]  ;;  %v1903_v3 = vld [vmem:[#allocation6 + $0x4c] sm:$0xf]  ;;  %v1414_v4 = vld [vmem:[#allocation6 + $0x58] sm:$0xf0]  ;;  %v1409_v6 = vor.u32 %v1902_v62, %v1406_v0 }
  0x1f   :  { %349 = vmatpush.bf16.msra.mxu2 %v1445_v47  ;;  %v1413_v7 = vor.u32 %v1905_v2, %v1412_v1  ;;  %v1388_v8 = vld [vmem:[#allocation6 + $0x20] sm:$0xf]  ;;  %v1900_v9 = vld [vmem:[#allocation6 + $0x2c] sm:$0xf0]  ;;  %v1898_v10 = vld [vmem:[#allocation6 + $0x24] sm:$0xf]  ;;  %v1417_v11 = vor.u32 %v1903_v3, %v1414_v4 }
  0x20   :  { %373 = vmatpush.bf16.msra.mxu3 %v1449_v51  ;;  %v1390_v12 = vld [vmem:[#allocation6 + $0x30] sm:$0xf0]  ;;  %v1396_v13 = vld [vmem:[#allocation6 + $0x28] sm:$0xf]  ;;  %v1901_v14 = vld [vmem:[#allocation6 + $0x34] sm:$0xf0]  ;;  %v1389_v17 = vor.u32 %v1900_v9, %v1388_v8 }
  0x21   :  { %302 = vmatpush.bf16.msra.mxu0 %v1421_v57  ;;  %v1899_v15 = vld [vmem:[#allocation6 + $0x2c] sm:$0xf]  ;;  %v1398_v16 = vld [vmem:[#allocation6 + $0x38] sm:$0xf0]  ;;  %v1393_v18 = vor.u32 %v1898_v10, %v1390_v12  ;;  %v1397_v19 = vor.u32 %v1901_v14, %v1396_v13  ;;  %v1372_v20 = vld [vmem:[#allocation6] sm:$0xf] }
  0x22   :  { %326 = vmatpush.bf16.msra.mxu1 %v1425_v58  ;;  %v1896_v21 = vld [vmem:[#allocation6 + $0xc] sm:$0xf0]  ;;  %v1894_v22 = vld [vmem:[#allocation6 + $0x4] sm:$0xf]  ;;  %v1401_v23 = vor.u32 %v1899_v15, %v1398_v16  ;;  %v1374_v24 = vld [vmem:[#allocation6 + $0x10] sm:$0xf0] }
  0x23   :  { %350 = vmatpush.bf16.msra.mxu2 %v1429_v59  ;;  %v1380_v25 = vld [vmem:[#allocation6 + $0x8] sm:$0xf]  ;;  %v1897_v26 = vld [vmem:[#allocation6 + $0x14] sm:$0xf0]  ;;  %v1895_v27 = vld [vmem:[#allocation6 + $0xc] sm:$0xf]  ;;  %v1373_v29 = vor.u32 %v1896_v21, %v1372_v20  ;;  %v1377_v30 = vor.u32 %v1894_v22, %v1374_v24 }
  0x24   :  { %374 = vmatpush.bf16.msra.mxu3 %v1433_v63  ;;  %v1382_v28 = vld [vmem:[#allocation6 + $0x18] sm:$0xf0]  ;;  %v1381_v31 = vor.u32 %v1897_v26, %v1380_v25  ;;  %v1891_v33 = vld [vmem:[%s2356_s0] sm:$0xff]  ;;  %v1892_v34 = vld [vmem:[%s2356_s0 + $0x8] sm:$0xff] }
  0x25   :  { %303 = vmatpush.bf16.msra.mxu0 %v1405_v5  ;;  %v1385_v32 = vor.u32 %v1895_v27, %v1382_v28  ;;  %v1893_v35 = vld [vmem:[%s2356_s0 + $0x10] sm:$0xff]  ;;  %v110_v36 = vld [vmem:[%s2358_s2] sm:$0xf]  ;;  %s2257_s0 = smov 0  }
  0x26   :  { %327 = vmatpush.bf16.msra.mxu1 %v1409_v6  ;;  %v2225_v37 = vperm.slane %v110_v36, 0  ;;  %v2227_v38 = vperm.slane %v110_v36, 1  ;;  %v2231_v43 = vperm.slane %v110_v36, 2  ;;  %v2233_v44 = vperm.slane %v110_v36, 3 }
  0x27   :  { %351 = vmatpush.bf16.msra.mxu2 %v1413_v7 }
  0x28   :  { %375 = vmatpush.bf16.msra.mxu3 %v1417_v11 }
  0x29   :  { %304 = vmatpush.bf16.msra.mxu0 %v1389_v17 }
  0x2a   :  { %328 = vmatpush.bf16.msra.mxu1 %v1393_v18 }
  0x2b   :  { %352 = vmatpush.bf16.msra.mxu2 %v1397_v19 }
  0x2c   :  { %376 = vmatpush.bf16.msra.mxu3 %v1401_v23 }
  0x2d   :  { %305 = vmatpush.bf16.msra.mxu0 %v1373_v29 }
  0x2e   :  { %329 = vmatpush.bf16.msra.mxu1 %v1377_v30 }
  0x2f   :  { %353 = vmatpush.bf16.msra.mxu2 %v1381_v31 }
  0x30   :  { %377 = vmatpush.bf16.msra.mxu3 %v1385_v32  ;;  %306 = vmatmul.bf16.vlgmr.msra.gmra.mxu0 %v1891_v33 }
  0x31   :  { %330 = vmatmul.bf16.vlgmr.msra.gmra.mxu1 %v1891_v33 }
  0x32   :  { %354 = vmatmul.bf16.vlgmr.msra.gmra.mxu2 %v1891_v33 }
  0x33   :  { %378 = vmatmul.bf16.vlgmr.msra.gmra.mxu3 %v1891_v33 }
  0x40   :  { %311 = vmatmul.bf16.gmra.mxu0 %v1892_v34 }
  0x41   :  { %335 = vmatmul.bf16.gmra.mxu1 %v1892_v34 }
  0x42   :  { %359 = vmatmul.bf16.gmra.mxu2 %v1892_v34 }
  0x43   :  { %383 = vmatmul.bf16.gmra.mxu3 %v1892_v34 }
  0x50   :  { %316 = vmatmul.bf16.gmra.mxu0 %v1893_v35 }
  0x51   :  { %340 = vmatmul.bf16.gmra.mxu1 %v1893_v35 }
  0x52   :  { %364 = vmatmul.bf16.gmra.mxu2 %v1893_v35 }
  0x53   :  { %388 = vmatmul.bf16.gmra.mxu3 %v1893_v35 }
  0xad   :  { %v307_v39 = vpop.f32.mrf.mxu0 }
  0xae   :  { %v308_v40 = vadd.f32 %v307_v39, %v2225_v37  ;;  %v331_v41 = vpop.f32.mrf.mxu1 }
  0xaf   :  { %v332_v42 = vadd.f32 %v331_v41, %v2227_v38 }
  0xb0   :  { %394 = vst [vmem:[#allocation2] sm:$0xff] %v308_v40 }
  0xb1   :  { %395 = vst [vmem:[#allocation2 + $0x8] sm:$0xff] %v332_v42 }
  0xb5   :  { %v355_v45 = vpop.f32.mrf.mxu2  ;;  %v309_v48 = vpop.f32.mrf.mxu0 }
  0xb6   :  { %v356_v46 = vadd.f32 %v355_v45, %v2231_v43  ;;  %v379_v47 = vpop.f32.mrf.mxu3  ;;  %v310_v50 = vadd.f32 %v309_v48, %v2225_v37  ;;  %v333_v51 = vpop.f32.mrf.mxu1 }
  0xb7   :  { %v380_v49 = vadd.f32 %v379_v47, %v2233_v44  ;;  %v334_v52 = vadd.f32 %v333_v51, %v2227_v38 }
  0xb8   :  { %396 = vst [vmem:[#allocation2 + $0x10] sm:$0xff] %v356_v46 }
  0xb9   :  { %397 = vst [vmem:[#allocation2 + $0x18] sm:$0xff] %v380_v49 }
  0xba   :  { %398 = vst [vmem:[#allocation2 + $0x20] sm:$0xff] %v310_v50 }
  0xbb   :  { %399 = vst [vmem:[#allocation2 + $0x28] sm:$0xff] %v334_v52 }
  0xbd   :  { %v357_v53 = vpop.f32.mrf.mxu2  ;;  %v312_v56 = vpop.f32.mrf.mxu0 }
  0xbe   :  { %v358_v54 = vadd.f32 %v357_v53, %v2231_v43  ;;  %v381_v55 = vpop.f32.mrf.mxu3  ;;  %v313_v58 = vadd.f32 %v312_v56, %v2225_v37  ;;  %v336_v59 = vpop.f32.mrf.mxu1 }
  0xbf   :  { %v382_v57 = vadd.f32 %v381_v55, %v2233_v44  ;;  %v337_v60 = vadd.f32 %v336_v59, %v2227_v38 }
  0xc0   :  { %400 = vst [vmem:[#allocation2 + $0x30] sm:$0xff] %v358_v54 }
  0xc1   :  { %401 = vst [vmem:[#allocation2 + $0x38] sm:$0xff] %v382_v57 }
  0xc2   :  { %402 = vst [vmem:[#allocation2 + $0x40] sm:$0xff] %v313_v58 }
  0xc3   :  { %403 = vst [vmem:[#allocation2 + $0x48] sm:$0xff] %v337_v60 }
  0xc5   :  { %v360_v61 = vpop.f32.mrf.mxu2  ;;  %v314_v0 = vpop.f32.mrf.mxu0 }
  0xc6   :  { %v361_v62 = vadd.f32 %v360_v61, %v2231_v43  ;;  %v384_v63 = vpop.f32.mrf.mxu3  ;;  %v315_v2 = vadd.f32 %v314_v0, %v2225_v37  ;;  %v338_v3 = vpop.f32.mrf.mxu1 }
  0xc7   :  { %v385_v1 = vadd.f32 %v384_v63, %v2233_v44  ;;  %v339_v4 = vadd.f32 %v338_v3, %v2227_v38 }
  0xc8   :  { %404 = vst [vmem:[#allocation2 + $0x50] sm:$0xff] %v361_v62 }
  0xc9   :  { %405 = vst [vmem:[#allocation2 + $0x58] sm:$0xff] %v385_v1 }
  0xca   :  { %406 = vst [vmem:[#allocation2 + $0x60] sm:$0xff] %v315_v2 }
  0xcb   :  { %407 = vst [vmem:[#allocation2 + $0x68] sm:$0xff] %v339_v4 }
  0xcd   :  { %v362_v5 = vpop.f32.mrf.mxu2  ;;  %v317_v8 = vpop.f32.mrf.mxu0 }
  0xce   :  { %v363_v6 = vadd.f32 %v362_v5, %v2231_v43  ;;  %v386_v7 = vpop.f32.mrf.mxu3  ;;  %v318_v10 = vadd.f32 %v317_v8, %v2225_v37  ;;  %v341_v11 = vpop.f32.mrf.mxu1 }
  0xcf   :  { %v387_v9 = vadd.f32 %v386_v7, %v2233_v44  ;;  %v342_v12 = vadd.f32 %v341_v11, %v2227_v38 }
  0xd0   :  { %408 = vst [vmem:[#allocation2 + $0x70] sm:$0xff] %v363_v6 }
  0xd1   :  { %409 = vst [vmem:[#allocation2 + $0x78] sm:$0xff] %v387_v9 }
  0xd2   :  { %410 = vst [vmem:[#allocation2 + $0x80] sm:$0xff] %v318_v10 }
  0xd3   :  { %411 = vst [vmem:[#allocation2 + $0x88] sm:$0xff] %v342_v12 }
  0xd5   :  { %v365_v13 = vpop.f32.mrf.mxu2  ;;  %v319_v16 = vpop.f32.mrf.mxu0 }
  0xd6   :  { %v366_v14 = vadd.f32 %v365_v13, %v2231_v43  ;;  %v389_v15 = vpop.f32.mrf.mxu3  ;;  %v320_v18 = vadd.f32 %v319_v16, %v2225_v37  ;;  %v343_v19 = vpop.f32.mrf.mxu1 }
  0xd7   :  { %v390_v17 = vadd.f32 %v389_v15, %v2233_v44  ;;  %v344_v20 = vadd.f32 %v343_v19, %v2227_v38 }
  0xd8   :  { %412 = vst [vmem:[#allocation2 + $0x90] sm:$0xff] %v366_v14 }
  0xd9   :  { %413 = vst [vmem:[#allocation2 + $0x98] sm:$0xff] %v390_v17 }
  0xda   :  { %414 = vst [vmem:[#allocation2 + $0xa0] sm:$0xff] %v320_v18 }
  0xdb   :  { %415 = vst [vmem:[#allocation2 + $0xa8] sm:$0xff] %v344_v20 }
  0xdd   :  { %v367_v21 = vpop.f32.mrf.mxu2 }
  0xde   :  { %v368_v22 = vadd.f32 %v367_v21, %v2231_v43  ;;  %v391_v23 = vpop.f32.mrf.mxu3 }
  0xdf   :  { %v392_v24 = vadd.f32 %v391_v23, %v2233_v44 }
  0xe0   :  { %416 = vst [vmem:[#allocation2 + $0xb0] sm:$0xff] %v368_v22 }
  0xe1   :  { %417 = vst [vmem:[#allocation2 + $0xb8] sm:$0xff] %v392_v24 }
  0xe2 LB: > { %v1615_v25 = vld [vmem:[#allocation8 + $0xe0] sm:$0xf]  ;;  %v1957_v26 = vld [vmem:[#allocation8 + $0xec] sm:$0xf0]  ;;  %v1955_v27 = vld [vmem:[#allocation8 + $0xe4] sm:$0xf]  ;;  %s2156_s0 = sphi %s2257_s0, %s427_s0  }
  0xe3   : > { %v1616_v28 = vor.u32 %v1957_v26, %v1615_v25  ;;  %v1617_v29 = vld [vmem:[#allocation8 + $0xf0] sm:$0xf0]  ;;  %v1956_v30 = vld [vmem:[#allocation8 + $0xec] sm:$0xf]  ;;  %v1625_v31 = vld [vmem:[#allocation8 + $0xf8] sm:$0xf0] }
  0xe4   : > { %v1620_v32 = vor.u32 %v1955_v27, %v1617_v29  ;;  %v1628_v33 = vor.u32 %v1956_v30, %v1625_v31  ;;  %v1599_v34 = vld [vmem:[#allocation8 + $0xc0] sm:$0xf]  ;;  %v1953_v35 = vld [vmem:[#allocation8 + $0xcc] sm:$0xf0]  ;;  %v1951_v36 = vld [vmem:[#allocation8 + $0xc4] sm:$0xf] }
  0xe5   : > { %632 = vmatpush.bf16.msra.mxu0 %v1616_v28  ;;  %v1600_v37 = vor.u32 %v1953_v35, %v1599_v34  ;;  %v1601_v38 = vld [vmem:[#allocation8 + $0xd0] sm:$0xf0]  ;;  %v1952_v39 = vld [vmem:[#allocation8 + $0xcc] sm:$0xf]  ;;  %v1609_v40 = vld [vmem:[#allocation8 + $0xd8] sm:$0xf0] }
  0xe6   : > { %645 = vmatpush.bf16.msra.mxu1 %v1620_v32  ;;  %671 = vmatpush.bf16.msra.mxu3 %v1628_v33  ;;  %v1604_v41 = vor.u32 %v1951_v36, %v1601_v38  ;;  %v1612_v42 = vor.u32 %v1952_v39, %v1609_v40  ;;  %v1623_v43 = vld [vmem:[#allocation8 + $0xe8] sm:$0xf]  ;;  %v1958_v44 = vld [vmem:[#allocation8 + $0xf4] sm:$0xf0]  ;;  %v1583_v45 = vld [vmem:[#allocation8 + $0xa0] sm:$0xf] }
  0xe7   : > { %v1624_v46 = vor.u32 %v1958_v44, %v1623_v43  ;;  %v1949_v47 = vld [vmem:[#allocation8 + $0xac] sm:$0xf0]  ;;  %v1947_v48 = vld [vmem:[#allocation8 + $0xa4] sm:$0xf]  ;;  %v1585_v49 = vld [vmem:[#allocation8 + $0xb0] sm:$0xf0] }
  0xe8   : > { %v1948_v50 = vld [vmem:[#allocation8 + $0xac] sm:$0xf]  ;;  %v1593_v51 = vld [vmem:[#allocation8 + $0xb8] sm:$0xf0]  ;;  %v1607_v52 = vld [vmem:[#allocation8 + $0xc8] sm:$0xf]  ;;  %v1584_v53 = vor.u32 %v1949_v47, %v1583_v45  ;;  %v1588_v57 = vor.u32 %v1947_v48, %v1585_v49 }
  0xe9   : > { %633 = vmatpush.bf16.msra.mxu0 %v1600_v37  ;;  %658 = vmatpush.bf16.msra.mxu2 %v1624_v46  ;;  %v1954_v54 = vld [vmem:[#allocation8 + $0xd4] sm:$0xf0]  ;;  %v1567_v55 = vld [vmem:[#allocation8 + $0x80] sm:$0xf]  ;;  %v1945_v56 = vld [vmem:[#allocation8 + $0x8c] sm:$0xf0]  ;;  %v1596_v58 = vor.u32 %v1948_v50, %v1593_v51 }
  0xea   : > { %646 = vmatpush.bf16.msra.mxu1 %v1604_v41  ;;  %672 = vmatpush.bf16.msra.mxu3 %v1612_v42  ;;  %v1608_v59 = vor.u32 %v1954_v54, %v1607_v52  ;;  %v1943_v60 = vld [vmem:[#allocation8 + $0x84] sm:$0xf]  ;;  %v1569_v61 = vld [vmem:[#allocation8 + $0x90] sm:$0xf0]  ;;  %v1944_v62 = vld [vmem:[#allocation8 + $0x8c] sm:$0xf]  ;;  %v1568_v2 = vor.u32 %v1945_v56, %v1567_v55 }
  0xeb   : > { %v1577_v63 = vld [vmem:[#allocation8 + $0x98] sm:$0xf0]  ;;  %v1591_v0 = vld [vmem:[#allocation8 + $0xa8] sm:$0xf]  ;;  %v1950_v1 = vld [vmem:[#allocation8 + $0xb4] sm:$0xf0]  ;;  %v1572_v6 = vor.u32 %v1943_v60, %v1569_v61 }
  0xec   : > { %v1592_v3 = vor.u32 %v1950_v1, %v1591_v0  ;;  %v1551_v4 = vld [vmem:[#allocation8 + $0x60] sm:$0xf]  ;;  %v1941_v5 = vld [vmem:[#allocation8 + $0x6c] sm:$0xf0]  ;;  %v1580_v7 = vor.u32 %v1944_v62, %v1577_v63  ;;  %v1939_v8 = vld [vmem:[#allocation8 + $0x64] sm:$0xf] }
  0xed   : > { %634 = vmatpush.bf16.msra.mxu0 %v1584_v53  ;;  %659 = vmatpush.bf16.msra.mxu2 %v1608_v59  ;;  %v1575_v9 = vld [vmem:[#allocation8 + $0x88] sm:$0xf]  ;;  %v1946_v10 = vld [vmem:[#allocation8 + $0x94] sm:$0xf0]  ;;  %v1553_v11 = vld [vmem:[#allocation8 + $0x70] sm:$0xf0]  ;;  %v1552_v14 = vor.u32 %v1941_v5, %v1551_v4 }
  0xee   : > { %647 = vmatpush.bf16.msra.mxu1 %v1588_v57  ;;  %673 = vmatpush.bf16.msra.mxu3 %v1596_v58  ;;  %v1940_v12 = vld [vmem:[#allocation8 + $0x6c] sm:$0xf]  ;;  %v1561_v13 = vld [vmem:[#allocation8 + $0x78] sm:$0xf0]  ;;  %v1576_v15 = vor.u32 %v1946_v10, %v1575_v9  ;;  %v1535_v16 = vld [vmem:[#allocation8 + $0x40] sm:$0xf]  ;;  %v1556_v18 = vor.u32 %v1939_v8, %v1553_v11 }
  0xef   : > { %v1937_v17 = vld [vmem:[#allocation8 + $0x4c] sm:$0xf0]  ;;  %v1564_v19 = vor.u32 %v1940_v12, %v1561_v13  ;;  %v1935_v20 = vld [vmem:[#allocation8 + $0x44] sm:$0xf]  ;;  %v1559_v21 = vld [vmem:[#allocation8 + $0x68] sm:$0xf] }
  0xf0   : > { %v1942_v22 = vld [vmem:[#allocation8 + $0x74] sm:$0xf0]  ;;  %v1537_v23 = vld [vmem:[#allocation8 + $0x50] sm:$0xf0]  ;;  %v1936_v24 = vld [vmem:[#allocation8 + $0x4c] sm:$0xf]  ;;  %v1536_v26 = vor.u32 %v1937_v17, %v1535_v16 }
  0xf1   : > { %635 = vmatpush.bf16.msra.mxu0 %v1568_v2  ;;  %660 = vmatpush.bf16.msra.mxu2 %v1592_v3  ;;  %v1545_v25 = vld [vmem:[#allocation8 + $0x58] sm:$0xf0]  ;;  %v1560_v27 = vor.u32 %v1942_v22, %v1559_v21  ;;  %v1519_v28 = vld [vmem:[#allocation8 + $0x20] sm:$0xf]  ;;  %v1933_v29 = vld [vmem:[#allocation8 + $0x2c] sm:$0xf0]  ;;  %v1540_v30 = vor.u32 %v1935_v20, %v1537_v23 }
  0xf2   : > { %648 = vmatpush.bf16.msra.mxu1 %v1572_v6  ;;  %674 = vmatpush.bf16.msra.mxu3 %v1580_v7  ;;  %v1548_v31 = vor.u32 %v1936_v24, %v1545_v25  ;;  %v1931_v32 = vld [vmem:[#allocation8 + $0x24] sm:$0xf]  ;;  %v1543_v33 = vld [vmem:[#allocation8 + $0x48] sm:$0xf]  ;;  %v1938_v34 = vld [vmem:[#allocation8 + $0x54] sm:$0xf0]  ;;  %v1520_v38 = vor.u32 %v1933_v29, %v1519_v28 }
  0xf3   : > { %v1521_v35 = vld [vmem:[#allocation8 + $0x30] sm:$0xf0]  ;;  %v1932_v36 = vld [vmem:[#allocation8 + $0x2c] sm:$0xf]  ;;  %v1529_v37 = vld [vmem:[#allocation8 + $0x38] sm:$0xf0]  ;;  %v1544_v39 = vor.u32 %v1938_v34, %v1543_v33 }
  0xf4   : > { %v1503_v40 = vld [vmem:[#allocation8] sm:$0xf]  ;;  %v1929_v41 = vld [vmem:[#allocation8 + $0xc] sm:$0xf0]  ;;  %v1524_v42 = vor.u32 %v1931_v32, %v1521_v35  ;;  %v1532_v43 = vor.u32 %v1932_v36, %v1529_v37  ;;  %v1927_v44 = vld [vmem:[#allocation8 + $0x4] sm:$0xf] }
  0xf5   : > { %636 = vmatpush.bf16.msra.mxu0 %v1552_v14  ;;  %661 = vmatpush.bf16.msra.mxu2 %v1576_v15  ;;  %v1527_v45 = vld [vmem:[#allocation8 + $0x28] sm:$0xf]  ;;  %v1934_v46 = vld [vmem:[#allocation8 + $0x34] sm:$0xf0]  ;;  %v1505_v47 = vld [vmem:[#allocation8 + $0x10] sm:$0xf0]  ;;  %v1504_v50 = vor.u32 %v1929_v41, %v1503_v40 }
  0xf6   : > { %649 = vmatpush.bf16.msra.mxu1 %v1556_v18  ;;  %675 = vmatpush.bf16.msra.mxu3 %v1564_v19  ;;  %v1928_v48 = vld [vmem:[#allocation8 + $0xc] sm:$0xf]  ;;  %v1513_v49 = vld [vmem:[#allocation8 + $0x18] sm:$0xf0]  ;;  %v438_v51 = vld [vmem:[#allocation3] sm:$0xff]  ;;  %v1528_v52 = vor.u32 %v1934_v46, %v1527_v45  ;;  %v1508_v53 = vor.u32 %v1927_v44, %v1505_v47  ;;  %s1498_s2 = sshll.u32 %s2156_s0, 3 }
  0xf7   : > { %v1516_v54 = vor.u32 %v1928_v48, %v1513_v49  ;;  %v1511_v55 = vld [vmem:[#allocation8 + $0x8] sm:$0xf]  ;;  %v1930_v56 = vld [vmem:[#allocation8 + $0x14] sm:$0xf0]  ;;  %v439_v57 = vpack.c.bf16 %v438_v51, %v438_v51  ;;  %v1746_v59 = vld [vmem:[#allocation10 + $0xe0] sm:$0xf] }
  0xf8   : > { %v1512_v58 = vor.u32 %v1930_v56, %v1511_v55  ;;  %v1989_v60 = vld [vmem:[#allocation10 + $0xec] sm:$0xf0]  ;;  %v1874_v61 = vld [vmem:[#allocation10 + $0x1e0] sm:$0xf]  ;;  %v1987_v0 = vld [vmem:[#allocation10 + $0xe4] sm:$0xf] }
  0xf9   : > { %637 = vmatpush.bf16.msra.mxu0 %v1536_v26  ;;  %662 = vmatpush.bf16.msra.mxu2 %v1560_v27  ;;  %v1747_v62 = vor.u32 %v1989_v60, %v1746_v59  ;;  %v2021_v63 = vld [vmem:[#allocation10 + $0x1ec] sm:$0xf0]  ;;  %v1748_v1 = vld [vmem:[#allocation10 + $0xf0] sm:$0xf0]  ;;  %v2019_v4 = vld [vmem:[#allocation10 + $0x1e4] sm:$0xf] }
  0xfa   : > { %650 = vmatpush.bf16.msra.mxu1 %v1540_v30  ;;  %676 = vmatpush.bf16.msra.mxu3 %v1548_v31  ;;  %v1875_v2 = vor.u32 %v2021_v63, %v1874_v61  ;;  %v1751_v3 = vor.u32 %v1987_v0, %v1748_v1  ;;  %v1876_v5 = vld [vmem:[#allocation10 + $0x1f0] sm:$0xf0]  ;;  %v1730_v7 = vld [vmem:[#allocation10 + $0xc0] sm:$0xf]  ;;  %v1985_v8 = vld [vmem:[#allocation10 + $0xcc] sm:$0xf0] }
  0xfb   : > { %v1879_v6 = vor.u32 %v2019_v4, %v1876_v5  ;;  %v1858_v9 = vld [vmem:[#allocation10 + $0x1c0] sm:$0xf]  ;;  %v1731_v10 = vor.u32 %v1985_v8, %v1730_v7  ;;  %v2017_v11 = vld [vmem:[#allocation10 + $0x1cc] sm:$0xf0]  ;;  %v1983_v12 = vld [vmem:[#allocation10 + $0xc4] sm:$0xf] }
  0xfc   : > { %v1732_v13 = vld [vmem:[#allocation10 + $0xd0] sm:$0xf0]  ;;  %v1859_v14 = vor.u32 %v2017_v11, %v1858_v9  ;;  %v2015_v16 = vld [vmem:[#allocation10 + $0x1c4] sm:$0xf]  ;;  %v1714_v19 = vld [vmem:[#allocation10 + $0xa0] sm:$0xf] }
  0xfd   : > { %638 = vmatpush.bf16.msra.mxu0 %v1520_v38  ;;  %663 = vmatpush.bf16.msra.mxu2 %v1544_v39  ;;  %v1735_v15 = vor.u32 %v1983_v12, %v1732_v13  ;;  %v1860_v17 = vld [vmem:[#allocation10 + $0x1d0] sm:$0xf0]  ;;  %v1981_v20 = vld [vmem:[#allocation10 + $0xac] sm:$0xf0]  ;;  %v1842_v21 = vld [vmem:[#allocation10 + $0x1a0] sm:$0xf] }
  0xfe   : > { %651 = vmatpush.bf16.msra.mxu1 %v1524_v42  ;;  %677 = vmatpush.bf16.msra.mxu3 %v1532_v43  ;;  %v1863_v18 = vor.u32 %v2015_v16, %v1860_v17  ;;  %v1715_v22 = vor.u32 %v1981_v20, %v1714_v19  ;;  %v2013_v23 = vld [vmem:[#allocation10 + $0x1ac] sm:$0xf0]  ;;  %v1979_v24 = vld [vmem:[#allocation10 + $0xa4] sm:$0xf]  ;;  %v1716_v25 = vld [vmem:[#allocation10 + $0xb0] sm:$0xf0] }
  0xff   : > { %v1843_v26 = vor.u32 %v2013_v23, %v1842_v21  ;;  %v1719_v27 = vor.u32 %v1979_v24, %v1716_v25  ;;  %v2011_v28 = vld [vmem:[#allocation10 + $0x1a4] sm:$0xf]  ;;  %v1844_v29 = vld [vmem:[#allocation10 + $0x1b0] sm:$0xf0]  ;;  %s2263_s23 = sshra.s32 %s1498_s2, 3  ;;  %s427_s0 = sadd.s32 1, %s2156_s0  }
 0x100   : > { %v1847_v30 = vor.u32 %v2011_v28, %v1844_v29  ;;  %v1698_v31 = vld [vmem:[#allocation10 + $0x80] sm:$0xf]  ;;  %v1977_v32 = vld [vmem:[#allocation10 + $0x8c] sm:$0xf0]  ;;  %v1975_v36 = vld [vmem:[#allocation10 + $0x84] sm:$0xf] }
 0x101   : > { %639 = vmatpush.bf16.msra.mxu0 %v1504_v50  ;;  %664 = vmatpush.bf16.msra.mxu2 %v1528_v52  ;;  %v1826_v33 = vld [vmem:[#allocation10 + $0x180] sm:$0xf]  ;;  %v1699_v34 = vor.u32 %v1977_v32, %v1698_v31  ;;  %v2009_v35 = vld [vmem:[#allocation10 + $0x18c] sm:$0xf0]  ;;  %v1700_v37 = vld [vmem:[#allocation10 + $0x90] sm:$0xf0] }
 0x102   : > { %652 = vmatpush.bf16.msra.mxu1 %v1508_v53  ;;  %678 = vmatpush.bf16.msra.mxu3 %v1516_v54  ;;  %v1827_v38 = vor.u32 %v2009_v35, %v1826_v33  ;;  %v1703_v39 = vor.u32 %v1975_v36, %v1700_v37  ;;  %v2007_v40 = vld [vmem:[#allocation10 + $0x184] sm:$0xf]  ;;  %v1828_v41 = vld [vmem:[#allocation10 + $0x190] sm:$0xf0]  ;;  %s1926_s24 = sshll.u32 %s2263_s23, 5  ;;  %p424_p0 = scmp.ge.s32.totalorder %s427_s0, 6  }
 0x103   : > { %v1831_v42 = vor.u32 %v2007_v40, %v1828_v41  ;;  %v1682_v43 = vld [vmem:[#allocation10 + $0x60] sm:$0xf]  ;;  %v1973_v44 = vld [vmem:[#allocation10 + $0x6c] sm:$0xf0]  ;;  %v1971_v48 = vld [vmem:[#allocation10 + $0x64] sm:$0xf] }
 0x104   : > { %640 = vmatmul.bf16.vlgmr.msra.gmra.mxu0 %v439_v57  ;;  %v1810_v45 = vld [vmem:[#allocation10 + $0x160] sm:$0xf]  ;;  %v1683_v46 = vor.u32 %v1973_v44, %v1682_v43  ;;  %v2005_v47 = vld [vmem:[#allocation10 + $0x16c] sm:$0xf0]  ;;  %v1684_v50 = vld [vmem:[#allocation10 + $0x70] sm:$0xf0] }
 0x105   : > { %653 = vmatmul.bf16.vlgmr.msra.gmra.mxu1 %v439_v57  ;;  %679 = vmatmul.bf16.vlgmr.msra.gmra.mxu3 %v439_v57  ;;  %v1811_v49 = vor.u32 %v2005_v47, %v1810_v45  ;;  %v2003_v51 = vld [vmem:[#allocation10 + $0x164] sm:$0xf]  ;;  %v1812_v52 = vld [vmem:[#allocation10 + $0x170] sm:$0xf0]  ;;  %v1687_v53 = vor.u32 %v1971_v48, %v1684_v50  ;;  %v1666_v55 = vld [vmem:[#allocation10 + $0x40] sm:$0xf] }
 0x106   : > { %665 = vmatpush.bf16.msra.mxu2 %v1512_v58  ;;  %1162 = vmatpush.bf16.msrb.mxu0 %v1747_v62  ;;  %v1815_v54 = vor.u32 %v2003_v51, %v1812_v52  ;;  %v1969_v56 = vld [vmem:[#allocation10 + $0x4c] sm:$0xf0]  ;;  %v1967_v60 = vld [vmem:[#allocation10 + $0x44] sm:$0xf]  ;;  %v1668_v61 = vld [vmem:[#allocation10 + $0x50] sm:$0xf0] }
 0x107   : > { %1175 = vmatpush.bf16.msrb.mxu1 %v1875_v2  ;;  %1201 = vmatpush.bf16.msrb.mxu3 %v1879_v6  ;;  %v1667_v58 = vor.u32 %v1969_v56, %v1666_v55  ;;  %v2001_v59 = vld [vmem:[#allocation10 + $0x14c] sm:$0xf0]  ;;  %v1671_v63 = vor.u32 %v1967_v60, %v1668_v61  ;;  %v1999_v0 = vld [vmem:[#allocation10 + $0x144] sm:$0xf]  ;;  %v1796_v1 = vld [vmem:[#allocation10 + $0x150] sm:$0xf0] }
 0x108   : > { %s2268_s25 = scalar_lea.vmem [#allocation2], %s1926_s24  ;;  %v1650_v4 = vld [vmem:[#allocation10 + $0x20] sm:$0xf]  ;;  %v1965_v5 = vld [vmem:[#allocation10 + $0x2c] sm:$0xf0] }
 0x109   : > { %666 = vmatmul.bf16.vlgmr.msra.gmra.mxu2 %v439_v57  ;;  %v1794_v57 = vld [vmem:[#allocation10 + $0x140] sm:$0xf]  ;;  %v1651_v7 = vor.u32 %v1965_v5, %v1650_v4  ;;  %v1997_v8 = vld [vmem:[#allocation10 + $0x12c] sm:$0xf0]  ;;  %v1963_v9 = vld [vmem:[#allocation10 + $0x24] sm:$0xf] }
 0x10a   : > { %1188 = vmatpush.bf16.msrb.mxu2 %v1751_v3  ;;  %1163 = vmatpush.bf16.msrb.mxu0 %v1731_v10  ;;  %v1795_v62 = vor.u32 %v2001_v59, %v1794_v57  ;;  %v434_v2 = vld [vmem:[%s2268_s25] sm:$0xff]  ;;  %v1799_v3 = vor.u32 %v1999_v0, %v1796_v1  ;;  %v1652_v10 = vld [vmem:[#allocation10 + $0x30] sm:$0xf0]  ;;  %v435_v11 = vld [vmem:[%s2268_s25 + $0x8] sm:$0xff] }
 0x10b   : > { %1176 = vmatpush.bf16.msrb.mxu1 %v1859_v14  ;;  %1202 = vmatpush.bf16.msrb.mxu3 %v1863_v18  ;;  %v1778_v6 = vld [vmem:[#allocation10 + $0x120] sm:$0xf]  ;;  %v1655_v13 = vor.u32 %v1963_v9, %v1652_v10  ;;  %v1995_v14 = vld [vmem:[#allocation10 + $0x124] sm:$0xf]  ;;  %v1961_v21 = vld [vmem:[#allocation10 + $0xc] sm:$0xf0] }
 0x10c   : > { %v1779_v12 = vor.u32 %v1997_v8, %v1778_v6  ;;  %v1634_v20 = vld [vmem:[#allocation10] sm:$0xf]  ;;  %v1993_v25 = vld [vmem:[#allocation10 + $0x10c] sm:$0xf0]  ;;  %v437_v29 = vld [vmem:[%s2268_s25 + $0x18] sm:$0xff] }
 0x10d   : > { %v1635_v24 = vor.u32 %v1961_v21, %v1634_v20  ;;  %v1991_v32 = vld [vmem:[#allocation10 + $0x104] sm:$0xf]  ;;  %v1764_v33 = vld [vmem:[#allocation10 + $0x110] sm:$0xf0]  ;;  %v1754_v36 = vld [vmem:[#allocation10 + $0xe8] sm:$0xf] }
 0x10e   : > { %1189 = vmatpush.bf16.msrb.mxu2 %v1735_v15  ;;  %1164 = vmatpush.bf16.msrb.mxu0 %v1715_v22  ;;  %v1780_v15 = vld [vmem:[#allocation10 + $0x130] sm:$0xf0]  ;;  %v1762_v22 = vld [vmem:[#allocation10 + $0x100] sm:$0xf]  ;;  %v1767_v35 = vor.u32 %v1991_v32, %v1764_v33  ;;  %v1990_v37 = vld [vmem:[#allocation10 + $0xf4] sm:$0xf0] }
 0x10f   : > { %1177 = vmatpush.bf16.msrb.mxu1 %v1843_v26  ;;  %1203 = vmatpush.bf16.msrb.mxu3 %v1847_v30  ;;  %v1783_v17 = vor.u32 %v1995_v14, %v1780_v15  ;;  %v1959_v26 = vld [vmem:[#allocation10 + $0x4] sm:$0xf]  ;;  %v1763_v30 = vor.u32 %v1993_v25, %v1762_v22  ;;  %v2022_v40 = vld [vmem:[#allocation10 + $0x1f4] sm:$0xf0]  ;;  %v1988_v41 = vld [vmem:[#allocation10 + $0xec] sm:$0xf] }
 0x110   : > { %v1756_v43 = vld [vmem:[#allocation10 + $0xf8] sm:$0xf0]  ;;  %v2020_v44 = vld [vmem:[#allocation10 + $0x1ec] sm:$0xf]  ;;  %v1986_v50 = vld [vmem:[#allocation10 + $0xd4] sm:$0xf0] }
 0x111   : > { %v1884_v45 = vld [vmem:[#allocation10 + $0x1f8] sm:$0xf0]  ;;  %v1759_v47 = vor.u32 %v1988_v41, %v1756_v43  ;;  %v1866_v51 = vld [vmem:[#allocation10 + $0x1c8] sm:$0xf]  ;;  %v2018_v55 = vld [vmem:[#allocation10 + $0x1d4] sm:$0xf0] }
 0x112   : > { %1190 = vmatpush.bf16.msrb.mxu2 %v1719_v27  ;;  %1165 = vmatpush.bf16.msrb.mxu0 %v1699_v34  ;;  %v1636_v27 = vld [vmem:[#allocation10 + $0x10] sm:$0xf0]  ;;  %v1887_v48 = vor.u32 %v2020_v44, %v1884_v45  ;;  %v1984_v56 = vld [vmem:[#allocation10 + $0xcc] sm:$0xf]  ;;  %v1740_v57 = vld [vmem:[#allocation10 + $0xd8] sm:$0xf0]  ;;  %v1867_v59 = vor.u32 %v2018_v55, %v1866_v51 }
 0x113   : > { %1178 = vmatpush.bf16.msrb.mxu1 %v1827_v38  ;;  %1204 = vmatpush.bf16.msrb.mxu3 %v1831_v42  ;;  %v1639_v31 = vor.u32 %v1959_v26, %v1636_v27  ;;  %v1755_v38 = vor.u32 %v1990_v37, %v1754_v36  ;;  %v1743_v60 = vor.u32 %v1984_v56, %v1740_v57  ;;  %v2016_v61 = vld [vmem:[#allocation10 + $0x1cc] sm:$0xf]  ;;  %v1724_v9 = vld [vmem:[#allocation10 + $0xb8] sm:$0xf0]  ;;  %v1834_v20 = vld [vmem:[#allocation10 + $0x188] sm:$0xf] }
 0x114   : > { %v1980_v8 = vld [vmem:[#allocation10 + $0xac] sm:$0xf]  ;;  %v1852_v14 = vld [vmem:[#allocation10 + $0x1b8] sm:$0xf0]  ;;  %v436_v21 = vld [vmem:[%s2268_s25 + $0x10] sm:$0xff] }
 0x115   : > { %v1976_v25 = vld [vmem:[#allocation10 + $0x8c] sm:$0xf]  ;;  %v1708_v26 = vld [vmem:[#allocation10 + $0x98] sm:$0xf0]  ;;  %v1974_v36 = vld [vmem:[#allocation10 + $0x74] sm:$0xf0] }
 0x116   : > { %1191 = vmatpush.bf16.msrb.mxu2 %v1703_v39  ;;  %1166 = vmatpush.bf16.msrb.mxu0 %v1683_v46  ;;  %v1882_v39 = vld [vmem:[#allocation10 + $0x1e8] sm:$0xf]  ;;  %v1972_v43 = vld [vmem:[#allocation10 + $0x6c] sm:$0xf]  ;;  %v2002_v57 = vld [vmem:[#allocation10 + $0x154] sm:$0xf0] }
 0x117   : > { %1179 = vmatpush.bf16.msrb.mxu1 %v1811_v49  ;;  %1205 = vmatpush.bf16.msrb.mxu3 %v1815_v54  ;;  %v1883_v42 = vor.u32 %v2022_v40, %v1882_v39  ;;  %v1738_v49 = vld [vmem:[#allocation10 + $0xc8] sm:$0xf] }
 0x118   : > { %v1739_v54 = vor.u32 %v1986_v50, %v1738_v49  ;;  %v1818_v37 = vld [vmem:[#allocation10 + $0x168] sm:$0xf] }
 0x119   : > { %v1802_v56 = vld [vmem:[#allocation10 + $0x148] sm:$0xf] }
 0x11a   : > { %1192 = vmatpush.bf16.msrb.mxu2 %v1687_v53  ;;  %1167 = vmatpush.bf16.msrb.mxu0 %v1667_v58 }
 0x11b   : > { %1180 = vmatpush.bf16.msrb.mxu1 %v1795_v62  ;;  %1206 = vmatpush.bf16.msrb.mxu3 %v1799_v3  ;;  %v1868_v62 = vld [vmem:[#allocation10 + $0x1d8] sm:$0xf0]  ;;  %v1850_v3 = vld [vmem:[#allocation10 + $0x1a8] sm:$0xf] }
 0x11c   : > { %v1871_v1 = vor.u32 %v2016_v61, %v1868_v62  ;;  %v1968_v62 = vld [vmem:[#allocation10 + $0x4c] sm:$0xf] }
 0x11e   : > { %1193 = vmatpush.bf16.msrb.mxu2 %v1671_v63  ;;  %1168 = vmatpush.bf16.msrb.mxu0 %v1651_v7  ;;  %v1722_v63 = vld [vmem:[#allocation10 + $0xa8] sm:$0xf]  ;;  %v2014_v7 = vld [vmem:[#allocation10 + $0x1b4] sm:$0xf0] }
 0x11f   : > { %1181 = vmatpush.bf16.msrb.mxu1 %v1779_v12  ;;  %1207 = vmatpush.bf16.msrb.mxu3 %v1783_v17  ;;  %v1851_v12 = vor.u32 %v2014_v7, %v1850_v3  ;;  %v1803_v3 = vor.u32 %v2002_v57, %v1802_v56 }
 0x122   : > { %1194 = vmatpush.bf16.msrb.mxu2 %v1655_v13  ;;  %1169 = vmatpush.bf16.msrb.mxu0 %v1635_v24  ;;  %v2012_v13 = vld [vmem:[#allocation10 + $0x1ac] sm:$0xf] }
 0x123   : > { %1182 = vmatpush.bf16.msrb.mxu1 %v1763_v30  ;;  %1208 = vmatpush.bf16.msrb.mxu3 %v1767_v35  ;;  %v1855_v17 = vor.u32 %v2012_v13, %v1852_v14  ;;  %v2008_v30 = vld [vmem:[#allocation10 + $0x18c] sm:$0xf]  ;;  %v1690_v35 = vld [vmem:[#allocation10 + $0x68] sm:$0xf]  ;;  %v1998_v14 = vld [vmem:[#allocation10 + $0x134] sm:$0xf0] }
 0x124   : > { %v1691_v41 = vor.u32 %v1974_v36, %v1690_v35  ;;  %v1994_v35 = vld [vmem:[#allocation10 + $0x114] sm:$0xf0]  ;;  %v1960_v36 = vld [vmem:[#allocation10 + $0xc] sm:$0xf] }
 0x126   : > { %1195 = vmatpush.bf16.msrb.mxu2 %v1639_v31  ;;  %1214 = vmatpush.bf16.msra.mxu0 %v1755_v38  ;;  %v1836_v31 = vld [vmem:[#allocation10 + $0x198] sm:$0xf0] }
 0x127   : > { %1227 = vmatpush.bf16.msra.mxu1 %v1883_v42  ;;  %1253 = vmatpush.bf16.msra.mxu3 %v1887_v48  ;;  %v2006_v42 = vld [vmem:[#allocation10 + $0x174] sm:$0xf0]  ;;  %v1820_v48 = vld [vmem:[#allocation10 + $0x178] sm:$0xf0] }
 0x128   : > { %v1819_v45 = vor.u32 %v2006_v42, %v1818_v37  ;;  %v1644_v37 = vld [vmem:[#allocation10 + $0x18] sm:$0xf0]  ;;  %v1992_v42 = vld [vmem:[#allocation10 + $0x10c] sm:$0xf] }
 0x12a   : > { %1240 = vmatpush.bf16.msra.mxu2 %v1759_v47  ;;  %1215 = vmatpush.bf16.msra.mxu0 %v1739_v54  ;;  %v2004_v47 = vld [vmem:[#allocation10 + $0x16c] sm:$0xf] }
 0x12b   : > { %1228 = vmatpush.bf16.msra.mxu1 %v1867_v59  ;;  %1254 = vmatpush.bf16.msra.mxu3 %v1871_v1  ;;  %v1823_v61 = vor.u32 %v2004_v47, %v1820_v48 }
 0x12e   : > { %1241 = vmatpush.bf16.msra.mxu2 %v1743_v60 }
 0x12f   : > { %1229 = vmatpush.bf16.msra.mxu1 %v1851_v12  ;;  %1255 = vmatpush.bf16.msra.mxu3 %v1855_v17  ;;  %v1786_v12 = vld [vmem:[#allocation10 + $0x128] sm:$0xf] }
 0x181   : > { %v641_v16 = vpop.f32.mrf.mxu0 }
 0x182   : > { %v684_v18 = vadd.f32 %v641_v16, %v434_v2  ;;  %v654_v19 = vpop.f32.mrf.mxu1  ;;  %v1982_v2 = vld [vmem:[#allocation10 + $0xb4] sm:$0xf0]  ;;  %v1727_v16 = vor.u32 %v1980_v8, %v1724_v9  ;;  %v1658_v9 = vld [vmem:[#allocation10 + $0x28] sm:$0xf] }
 0x183   : > { %v685_v23 = vadd.f32 %v654_v19, %v435_v11  ;;  %v1723_v6 = vor.u32 %v1982_v2, %v1722_v63  ;;  %v1978_v19 = vld [vmem:[#allocation10 + $0x94] sm:$0xf0]  ;;  %v1676_v63 = vld [vmem:[#allocation10 + $0x58] sm:$0xf0] }
 0x184   : > { %v1629_v28 = vmul.f32 -1.442695, %v684_v18  ;;  %v1706_v18 = vld [vmem:[#allocation10 + $0x88] sm:$0xf]  ;;  %1242 = vmatpush.bf16.msra.mxu2 %v1727_v16  ;;  %v1679_v7 = vor.u32 %v1968_v62, %v1676_v63  ;;  %v1660_v16 = vld [vmem:[#allocation10 + $0x38] sm:$0xf0] }
 0x185   : > { %v1630_v34 = vmul.f32 -1.442695, %v685_v23  ;;  %1216 = vmatpush.bf16.msra.mxu0 %v1723_v6  ;;  %v2010_v23 = vld [vmem:[#allocation10 + $0x194] sm:$0xf0]  ;;  %v1707_v24 = vor.u32 %v1978_v19, %v1706_v18 }
 0x186   : > { %2042 = vpow2.f32 %v1629_v28  ;;  %v1835_v28 = vor.u32 %v2010_v23, %v1834_v20  ;;  %v688_v19 = vld [vmem:[#allocation4 + $0x8] sm:$0xff] }
 0x187   : > { %2044 = vpow2.f32 %v1630_v34  ;;  %v1839_v34 = vor.u32 %v2008_v30, %v1836_v31  ;;  %v1962_v30 = vld [vmem:[#allocation10 + $0x14] sm:$0xf0]  ;;  %v1770_v31 = vld [vmem:[#allocation10 + $0x108] sm:$0xf] }
 0x188   : > { %v680_v46 = vpop.f32.mrf.mxu3  ;;  %1230 = vmatpush.bf16.msra.mxu1 %v1835_v28  ;;  %v1787_v28 = vor.u32 %v1998_v14, %v1786_v12 }
 0x189   : > { %v687_v52 = vadd.f32 %v680_v46, %v437_v29  ;;  %v643_v53 = vpop.f32.mrf.mxu0  ;;  %v1711_v29 = vor.u32 %v1976_v25, %v1708_v26  ;;  %1217 = vmatpush.bf16.msra.mxu0 %v1707_v24  ;;  %v1692_v46 = vld [vmem:[#allocation10 + $0x78] sm:$0xf0]  ;;  %1256 = vmatpush.bf16.msra.mxu3 %v1839_v34  ;;  %v1996_v24 = vld [vmem:[#allocation10 + $0x12c] sm:$0xf] }
 0x18a   : > { %v656_v58 = vpop.f32.mrf.mxu1  ;;  %v1970_v53 = vld [vmem:[#allocation10 + $0x54] sm:$0xf0]  ;;  %v1695_v60 = vor.u32 %v1972_v43, %v1692_v46  ;;  %v1772_v43 = vld [vmem:[#allocation10 + $0x118] sm:$0xf0] }
 0x18b   : > { %v1631_v0 = vmul.f32 -1.442695, %v687_v52  ;;  %1243 = vmatpush.bf16.msra.mxu2 %v1711_v29  ;;  %v1674_v52 = vld [vmem:[#allocation10 + $0x48] sm:$0xf] }
 0x18c   : > { %v2043_v4 = vpop.eup %2042  ;;  %v667_v5 = vpop.f32.mrf.mxu2  ;;  %1231 = vmatpush.bf16.msra.mxu1 %v1819_v45  ;;  %v1675_v2 = vor.u32 %v1970_v53, %v1674_v52  ;;  %v1642_v29 = vld [vmem:[#allocation10 + $0x8] sm:$0xf]  ;;  %v1775_v52 = vor.u32 %v1992_v42, %v1772_v43 }
 0x18d   : > { %v2045_v10 = vpop.eup %2044  ;;  %v2273_v11 = vadd.f32 1.0, %v2043_v4  ;;  %2046 = vpow2.f32 %v1631_v0  ;;  %v686_v33 = vadd.f32 %v667_v5, %v436_v21  ;;  %1218 = vmatpush.bf16.msra.mxu0 %v1691_v41  ;;  %v2000_v4 = vld [vmem:[#allocation10 + $0x14c] sm:$0xf]  ;;  %v1804_v5 = vld [vmem:[#allocation10 + $0x158] sm:$0xf0]  ;;  %1257 = vmatpush.bf16.msra.mxu3 %v1823_v61  ;;  %v1643_v46 = vor.u32 %v1962_v30, %v1642_v29 }
 0x18e   : > { %v2275_v15 = vadd.f32 1.0, %v2045_v10  ;;  %v1807_v8 = vor.u32 %v2000_v4, %v1804_v5  ;;  %v1966_v10 = vld [vmem:[#allocation10 + $0x34] sm:$0xf0] }
 0x18f   : > { %2048 = vrcp.f32 %v2273_v11  ;;  %v702_v27 = vand.u32 2147483647, %v2273_v11  ;;  %v704_v39 = vand.u32 2147483648, %v2273_v11  ;;  %1244 = vmatpush.bf16.msra.mxu2 %v1695_v60  ;;  %vm698_vm5 = vweird.f32 %v2273_v11  ;;  %v757_v60 = vld [vmem:[#allocation3 + $0x8] sm:$0xff] }
 0x190   : > { %2050 = vrcp.f32 %v2275_v15  ;;  %v682_v22 = vpop.f32.mrf.mxu3  ;;  %vm717_vm0 = vweird.f32 %v2275_v15  ;;  %v723_v51 = vand.u32 2147483648, %v2275_v15  ;;  %v721_v55 = vand.u32 2147483647, %v2275_v15  ;;  %1232 = vmatpush.bf16.msra.mxu1 %v1803_v3 }
 0x191   : > { %vm2297_vm2 = vcmp.eq.f32.partialorder %v702_v27, 8.507059e+37  ;;  %v705_v22 = vor.u32 1.1754944e-38, %v704_v39  ;;  %1219 = vmatpush.bf16.msra.mxu0 %v1675_v2  ;;  %v1659_v23 = vor.u32 %v1966_v10, %v1658_v9  ;;  %1258 = vmatpush.bf16.msra.mxu3 %v1807_v8 }
 0x192   : > { %v724_v18 = vor.u32 1.1754944e-38, %v723_v51  ;;  %vm722_vm7 = vcmp.eq.f32.partialorder %v721_v55, 8.507059e+37  ;;  %v1647_v51 = vor.u32 %v1960_v36, %v1644_v37 }
 0x193   : > { %v2047_v32 = vpop.eup %2046  ;;  %1245 = vmatpush.bf16.msra.mxu2 %v1679_v7 }
 0x194   : > { %v2281_v38 = vadd.f32 1.0, %v2047_v32  ;;  %v669_v40 = vpop.f32.mrf.mxu2  ;;  %1233 = vmatpush.bf16.msra.mxu1 %v1787_v28 }
 0x195   : > { %v2284_v44 = vpop.eup %2048  ;;  %1220 = vmatpush.bf16.msra.mxu0 %v1659_v23 }
 0x196   : > { %v2286_v49 = vpop.eup %2050  ;;  %v694_v50 = vmul.f32 %v2284_v44, %v2273_v11  ;;  %2052 = vrcp.f32 %v2281_v38  ;;  %vm699_vm4 = vweird.f32 %v2284_v44  ;;  %v1788_v11 = vld [vmem:[#allocation10 + $0x138] sm:$0xf0]  ;;  %vm737_vm9 = vweird.f32 %v2281_v38 }
 0x197   : > { %v713_v54 = vmul.f32 %v2286_v49, %v2275_v15  ;;  %vm718_vm1 = vweird.f32 %v2286_v49  ;;  %2054 = vtanh.f32 %v686_v33  ;;  %v1964_v15 = vld [vmem:[#allocation10 + $0x2c] sm:$0xf]  ;;  %vm2316_vm6 = vmor %vm698_vm5, %vm699_vm4  ;;  %v1791_v34 = vor.u32 %v1996_v24, %v1788_v11 }
 0x198   : > { %v695_v58 = vsub.f32 1.0, %v694_v50  ;;  %vm2303_vm3 = vmor %vm717_vm0, %vm718_vm1  ;;  %v1663_v33 = vor.u32 %v1964_v15, %v1660_v16  ;;  %v1771_v50 = vor.u32 %v1994_v35, %v1770_v31  ;;  %v741_v55 = vand.u32 2147483647, %v2281_v38 }
 0x199   : > { %v714_v0 = vsub.f32 1.0, %v713_v54  ;;  %1259 = vmatpush.bf16.msra.mxu3 %v1791_v34  ;;  %1221 = vmatpush.bf16.msra.mxu0 %v1643_v46  ;;  %v743_v54 = vand.u32 2147483648, %v2281_v38 }
 0x19a   : > { %v696_v6 = vmul.f32 %v2284_v44, %v695_v58  ;;  %1246 = vmatpush.bf16.msra.mxu2 %v1663_v33  ;;  %1234 = vmatpush.bf16.msra.mxu1 %v1771_v50  ;;  %vm742_vm11 = vcmp.eq.f32.partialorder %v741_v55, 8.507059e+37 }
 0x19b   : > { %v715_v13 = vmul.f32 %v2286_v49, %v714_v0  ;;  %v744_v57 = vor.u32 1.1754944e-38, %v743_v54 }
 0x19c   : > { %v2311_v17 = vpop.eup %2052  ;;  %v697_v20 = vadd.f32 %v2284_v44, %v696_v6 }
 0x19d   : > { %v2055_v25 = vpop.eup %2054  ;;  %v733_v26 = vmul.f32 %v2311_v17, %v2281_v38  ;;  %v716_v27 = vadd.f32 %v2286_v49, %v715_v13  ;;  %vm738_vm8 = vweird.f32 %v2311_v17  ;;  %1260 = vmatpush.bf16.msra.mxu3 %v1775_v52  ;;  %v825_v38 = vld [vmem:[%s2361_s5] sm:$0xf] }
 0x19e   : > { %v701_v32 = vsel %vm2316_vm6, %v2284_v44, %v697_v20  ;;  %1247 = vmatpush.bf16.msra.mxu2 %v1647_v51  ;;  %vm739_vm10 = vmor %vm737_vm9, %vm738_vm8  ;;  %v827_v3 = vperm.slane %v825_v38, 0  ;;  %v828_v8 = vperm.slane %v825_v38, 1  ;;  %v830_v11 = vperm.slane %v825_v38, 3 }
 0x19f   : > { %v734_v39 = vsub.f32 1.0, %v733_v26  ;;  %v706_v40 = vsel %vm2297_vm2, %v705_v22, %v701_v32  ;;  %v720_v41 = vsel %vm2303_vm3, %v2286_v49, %v716_v27  ;;  %v829_v26 = vperm.slane %v825_v38, 2 }
 0x1a0   : > { %v725_v45 = vsel %vm722_vm7, %v724_v18, %v720_v41  ;;  %v748_v44 = vmul.f32 %v2055_v25, %v706_v40 }
 0x1a1   : > { %v735_v47 = vmul.f32 %v2311_v17, %v734_v39  ;;  %v747_v48 = vmul.f32 %v725_v45, %v688_v19 }
 0x1a3   : > { %v749_v53 = vadd.f32 %v748_v44, %v747_v48  ;;  %v736_v49 = vadd.f32 %v2311_v17, %v735_v47 }
 0x1a5   : > { %2056 = vtanh.f32 %v749_v53  ;;  %753 = vst [vmem:[#allocation4 + $0x8] sm:$0xff] %v749_v53  ;;  %v740_v56 = vsel %vm739_vm10, %v2311_v17, %v736_v49 }
 0x1a6   : > { %v745_v59 = vsel %vm742_vm11, %v744_v57, %v740_v56  ;;  %v1267_v57 = vld [vmem:[#allocation4] sm:$0xff] }
 0x1ab   : > { %v2057_v58 = vpop.eup %2056 }
 0x1ac   : > { %v751_v61 = vmul.f32 %v2057_v58, %v745_v59 }
 0x1ae   : > { %752 = vst [vmem:[#allocation3] sm:$0xff] %v751_v61  ;;  %v2026_v62 = vpack.c.bf16 %v757_v60, %v751_v61 }
 0x1b0   : > { %v836_v63 = vunpack.c.l.b16 %v2026_v62  ;;  %v837_v0 = vunpack.c.h.b16 %v2026_v62 }
 0x1b2   : > { %v838_v1 = vpack.c.b16 %v836_v63, %v836_v63  ;;  %v839_v2 = vpack.c.b16 %v837_v0, %v837_v0 }
 0x1b4   : > { %1170 = vmatmul.bf16.vlgmr.msrb.gmra.mxu0 %v838_v1  ;;  %1183 = vmatmul.bf16.vlgmr.msrb.gmra.mxu1 %v839_v2 }
 0x1b5   : > { %1196 = vmatmul.bf16.vlgmr.msrb.gmra.mxu2 %v838_v1  ;;  %1209 = vmatmul.bf16.vlgmr.msrb.gmra.mxu3 %v839_v2 }
 0x1c4   : > { %1222 = vmatmul.bf16.vlgmr.msra.gmra.mxu0 %v838_v1  ;;  %1235 = vmatmul.bf16.vlgmr.msra.gmra.mxu1 %v839_v2 }
 0x1c5   : > { %1248 = vmatmul.bf16.vlgmr.msra.gmra.mxu2 %v838_v1  ;;  %1261 = vmatmul.bf16.vlgmr.msra.gmra.mxu3 %v839_v2 }
 0x231   : > { %v1171_v4 = vpop.f32.mrf.mxu0  ;;  %v1184_v5 = vpop.f32.mrf.mxu1 }
 0x232   : > { %v1172_v6 = vadd.f32 %v1171_v4, %v827_v3 }
 0x234   : > { %v1185_v7 = vadd.f32 %v1184_v5, %v1172_v6 }
 0x236   : > { %v1888_v9 = vmul.f32 -1.442695, %v1185_v7 }
 0x238   : > { %2058 = vpow2.f32 %v1888_v9  ;;  %v1197_v10 = vpop.f32.mrf.mxu2  ;;  %v1210_v12 = vpop.f32.mrf.mxu3 }
 0x239   : > { %v1198_v13 = vadd.f32 %v1197_v10, %v828_v8  ;;  %v1173_v14 = vpop.f32.mrf.mxu0  ;;  %v1186_v15 = vpop.f32.mrf.mxu1 }
 0x23a   :  { %v1333_v14 = vld [vmem:[#allocation3] sm:$0xff] (%p424_p0) }
 0x23b   : > { %v1211_v16 = vadd.f32 %v1210_v12, %v1198_v13  ;;  %1335 = vst [vmem:[%s2362_s6] sm:$0xff] (%p424_p0), %v1333_v14 }
 0x23d   : > { %v1889_v17 = vmul.f32 -1.442695, %v1211_v16  ;;  %v1337_v16 = vld [vmem:[#allocation4 + $0x8] sm:$0xff] (%p424_p0) }
 0x23e   : > { %v2059_v18 = vpop.eup %2058  ;;  %1339 = vst [vmem:[%s2363_s7] sm:$0xff] (%p424_p0), %v1337_v16 }
 0x23f   : > { %v1271_v19 = vadd.f32 1.0, %v2059_v18  ;;  %2060 = vpow2.f32 %v1889_v17 }
 0x240   : > { %v1199_v20 = vpop.f32.mrf.mxu2  ;;  %v1212_v21 = vpop.f32.mrf.mxu3 }
 0x241   : > { %2062 = vrcp.f32 %v1271_v19  ;;  %v1223_v22 = vpop.f32.mrf.mxu0  ;;  %v1236_v23 = vpop.f32.mrf.mxu1  ;;  %v1283_v45 = vand.u32 2147483648, %v1271_v19  ;;  %vm1277_vm13 = vweird.f32 %v1271_v19  ;;  %v1281_v48 = vand.u32 2147483647, %v1271_v19 }
 0x242   : > { %v1224_v35 = vadd.f32 %v1223_v22, %v829_v26 }
 0x243   : > { %v1284_v49 = vor.u32 1.1754944e-38, %v1283_v45  ;;  %vm1282_vm1 = vcmp.eq.f32.partialorder %v1281_v48, 8.507059e+37 }
 0x244   : > { %v1237_v41 = vadd.f32 %v1236_v23, %v1224_v35 }
 0x245   : > { %v2061_v24 = vpop.eup %2060 }
 0x246   : > { %v1290_v25 = vadd.f32 1.0, %v2061_v24 }
 0x247   : > { %v2063_v27 = vpop.eup %2062 }
 0x248   : > { %v1273_v28 = vmul.f32 %v2063_v27, %v1271_v19  ;;  %2064 = vrcp.f32 %v1290_v25  ;;  %v1249_v29 = vpop.f32.mrf.mxu2  ;;  %v1262_v30 = vpop.f32.mrf.mxu3  ;;  %vm1278_vm12 = vweird.f32 %v2063_v27  ;;  %v1302_v50 = vand.u32 2147483648, %v1290_v25 }
 0x249   : > { %v1250_v31 = vadd.f32 %v1249_v29, %v830_v11  ;;  %v1225_v32 = vpop.f32.mrf.mxu0  ;;  %v1238_v33 = vpop.f32.mrf.mxu1  ;;  %vm1279_vm14 = vmor %vm1277_vm13, %vm1278_vm12  ;;  %v1300_v53 = vand.u32 2147483647, %v1290_v25  ;;  %vm1296_vm0 = vweird.f32 %v1290_v25 }
 0x24a   : > { %v1274_v34 = vsub.f32 1.0, %v1273_v28  ;;  %v1303_v56 = vor.u32 1.1754944e-38, %v1302_v50 }
 0x24b   : > { %v1263_v36 = vadd.f32 %v1262_v30, %v1250_v31  ;;  %vm1301_vm3 = vcmp.eq.f32.partialorder %v1300_v53, 8.507059e+37 }
 0x24c   : > { %v1275_v37 = vmul.f32 %v2063_v27, %v1274_v34 }
 0x24d   : > { %v1890_v39 = vmul.f32 -1.442695, %v1263_v36 }
 0x24e   : > { %v2065_v40 = vpop.eup %2064  ;;  %v1276_v43 = vadd.f32 %v2063_v27, %v1275_v37 }
 0x24f   : > { %v1292_v42 = vmul.f32 %v2065_v40, %v1290_v25  ;;  %2066 = vpow2.f32 %v1890_v39  ;;  %vm1297_vm15 = vweird.f32 %v2065_v40 }
 0x250   : > { %v1251_v44 = vpop.f32.mrf.mxu2  ;;  %v1264_v46 = vpop.f32.mrf.mxu3  ;;  %2068 = vtanh.f32 %v1237_v41  ;;  %v1280_v52 = vsel %vm1279_vm14, %v2063_v27, %v1276_v43  ;;  %vm1298_vm2 = vmor %vm1296_vm0, %vm1297_vm15 }
 0x251   : > { %v1293_v47 = vsub.f32 1.0, %v1292_v42  ;;  %v1285_v58 = vsel %vm1282_vm1, %v1284_v49, %v1280_v52 }
 0x253   : > { %v1294_v51 = vmul.f32 %v2065_v40, %v1293_v47 }
 0x255   : > { %v2067_v54 = vpop.eup %2066  ;;  %v1295_v55 = vadd.f32 %v2065_v40, %v1294_v51 }
 0x256   : > { %v1310_v59 = vadd.f32 1.0, %v2067_v54  ;;  %v2069_v61 = vpop.eup %2068 }
 0x257   : > { %v1299_v60 = vsel %vm1298_vm2, %v2065_v40, %v1295_v55  ;;  %v1327_v0 = vmul.f32 %v2069_v61, %v1285_v58 }
 0x258   : > { %v1304_v62 = vsel %vm1301_vm3, %v1303_v56, %v1299_v60  ;;  %2070 = vrcp.f32 %v1310_v59  ;;  %v1322_v4 = vand.u32 2147483648, %v1310_v59  ;;  %v1320_v6 = vand.u32 2147483647, %v1310_v59 }
 0x259   : > { %v1326_v63 = vmul.f32 %v1304_v62, %v1267_v57  ;;  %vm1316_vm5 = vweird.f32 %v1310_v59 }
 0x25a   : > { %v1323_v8 = vor.u32 1.1754944e-38, %v1322_v4  ;;  %vm1321_vm7 = vcmp.eq.f32.partialorder %v1320_v6, 8.507059e+37 }
 0x25b   : > { %v1328_v1 = vadd.f32 %v1327_v0, %v1326_v63 }
 0x25d   : > { %1332 = vst [vmem:[#allocation4] sm:$0xff] %v1328_v1  ;;  %2072 = vtanh.f32 %v1328_v1 }
 0x25e   : > { %v2071_v2 = vpop.eup %2070 }
 0x25f   : > { %v1312_v38 = vmul.f32 %v2071_v2, %v1310_v59  ;;  %vm1317_vm4 = vweird.f32 %v2071_v2 }
 0x260   : > { %vm1318_vm6 = vmor %vm1316_vm5, %vm1317_vm4 }
 0x261   : > { %v1313_v3 = vsub.f32 1.0, %v1312_v38 }
 0x263   : > { %v1314_v5 = vmul.f32 %v2071_v2, %v1313_v3  ;;  %v2073_v10 = vpop.eup %2072 }
 0x264   :  { %v1338_v17 = vld [vmem:[#allocation4] sm:$0xff] (%p424_p0) }
 0x265   : > { %v1315_v7 = vadd.f32 %v2071_v2, %v1314_v5  ;;  %1340 = vst [vmem:[%s2363_s7 + $0x8] sm:$0xff] (%p424_p0), %v1338_v17 }
 0x267   : > { %v1319_v9 = vsel %vm1318_vm6, %v2071_v2, %v1315_v7  ;;  %426 = sbr.rel (!%p424_p0) target bundleno = 226 (0xe2), region = 74 }
 0x268   : > { %v1324_v12 = vsel %vm1321_vm7, %v1323_v8, %v1319_v9 }
 0x269   : > { %v1330_v13 = vmul.f32 %v2073_v10, %v1324_v12 }
 0x26b   : > { %1331 = vst [vmem:[#allocation3 + $0x8] sm:$0xff] %v1330_v13 }
 0x272   :  { %v1334_v15 = vld [vmem:[#allocation3 + $0x8] sm:$0xff] }
 0x273   :  { %1336 = vst [vmem:[%s2362_s6 + $0x8] sm:$0xff] %v1334_v15 }
 0x274   :  { %1349 = vsyncpa [#allocation7], 1 }
 0x275   :  { %1350 = vsyncpa [#allocation9], 1 }

// kernel: _seq2seq_forward.3
= control target key start
LH: loop header
LB: loop body
LE: loop exit
PB: predicated region body
PF: predicated region fallthrough
CT: control target
= control target key end

     0   :  { %16 = vsyncpa [#allocation9], 0  ;;  %s2410_s0 = inlined_call_operand.vmem [shape: s32[4], index: 0, kind: input, shape index: {}]   ;;  %s2411_s1 = inlined_call_operand.vmem [shape: f32[4,8,128], index: 1, kind: input, shape index: {}]   ;;  %s2412_s2 = inlined_call_operand.vmem [shape: f32[8,128], index: 2, kind: input, shape index: {}]   ;;  %s2413_s3 = inlined_call_operand.vmem [shape: f32[2,8,128], index: 3, kind: input, shape index: {}]   ;;  %s2414_s4 = inlined_call_operand.vmem [shape: f32[2,8,128], index: 4, kind: input, shape index: {}]   ;;  %s2415_s5 = inlined_call_operand.hbm [shape: bf16[256,512], index: 5, kind: input, shape index: {}]   ;;  %s2416_s6 = inlined_call_operand.vmem [shape: f32[1,512], index: 6, kind: input, shape index: {}]   ;;  %s2417_s7 = inlined_call_operand.hbm [shape: bf16[256,512], index: 7, kind: input, shape index: {}]   ;;  %s2418_s8 = inlined_call_operand.vmem [shape: f32[1,512], index: 8, kind: input, shape index: {}]   ;;  %s2419_s9 = inlined_call_operand.vmem [shape: bf16[128,128], index: 9, kind: input, shape index: {}]   ;;  %s2420_s10 = inlined_call_operand.vmem [shape: f32[1,128], index: 10, kind: input, shape index: {}]   ;;  %s2421_s11 = inlined_call_operand.vmem [shape: f32[4,8,128], index: 11, kind: output, shape index: {}]  }
   0x1   :  { %17 = vsyncpa [#allocation8], 0  ;;  %s24_s19 = sshll.u32 %s2410_s0, 4  ;;  %s25_s19 = int_to_ptr.vmem [resolvable:$true] %s24_s19 }
   0x2   :  { %18 = vsyncpa [#allocation12], 0  ;;  %s40_s22 = sshll.u32 %s2415_s5, 4  ;;  %s2185_s23 = smov [#allocation7]   ;;  %s41_s22 = int_to_ptr.hbm [resolvable:$true] %s40_s22 }
   0x3   :  { %27 = dma.vmem_to_smem %s25_s19, 16, %s2185_s23, [#allocation9]  }
   0x4   :  { %s2186_s24 = smov [#allocation10]   ;;  %s2187_s26 = smov 256  }
   0x5   :  { %s42_s25 = sshll.u32 %s2186_s24, 4  ;;  %s2188_s27 = smov 16   ;;  %s43_s25 = int_to_ptr.vmem [resolvable:$true] %s42_s25 }
   0x6   :  { %48 = dma.hbm_to_vmem [thread:$0]  %s41_s22, 8192, %s43_s25, [#allocation8], %s2187_s26, %s2187_s26, %s2188_s27  }
   0x7   :  { %s55_s30 = sshll.u32 %s2417_s7, 4  ;;  %s2189_s0 = smov [#allocation11]   ;;  %s56_s30 = int_to_ptr.hbm [resolvable:$true] %s55_s30 }
   0x8   :  { %s57_s12 = sshll.u32 %s2189_s0, 4  ;;  %s58_s12 = int_to_ptr.vmem [resolvable:$true] %s57_s12 }
   0x9   :  { %63 = dma.hbm_to_vmem [thread:$0]  %s56_s30, 8192, %s58_s12, [#allocation12], %s2187_s26, %s2187_s26, %s2188_s27  }
   0xa   :  { %2175 = dma.done.wait [#allocation9], 16  }
   0xb   :  { %2176 = vsyncadd [#allocation9], 4294967280 }
   0xc   :  { %2177 = dma.done.wait [#allocation8], 8192  }
   0xd   :  { %2178 = vsyncadd [#allocation8], 4294959104 }
   0xe   :  { %2179 = dma.done.wait [#allocation12], 8192  }
   0xf   :  { %2180 = vsyncadd [#allocation12], 4294959104 }
  0x10   :  { %82 = sfence }
  0x11   :  { %v83_v0 = vld [vmem:[%s2413_s3] sm:$0xff]  ;;  %v84_v1 = vld [vmem:[%s2413_s3 + $0x8] sm:$0xff]  ;;  %s2274_s21 = smov 0  }
  0x12   :  { %v87_v2 = vld [vmem:[%s2414_s4] sm:$0xff]  ;;  %85 = vst [vmem:[#allocation2] sm:$0xff] %v83_v0  ;;  %v88_v3 = vld [vmem:[%s2414_s4 + $0x8] sm:$0xff] }
  0x13   :  { %86 = vst [vmem:[#allocation2 + $0x8] sm:$0xff] %v84_v1  ;;  %v91_v4 = vld [vmem:[%s2412_s2] sm:$0xff] }
  0x14   :  { %89 = vst [vmem:[#allocation3 + $0x8] sm:$0xff] %v87_v2 }
  0x15   :  { %90 = vst [vmem:[#allocation3] sm:$0xff] %v88_v3 }
  0x16   :  { %92 = vst [vmem:[#allocation4] sm:$0xff] %v91_v4 }
  0x17 LB: > { %v1482_v5 = vld [vmem:[#allocation10 + $0xe0] sm:$0xf]  ;;  %v1949_v6 = vld [vmem:[#allocation10 + $0xec] sm:$0xf0]  ;;  %v1947_v7 = vld [vmem:[#allocation10 + $0xe4] sm:$0xf]  ;;  %s2183_s21 = sphi %s2274_s21, %s98_s21  }
  0x18   : > { %v1483_v8 = vor.u32 %v1949_v6, %v1482_v5  ;;  %v1484_v9 = vld [vmem:[#allocation10 + $0xf0] sm:$0xf0]  ;;  %v1979_v10 = vld [vmem:[#allocation10 + $0x1e4] sm:$0xf]  ;;  %v1610_v14 = vld [vmem:[#allocation10 + $0x1e0] sm:$0xf] }
  0x19   : > { %v1612_v11 = vld [vmem:[#allocation10 + $0x1f0] sm:$0xf0]  ;;  %v1487_v12 = vor.u32 %v1947_v7, %v1484_v9  ;;  %v1981_v15 = vld [vmem:[#allocation10 + $0x1ec] sm:$0xf0]  ;;  %v1466_v16 = vld [vmem:[#allocation10 + $0xc0] sm:$0xf] }
  0x1a   : > { %v1615_v13 = vor.u32 %v1979_v10, %v1612_v11  ;;  %507 = vmatpush.bf16.msra.mxu0 %v1483_v8  ;;  %v1611_v17 = vor.u32 %v1981_v15, %v1610_v14  ;;  %v1945_v18 = vld [vmem:[#allocation10 + $0xcc] sm:$0xf0]  ;;  %v1943_v19 = vld [vmem:[#allocation10 + $0xc4] sm:$0xf]  ;;  %v1468_v20 = vld [vmem:[#allocation10 + $0xd0] sm:$0xf0] }
  0x1b   : > { %533 = vmatpush.bf16.msra.mxu2 %v1487_v12  ;;  %v1467_v21 = vor.u32 %v1945_v18, %v1466_v16  ;;  %v1471_v22 = vor.u32 %v1943_v19, %v1468_v20  ;;  %v1975_v23 = vld [vmem:[#allocation10 + $0x1c4] sm:$0xf]  ;;  %v1596_v24 = vld [vmem:[#allocation10 + $0x1d0] sm:$0xf0]  ;;  %v1594_v25 = vld [vmem:[#allocation10 + $0x1c0] sm:$0xf] }
  0x1c   : > { %546 = vmatpush.bf16.msra.mxu3 %v1615_v13  ;;  %520 = vmatpush.bf16.msra.mxu1 %v1611_v17  ;;  %v1599_v26 = vor.u32 %v1975_v23, %v1596_v24  ;;  %v1977_v27 = vld [vmem:[#allocation10 + $0x1cc] sm:$0xf0]  ;;  %v1450_v28 = vld [vmem:[#allocation10 + $0xa0] sm:$0xf]  ;;  %v1939_v31 = vld [vmem:[#allocation10 + $0xa4] sm:$0xf] }
  0x1d   : > { %v1941_v29 = vld [vmem:[#allocation10 + $0xac] sm:$0xf0]  ;;  %v1595_v30 = vor.u32 %v1977_v27, %v1594_v25  ;;  %v1452_v32 = vld [vmem:[#allocation10 + $0xb0] sm:$0xf0]  ;;  %v1971_v33 = vld [vmem:[#allocation10 + $0x1a4] sm:$0xf] }
  0x1e   : > { %508 = vmatpush.bf16.msra.mxu0 %v1467_v21  ;;  %v1451_v34 = vor.u32 %v1941_v29, %v1450_v28  ;;  %v1580_v35 = vld [vmem:[#allocation10 + $0x1b0] sm:$0xf0]  ;;  %v1578_v36 = vld [vmem:[#allocation10 + $0x1a0] sm:$0xf]  ;;  %v1973_v37 = vld [vmem:[#allocation10 + $0x1ac] sm:$0xf0]  ;;  %v1455_v38 = vor.u32 %v1939_v31, %v1452_v32 }
  0x1f   : > { %534 = vmatpush.bf16.msra.mxu2 %v1471_v22  ;;  %v1583_v39 = vor.u32 %v1971_v33, %v1580_v35  ;;  %v1434_v40 = vld [vmem:[#allocation10 + $0x80] sm:$0xf]  ;;  %v1937_v41 = vld [vmem:[#allocation10 + $0x8c] sm:$0xf0]  ;;  %v1935_v42 = vld [vmem:[#allocation10 + $0x84] sm:$0xf]  ;;  %v1579_v43 = vor.u32 %v1973_v37, %v1578_v36 }
  0x20   : > { %547 = vmatpush.bf16.msra.mxu3 %v1599_v26  ;;  %521 = vmatpush.bf16.msra.mxu1 %v1595_v30  ;;  %v1436_v44 = vld [vmem:[#allocation10 + $0x90] sm:$0xf0]  ;;  %v1967_v45 = vld [vmem:[#allocation10 + $0x184] sm:$0xf]  ;;  %v1562_v47 = vld [vmem:[#allocation10 + $0x180] sm:$0xf]  ;;  %v1435_v49 = vor.u32 %v1937_v41, %v1434_v40 }
  0x21   : > { %v1564_v46 = vld [vmem:[#allocation10 + $0x190] sm:$0xf0]  ;;  %v1969_v48 = vld [vmem:[#allocation10 + $0x18c] sm:$0xf0]  ;;  %v1439_v50 = vor.u32 %v1935_v42, %v1436_v44  ;;  %v1418_v52 = vld [vmem:[#allocation10 + $0x60] sm:$0xf] }
  0x22   : > { %509 = vmatpush.bf16.msra.mxu0 %v1451_v34  ;;  %v1567_v51 = vor.u32 %v1967_v45, %v1564_v46  ;;  %v1933_v53 = vld [vmem:[#allocation10 + $0x6c] sm:$0xf0]  ;;  %v1931_v54 = vld [vmem:[#allocation10 + $0x64] sm:$0xf]  ;;  %v1563_v55 = vor.u32 %v1969_v48, %v1562_v47  ;;  %v1420_v56 = vld [vmem:[#allocation10 + $0x70] sm:$0xf0] }
  0x23   : > { %535 = vmatpush.bf16.msra.mxu2 %v1455_v38  ;;  %v1963_v57 = vld [vmem:[#allocation10 + $0x164] sm:$0xf]  ;;  %v1548_v58 = vld [vmem:[#allocation10 + $0x170] sm:$0xf0]  ;;  %v1546_v59 = vld [vmem:[#allocation10 + $0x160] sm:$0xf]  ;;  %v1419_v61 = vor.u32 %v1933_v53, %v1418_v52  ;;  %v1423_v62 = vor.u32 %v1931_v54, %v1420_v56 }
  0x24   : > { %548 = vmatpush.bf16.msra.mxu3 %v1583_v39  ;;  %522 = vmatpush.bf16.msra.mxu1 %v1579_v43  ;;  %v1965_v60 = vld [vmem:[#allocation10 + $0x16c] sm:$0xf0]  ;;  %v1551_v63 = vor.u32 %v1963_v57, %v1548_v58  ;;  %v1402_v0 = vld [vmem:[#allocation10 + $0x40] sm:$0xf]  ;;  %v1927_v2 = vld [vmem:[#allocation10 + $0x44] sm:$0xf] }
  0x25   : > { %v1929_v1 = vld [vmem:[#allocation10 + $0x4c] sm:$0xf0]  ;;  %v1547_v3 = vor.u32 %v1965_v60, %v1546_v59  ;;  %v1404_v4 = vld [vmem:[#allocation10 + $0x50] sm:$0xf0]  ;;  %v1959_v5 = vld [vmem:[#allocation10 + $0x144] sm:$0xf] }
  0x26   : > { %510 = vmatpush.bf16.msra.mxu0 %v1435_v49  ;;  %v1532_v6 = vld [vmem:[#allocation10 + $0x150] sm:$0xf0]  ;;  %v1530_v7 = vld [vmem:[#allocation10 + $0x140] sm:$0xf]  ;;  %v1961_v8 = vld [vmem:[#allocation10 + $0x14c] sm:$0xf0]  ;;  %v1403_v9 = vor.u32 %v1929_v1, %v1402_v0  ;;  %v1407_v10 = vor.u32 %v1927_v2, %v1404_v4 }
  0x27   : > { %536 = vmatpush.bf16.msra.mxu2 %v1439_v50  ;;  %v1535_v11 = vor.u32 %v1959_v5, %v1532_v6  ;;  %v1386_v12 = vld [vmem:[#allocation10 + $0x20] sm:$0xf]  ;;  %v1925_v13 = vld [vmem:[#allocation10 + $0x2c] sm:$0xf0]  ;;  %v1923_v14 = vld [vmem:[#allocation10 + $0x24] sm:$0xf]  ;;  %v1531_v15 = vor.u32 %v1961_v8, %v1530_v7 }
  0x28   : > { %549 = vmatpush.bf16.msra.mxu3 %v1567_v51  ;;  %523 = vmatpush.bf16.msra.mxu1 %v1563_v55  ;;  %v1388_v16 = vld [vmem:[#allocation10 + $0x30] sm:$0xf0]  ;;  %v1955_v17 = vld [vmem:[#allocation10 + $0x124] sm:$0xf]  ;;  %v1514_v19 = vld [vmem:[#allocation10 + $0x120] sm:$0xf]  ;;  %v1387_v22 = vor.u32 %v1925_v13, %v1386_v12 }
  0x29   : > { %v1516_v18 = vld [vmem:[#allocation10 + $0x130] sm:$0xf0]  ;;  %v1957_v20 = vld [vmem:[#allocation10 + $0x12c] sm:$0xf0]  ;;  %v1370_v21 = vld [vmem:[#allocation10] sm:$0xf]  ;;  %v1391_v26 = vor.u32 %v1923_v14, %v1388_v16 }
  0x2a   : > { %511 = vmatpush.bf16.msra.mxu0 %v1419_v61  ;;  %v1921_v23 = vld [vmem:[#allocation10 + $0xc] sm:$0xf0]  ;;  %v99_v24 = vld [vmem:[#allocation4] sm:$0xff]  ;;  %v1519_v27 = vor.u32 %v1955_v17, %v1516_v18  ;;  %v1919_v28 = vld [vmem:[#allocation10 + $0x4] sm:$0xf]  ;;  %v1515_v32 = vor.u32 %v1957_v20, %v1514_v19  ;;  %s1341_s17 = sld [smem:[#allocation7 + %s2183_s21]] }
  0x2b   : > { %537 = vmatpush.bf16.msra.mxu2 %v1423_v62  ;;  %v102_v25 = vld [vmem:[#allocation2] sm:$0xff]  ;;  %v1372_v29 = vld [vmem:[#allocation10 + $0x10] sm:$0xf0]  ;;  %v1951_v30 = vld [vmem:[#allocation10 + $0x104] sm:$0xf]  ;;  %v1371_v39 = vor.u32 %v1921_v23, %v1370_v21  ;;  %s1918_s18 = sshll.u32 %s2183_s21, 3 }
  0x2c   : > { %550 = vmatpush.bf16.msra.mxu3 %v1551_v63  ;;  %524 = vmatpush.bf16.msra.mxu1 %v1547_v3  ;;  %v2058_v31 = vpack.c.bf16 %v102_v25, %v99_v24  ;;  %v1500_v33 = vld [vmem:[#allocation10 + $0x110] sm:$0xf0]  ;;  %v1490_v34 = vld [vmem:[#allocation10 + $0xe8] sm:$0xf]  ;;  %v1950_v35 = vld [vmem:[#allocation10 + $0xf4] sm:$0xf0]  ;;  %v1375_v44 = vor.u32 %v1919_v28, %v1372_v29  ;;  %s1343_s3 = scalar_lea.vmem %s2411_s1, %s1918_s18  ;;  %s1339_s26 = scalar_lea.vmem %s2421_s11, %s1918_s18 }
  0x2d   : > { %v1948_v36 = vld [vmem:[#allocation10 + $0xec] sm:$0xf]  ;;  %v1492_v37 = vld [vmem:[#allocation10 + $0xf8] sm:$0xf0]  ;;  %v1498_v41 = vld [vmem:[#allocation10 + $0x100] sm:$0xf]  ;;  %v1503_v45 = vor.u32 %v1951_v30, %v1500_v33  ;;  %v1491_v49 = vor.u32 %v1950_v35, %v1490_v34 }
  0x2e   : > { %512 = vmatpush.bf16.msra.mxu0 %v1403_v9  ;;  %v1980_v38 = vld [vmem:[#allocation10 + $0x1ec] sm:$0xf]  ;;  %v1620_v40 = vld [vmem:[#allocation10 + $0x1f8] sm:$0xf0]  ;;  %v1953_v42 = vld [vmem:[#allocation10 + $0x10c] sm:$0xf0]  ;;  %v181_v43 = vunpack.c.l.b16 %v2058_v31  ;;  %v182_v48 = vunpack.c.h.b16 %v2058_v31  ;;  %v1495_v50 = vor.u32 %v1948_v36, %v1492_v37 }
  0x2f   : > { %538 = vmatpush.bf16.msra.mxu2 %v1407_v10  ;;  %v1618_v46 = vld [vmem:[#allocation10 + $0x1e8] sm:$0xf]  ;;  %v1982_v47 = vld [vmem:[#allocation10 + $0x1f4] sm:$0xf0]  ;;  %v1623_v52 = vor.u32 %v1980_v38, %v1620_v40  ;;  %v1499_v53 = vor.u32 %v1953_v42, %v1498_v41  ;;  %v1944_v55 = vld [vmem:[#allocation10 + $0xcc] sm:$0xf] }
  0x30   : > { %551 = vmatpush.bf16.msra.mxu3 %v1535_v11  ;;  %525 = vmatpush.bf16.msra.mxu1 %v1531_v15  ;;  %v1474_v51 = vld [vmem:[#allocation10 + $0xc8] sm:$0xf]  ;;  %v1946_v54 = vld [vmem:[#allocation10 + $0xd4] sm:$0xf0]  ;;  %v1476_v56 = vld [vmem:[#allocation10 + $0xd8] sm:$0xf0]  ;;  %v2279_v57 = vpack.c.b16 %v181_v43, %v181_v43  ;;  %v1619_v58 = vor.u32 %v1982_v47, %v1618_v46  ;;  %v2281_v61 = vpack.c.b16 %v182_v48, %v182_v48  ;;  %s1342_s19 = scvt.s32.f32 %s1341_s17 }
  0x31   : > { %v1976_v59 = vld [vmem:[#allocation10 + $0x1cc] sm:$0xf]  ;;  %v1604_v60 = vld [vmem:[#allocation10 + $0x1d8] sm:$0xf0]  ;;  %v1602_v62 = vld [vmem:[#allocation10 + $0x1c8] sm:$0xf]  ;;  %v1475_v0 = vor.u32 %v1946_v54, %v1474_v51  ;;  %v1479_v1 = vor.u32 %v1944_v55, %v1476_v56 }
  0x32   : > { %513 = vmatpush.bf16.msra.mxu0 %v1387_v22  ;;  %v1978_v63 = vld [vmem:[#allocation10 + $0x1d4] sm:$0xf0]  ;;  %v1458_v2 = vld [vmem:[#allocation10 + $0xa8] sm:$0xf]  ;;  %v1607_v3 = vor.u32 %v1976_v59, %v1604_v60  ;;  %v1940_v5 = vld [vmem:[#allocation10 + $0xac] sm:$0xf] }
  0x33   : > { %539 = vmatpush.bf16.msra.mxu2 %v1391_v26  ;;  %v1942_v4 = vld [vmem:[#allocation10 + $0xb4] sm:$0xf0]  ;;  %v1460_v6 = vld [vmem:[#allocation10 + $0xb8] sm:$0xf0]  ;;  %v1603_v7 = vor.u32 %v1978_v63, %v1602_v62  ;;  %v1972_v8 = vld [vmem:[#allocation10 + $0x1ac] sm:$0xf] }
  0x34   : > { %552 = vmatpush.bf16.msra.mxu3 %v1519_v27  ;;  %526 = vmatpush.bf16.msra.mxu1 %v1515_v32  ;;  %v1588_v9 = vld [vmem:[#allocation10 + $0x1b8] sm:$0xf0]  ;;  %v1586_v10 = vld [vmem:[#allocation10 + $0x1a8] sm:$0xf]  ;;  %v1974_v11 = vld [vmem:[#allocation10 + $0x1b4] sm:$0xf0]  ;;  %v1459_v12 = vor.u32 %v1942_v4, %v1458_v2  ;;  %v1463_v13 = vor.u32 %v1940_v5, %v1460_v6 }
  0x35   : > { %v1442_v14 = vld [vmem:[#allocation10 + $0x88] sm:$0xf]  ;;  %v1591_v15 = vor.u32 %v1972_v8, %v1588_v9  ;;  %v1938_v16 = vld [vmem:[#allocation10 + $0x94] sm:$0xf0]  ;;  %v1936_v17 = vld [vmem:[#allocation10 + $0x8c] sm:$0xf]  ;;  %v1587_v19 = vor.u32 %v1974_v11, %v1586_v10 }
  0x36   : > { %514 = vmatpush.bf16.msra.mxu0 %v1371_v39  ;;  %v1444_v18 = vld [vmem:[#allocation10 + $0x98] sm:$0xf0]  ;;  %v1968_v20 = vld [vmem:[#allocation10 + $0x18c] sm:$0xf]  ;;  %v1570_v22 = vld [vmem:[#allocation10 + $0x188] sm:$0xf]  ;;  %v1443_v24 = vor.u32 %v1938_v16, %v1442_v14 }
  0x37   : > { %540 = vmatpush.bf16.msra.mxu2 %v1375_v44  ;;  %v1572_v21 = vld [vmem:[#allocation10 + $0x198] sm:$0xf0]  ;;  %v1970_v23 = vld [vmem:[#allocation10 + $0x194] sm:$0xf0]  ;;  %v1447_v25 = vor.u32 %v1936_v17, %v1444_v18  ;;  %v1426_v26 = vld [vmem:[#allocation10 + $0x68] sm:$0xf] }
  0x38   : > { %553 = vmatpush.bf16.msra.mxu3 %v1503_v45  ;;  %527 = vmatpush.bf16.msra.mxu1 %v1499_v53  ;;  %v1575_v27 = vor.u32 %v1968_v20, %v1572_v21  ;;  %v1934_v28 = vld [vmem:[#allocation10 + $0x74] sm:$0xf0]  ;;  %v1932_v29 = vld [vmem:[#allocation10 + $0x6c] sm:$0xf]  ;;  %v1428_v30 = vld [vmem:[#allocation10 + $0x78] sm:$0xf0]  ;;  %v1571_v31 = vor.u32 %v1970_v23, %v1570_v22 }
  0x39   : > { %515 = vmatmul.bf16.vlgmr.msra.gmra.mxu0 %v2279_v57  ;;  %v1964_v32 = vld [vmem:[#allocation10 + $0x16c] sm:$0xf]  ;;  %v1556_v33 = vld [vmem:[#allocation10 + $0x178] sm:$0xf0]  ;;  %v1554_v34 = vld [vmem:[#allocation10 + $0x168] sm:$0xf]  ;;  %v1427_v36 = vor.u32 %v1934_v28, %v1426_v26  ;;  %v1431_v37 = vor.u32 %v1932_v29, %v1428_v30 }
  0x3a   : > { %559 = vmatpush.bf16.msrb.mxu0 %v1491_v49  ;;  %541 = vmatmul.bf16.vlgmr.msra.gmra.mxu2 %v2279_v57  ;;  %v1966_v35 = vld [vmem:[#allocation10 + $0x174] sm:$0xf0]  ;;  %v1410_v38 = vld [vmem:[#allocation10 + $0x48] sm:$0xf]  ;;  %v1559_v39 = vor.u32 %v1964_v32, %v1556_v33  ;;  %v1928_v41 = vld [vmem:[#allocation10 + $0x4c] sm:$0xf] }
  0x3b   : > { %585 = vmatpush.bf16.msrb.mxu2 %v1495_v50  ;;  %554 = vmatmul.bf16.vlgmr.msra.gmra.mxu3 %v2281_v61  ;;  %v1930_v40 = vld [vmem:[#allocation10 + $0x54] sm:$0xf0]  ;;  %v1412_v42 = vld [vmem:[#allocation10 + $0x58] sm:$0xf0]  ;;  %v1555_v43 = vor.u32 %v1966_v35, %v1554_v34  ;;  %v1960_v44 = vld [vmem:[#allocation10 + $0x14c] sm:$0xf] }
  0x3c   : > { %598 = vmatpush.bf16.msrb.mxu3 %v1623_v52  ;;  %572 = vmatpush.bf16.msrb.mxu1 %v1619_v58  ;;  %v1540_v45 = vld [vmem:[#allocation10 + $0x158] sm:$0xf0]  ;;  %v1538_v46 = vld [vmem:[#allocation10 + $0x148] sm:$0xf]  ;;  %v1962_v47 = vld [vmem:[#allocation10 + $0x154] sm:$0xf0]  ;;  %v1411_v48 = vor.u32 %v1930_v40, %v1410_v38  ;;  %v1415_v49 = vor.u32 %v1928_v41, %v1412_v42 }
  0x3d   : > { %528 = vmatmul.bf16.vlgmr.msra.gmra.mxu1 %v2281_v61  ;;  %v1394_v50 = vld [vmem:[#allocation10 + $0x28] sm:$0xf]  ;;  %v1543_v51 = vor.u32 %v1960_v44, %v1540_v45  ;;  %v1926_v52 = vld [vmem:[#allocation10 + $0x34] sm:$0xf0]  ;;  %v1924_v53 = vld [vmem:[#allocation10 + $0x2c] sm:$0xf]  ;;  %v1539_v55 = vor.u32 %v1962_v47, %v1538_v46 }
  0x3e   : > { %560 = vmatpush.bf16.msrb.mxu0 %v1475_v0  ;;  %v1396_v54 = vld [vmem:[#allocation10 + $0x38] sm:$0xf0]  ;;  %v1956_v56 = vld [vmem:[#allocation10 + $0x12c] sm:$0xf]  ;;  %v1522_v59 = vld [vmem:[#allocation10 + $0x128] sm:$0xf]  ;;  %v1395_v62 = vor.u32 %v1926_v52, %v1394_v50 }
  0x3f   : > { %586 = vmatpush.bf16.msrb.mxu2 %v1479_v1  ;;  %v1524_v58 = vld [vmem:[#allocation10 + $0x138] sm:$0xf0]  ;;  %v1958_v60 = vld [vmem:[#allocation10 + $0x134] sm:$0xf0]  ;;  %v1399_v63 = vor.u32 %v1924_v53, %v1396_v54  ;;  %v1378_v0 = vld [vmem:[#allocation10 + $0x8] sm:$0xf] }
  0x40   : > { %599 = vmatpush.bf16.msrb.mxu3 %v1607_v3  ;;  %573 = vmatpush.bf16.msrb.mxu1 %v1603_v7  ;;  %v1527_v1 = vor.u32 %v1956_v56, %v1524_v58  ;;  %v1922_v2 = vld [vmem:[#allocation10 + $0x14] sm:$0xf0]  ;;  %v1920_v3 = vld [vmem:[#allocation10 + $0xc] sm:$0xf]  ;;  %v1380_v4 = vld [vmem:[#allocation10 + $0x18] sm:$0xf0]  ;;  %v1523_v5 = vor.u32 %v1958_v60, %v1522_v59 }
  0x41   : > { %v1952_v6 = vld [vmem:[#allocation10 + $0x10c] sm:$0xf]  ;;  %v1508_v7 = vld [vmem:[#allocation10 + $0x118] sm:$0xf0]  ;;  %v1506_v8 = vld [vmem:[#allocation10 + $0x108] sm:$0xf]  ;;  %v1379_v10 = vor.u32 %v1922_v2, %v1378_v0  ;;  %v1383_v11 = vor.u32 %v1920_v3, %v1380_v4 }
  0x42   : > { %561 = vmatpush.bf16.msrb.mxu0 %v1459_v12  ;;  %v1954_v9 = vld [vmem:[#allocation10 + $0x114] sm:$0xf0]  ;;  %v1511_v12 = vor.u32 %v1952_v6, %v1508_v7  ;;  %v1741_v16 = vld [vmem:[#allocation11 + $0xe0] sm:$0xf]  ;;  %v2013_v17 = vld [vmem:[#allocation11 + $0xec] sm:$0xf0] }
  0x43   : > { %587 = vmatpush.bf16.msrb.mxu2 %v1463_v13  ;;  %v1507_v13 = vor.u32 %v1954_v9, %v1506_v8  ;;  %v2294_v14 = vld [vmem:[%s2416_s6] sm:$0xf]  ;;  %v1869_v18 = vld [vmem:[#allocation11 + $0x1e0] sm:$0xf]  ;;  %v2045_v20 = vld [vmem:[#allocation11 + $0x1ec] sm:$0xf0] }
  0x44   : > { %600 = vmatpush.bf16.msrb.mxu3 %v1591_v15  ;;  %574 = vmatpush.bf16.msrb.mxu1 %v1587_v19  ;;  %v172_v15 = vperm.slane %v2294_v14, 0  ;;  %v1742_v19 = vor.u32 %v2013_v17, %v1741_v16  ;;  %v2011_v21 = vld [vmem:[#allocation11 + $0xe4] sm:$0xf]  ;;  %v1743_v22 = vld [vmem:[#allocation11 + $0xf0] sm:$0xf0]  ;;  %v1870_v23 = vor.u32 %v2045_v20, %v1869_v18  ;;  %s1347_s4 = ssub.f32 1.0, %s1342_s19 }
  0x45   : > { %v1725_v28 = vld [vmem:[#allocation11 + $0xc0] sm:$0xf]  ;;  %v2009_v29 = vld [vmem:[#allocation11 + $0xcc] sm:$0xf0]  ;;  %v2007_v35 = vld [vmem:[#allocation11 + $0xc4] sm:$0xf] }
  0x46   : > { %562 = vmatpush.bf16.msrb.mxu0 %v1443_v24  ;;  %v2043_v24 = vld [vmem:[#allocation11 + $0x1e4] sm:$0xf]  ;;  %v1853_v30 = vld [vmem:[#allocation11 + $0x1c0] sm:$0xf]  ;;  %v1726_v33 = vor.u32 %v2009_v29, %v1725_v28  ;;  %v2041_v34 = vld [vmem:[#allocation11 + $0x1cc] sm:$0xf0] }
  0x47   : > { %588 = vmatpush.bf16.msrb.mxu2 %v1447_v25  ;;  %v1871_v25 = vld [vmem:[#allocation11 + $0x1f0] sm:$0xf0]  ;;  %v1709_v45 = vld [vmem:[#allocation11 + $0xa0] sm:$0xf]  ;;  %v2005_v46 = vld [vmem:[#allocation11 + $0xac] sm:$0xf0] }
  0x48   : > { %601 = vmatpush.bf16.msrb.mxu3 %v1575_v27  ;;  %575 = vmatpush.bf16.msrb.mxu1 %v1571_v31  ;;  %v173_v31 = vperm.slane %v2294_v14, 1  ;;  %v1727_v38 = vld [vmem:[#allocation11 + $0xd0] sm:$0xf0]  ;;  %v1837_v50 = vld [vmem:[#allocation11 + $0x1a0] sm:$0xf]  ;;  %s98_s21 = sadd.s32 1, %s2183_s21  }
  0x49   : > { %v1855_v40 = vld [vmem:[#allocation11 + $0x1d0] sm:$0xf0]  ;;  %v1730_v41 = vor.u32 %v2007_v35, %v1727_v38  ;;  %v2003_v52 = vld [vmem:[#allocation11 + $0xa4] sm:$0xf]  ;;  %v2001_v0 = vld [vmem:[#allocation11 + $0x8c] sm:$0xf0] }
  0x4a   : > { %563 = vmatpush.bf16.msrb.mxu0 %v1427_v36  ;;  %v1711_v54 = vld [vmem:[#allocation11 + $0xb0] sm:$0xf0]  ;;  %v1999_v6 = vld [vmem:[#allocation11 + $0x84] sm:$0xf]  ;;  %v1677_v16 = vld [vmem:[#allocation11 + $0x60] sm:$0xf] }
  0x4b   : > { %589 = vmatpush.bf16.msrb.mxu2 %v1431_v37  ;;  %v1854_v37 = vor.u32 %v2041_v34, %v1853_v30  ;;  %v1839_v56 = vld [vmem:[#allocation11 + $0x1b0] sm:$0xf0]  ;;  %v1714_v60 = vor.u32 %v2003_v52, %v1711_v54  ;;  %v2031_v9 = vld [vmem:[#allocation11 + $0x184] sm:$0xf]  ;;  %v1997_v17 = vld [vmem:[#allocation11 + $0x6c] sm:$0xf0] }
  0x4c   : > { %602 = vmatpush.bf16.msrb.mxu3 %v1559_v39  ;;  %576 = vmatpush.bf16.msrb.mxu1 %v1555_v43  ;;  %v2039_v39 = vld [vmem:[#allocation11 + $0x1c4] sm:$0xf]  ;;  %v1695_v8 = vld [vmem:[#allocation11 + $0x90] sm:$0xf0]  ;;  %v1805_v18 = vld [vmem:[#allocation11 + $0x160] sm:$0xf] }
  0x4d   : > { %v1858_v42 = vor.u32 %v2039_v39, %v1855_v40  ;;  %v1661_v28 = vld [vmem:[#allocation11 + $0x40] sm:$0xf]  ;;  %v1993_v29 = vld [vmem:[#allocation11 + $0x4c] sm:$0xf0]  ;;  %v1991_v34 = vld [vmem:[#allocation11 + $0x44] sm:$0xf] }
  0x4e   : > { %564 = vmatpush.bf16.msrb.mxu0 %v1411_v48  ;;  %v1789_v30 = vld [vmem:[#allocation11 + $0x140] sm:$0xf]  ;;  %v2023_v38 = vld [vmem:[#allocation11 + $0x144] sm:$0xf]  ;;  %v1791_v40 = vld [vmem:[#allocation11 + $0x150] sm:$0xf0] }
  0x4f   : > { %590 = vmatpush.bf16.msrb.mxu2 %v1415_v49  ;;  %v1710_v49 = vor.u32 %v2005_v46, %v1709_v45  ;;  %v1794_v45 = vor.u32 %v2023_v38, %v1791_v40  ;;  %v1989_v46 = vld [vmem:[#allocation11 + $0x2c] sm:$0xf0]  ;;  %v1987_v52 = vld [vmem:[#allocation11 + $0x24] sm:$0xf]  ;;  %v1733_v38 = vld [vmem:[#allocation11 + $0xc8] sm:$0xf] }
  0x50   : > { %603 = vmatpush.bf16.msrb.mxu3 %v1543_v51  ;;  %577 = vmatpush.bf16.msrb.mxu1 %v1539_v55  ;;  %v2037_v51 = vld [vmem:[#allocation11 + $0x1ac] sm:$0xf0]  ;;  %v2035_v55 = vld [vmem:[#allocation11 + $0x1a4] sm:$0xf]  ;;  %p95_p0 = scmp.ge.s32.totalorder %s98_s21, 4  }
  0x51   : > { %v1838_v53 = vor.u32 %v2037_v51, %v1837_v50  ;;  %v175_v51 = vperm.slane %v2294_v14, 3 }
  0x52   : > { %565 = vmatpush.bf16.msrb.mxu0 %v1395_v62  ;;  %v1842_v62 = vor.u32 %v2035_v55, %v1839_v56 }
  0x53   : > { %591 = vmatpush.bf16.msrb.mxu2 %v1399_v63  ;;  %v1693_v63 = vld [vmem:[#allocation11 + $0x80] sm:$0xf] }
  0x54   : > { %604 = vmatpush.bf16.msrb.mxu3 %v1527_v1  ;;  %578 = vmatpush.bf16.msrb.mxu1 %v1523_v5  ;;  %v1821_v1 = vld [vmem:[#allocation11 + $0x180] sm:$0xf]  ;;  %v1694_v4 = vor.u32 %v2001_v0, %v1693_v63  ;;  %v2033_v5 = vld [vmem:[#allocation11 + $0x18c] sm:$0xf0] }
  0x55   : > { %v1822_v7 = vor.u32 %v2033_v5, %v1821_v1  ;;  %v1629_v1 = vld [vmem:[#allocation11] sm:$0xf] }
  0x56   : > { %566 = vmatpush.bf16.msrb.mxu0 %v1379_v10  ;;  %v1823_v10 = vld [vmem:[#allocation11 + $0x190] sm:$0xf0]  ;;  %v1757_v5 = vld [vmem:[#allocation11 + $0x100] sm:$0xf] }
  0x57   : > { %592 = vmatpush.bf16.msrb.mxu2 %v1383_v11  ;;  %v1698_v11 = vor.u32 %v1999_v6, %v1695_v8  ;;  %v2017_v6 = vld [vmem:[#allocation11 + $0x10c] sm:$0xf0] }
  0x58   : > { %605 = vmatpush.bf16.msrb.mxu3 %v1511_v12  ;;  %579 = vmatpush.bf16.msrb.mxu1 %v1507_v13  ;;  %v1826_v12 = vor.u32 %v2031_v9, %v1823_v10  ;;  %v1758_v10 = vor.u32 %v2017_v6, %v1757_v5  ;;  %v1719_v5 = vld [vmem:[#allocation11 + $0xb8] sm:$0xf0] }
  0x59   : > { %567 = vmatmul.bf16.vlgmr.msrb.gmra.mxu0 %v2279_v57 }
  0x5a   : > { %593 = vmatmul.bf16.vlgmr.msrb.gmra.mxu2 %v2279_v57  ;;  %v1746_v57 = vor.u32 %v2011_v21, %v1743_v22  ;;  %1085 = vmatpush.bf16.msra.mxu0 %v1742_v19  ;;  %v1678_v21 = vor.u32 %v1997_v17, %v1677_v16  ;;  %v2029_v22 = vld [vmem:[#allocation11 + $0x16c] sm:$0xf0] }
  0x5b   : > { %606 = vmatmul.bf16.vlgmr.msrb.gmra.mxu3 %v2281_v61  ;;  %580 = vmatmul.bf16.vlgmr.msrb.gmra.mxu1 %v2281_v61  ;;  %v1874_v61 = vor.u32 %v2043_v24, %v1871_v25  ;;  %v1679_v24 = vld [vmem:[#allocation11 + $0x70] sm:$0xf0]  ;;  %v2027_v25 = vld [vmem:[#allocation11 + $0x164] sm:$0xf] }
  0x5c   : > { %1098 = vmatpush.bf16.msra.mxu1 %v1870_v23  ;;  %1111 = vmatpush.bf16.msra.mxu2 %v1746_v57  ;;  %v1995_v23 = vld [vmem:[#allocation11 + $0x64] sm:$0xf]  ;;  %v1806_v57 = vor.u32 %v2029_v22, %v1805_v18  ;;  %v1877_v22 = vld [vmem:[#allocation11 + $0x1e8] sm:$0xf] }
  0x5d   : > { %1124 = vmatpush.bf16.msra.mxu3 %v1874_v61  ;;  %v1682_v61 = vor.u32 %v1995_v23, %v1679_v24  ;;  %v2032_v24 = vld [vmem:[#allocation11 + $0x18c] sm:$0xf] }
  0x5e   : > { %1086 = vmatpush.bf16.msra.mxu0 %v1726_v33  ;;  %v2025_v33 = vld [vmem:[#allocation11 + $0x14c] sm:$0xf0] }
  0x60   : > { %1099 = vmatpush.bf16.msra.mxu1 %v1854_v37  ;;  %1112 = vmatpush.bf16.msra.mxu2 %v1730_v41  ;;  %v1663_v37 = vld [vmem:[#allocation11 + $0x50] sm:$0xf0]  ;;  %v174_v41 = vperm.slane %v2294_v14, 2 }
  0x61   : > { %1125 = vmatpush.bf16.msra.mxu3 %v1858_v42  ;;  %v1666_v39 = vor.u32 %v1991_v34, %v1663_v37  ;;  %v2044_v34 = vld [vmem:[#allocation11 + $0x1ec] sm:$0xf]  ;;  %v1879_v37 = vld [vmem:[#allocation11 + $0x1f8] sm:$0xf0] }
  0x62   : > { %1087 = vmatpush.bf16.msra.mxu0 %v1710_v49 }
  0x64   : > { %1100 = vmatpush.bf16.msra.mxu1 %v1838_v53  ;;  %1113 = vmatpush.bf16.msra.mxu2 %v1714_v60  ;;  %v1647_v53 = vld [vmem:[#allocation11 + $0x30] sm:$0xf0] }
  0x65   : > { %1126 = vmatpush.bf16.msra.mxu3 %v1842_v62  ;;  %v1775_v60 = vld [vmem:[#allocation11 + $0x130] sm:$0xf0] }
  0x66   : > { %1088 = vmatpush.bf16.msra.mxu0 %v1694_v4 }
  0x68   : > { %1101 = vmatpush.bf16.msra.mxu1 %v1822_v7  ;;  %1114 = vmatpush.bf16.msra.mxu2 %v1698_v11  ;;  %v1983_v7 = vld [vmem:[#allocation11 + $0x4] sm:$0xf]  ;;  %v1631_v11 = vld [vmem:[#allocation11 + $0x10] sm:$0xf0] }
  0x69   : > { %1127 = vmatpush.bf16.msra.mxu3 %v1826_v12  ;;  %v2015_v12 = vld [vmem:[#allocation11 + $0x104] sm:$0xf]  ;;  %v1634_v17 = vor.u32 %v1983_v7, %v1631_v11  ;;  %v1701_v11 = vld [vmem:[#allocation11 + $0x88] sm:$0xf] }
  0x6a   : > { %1089 = vmatpush.bf16.msra.mxu0 %v1678_v21  ;;  %v2014_v21 = vld [vmem:[#allocation11 + $0xf4] sm:$0xf0] }
  0x6c   : > { %1102 = vmatpush.bf16.msra.mxu1 %v1806_v57  ;;  %1115 = vmatpush.bf16.msra.mxu2 %v1682_v61  ;;  %v2046_v61 = vld [vmem:[#allocation11 + $0x1f4] sm:$0xf0] }
  0x70   : > { %1116 = vmatpush.bf16.msra.mxu2 %v1666_v39  ;;  %v2010_v39 = vld [vmem:[#allocation11 + $0xd4] sm:$0xf0] }
  0xb6   : > { %v516_v26 = vpop.f32.mrf.mxu0 }
  0xb7   : > { %v517_v27 = vadd.f32 %v516_v26, %v172_v15  ;;  %v1807_v26 = vld [vmem:[#allocation11 + $0x170] sm:$0xf0] }
  0xba   : > { %v529_v32 = vpop.f32.mrf.mxu1 }
  0xbb   : > { %v530_v36 = vadd.f32 %v529_v32, %v517_v27  ;;  %v1810_v27 = vor.u32 %v2027_v25, %v1807_v26  ;;  %v1662_v32 = vor.u32 %v1993_v29, %v1661_v28 }
  0xbd   : > { %v542_v43 = vpop.f32.mrf.mxu2  ;;  %v1624_v44 = vmul.f32 -1.442695, %v530_v36  ;;  %1128 = vmatpush.bf16.msra.mxu3 %v1810_v27  ;;  %v1790_v36 = vor.u32 %v2025_v33, %v1789_v30  ;;  %1090 = vmatpush.bf16.msra.mxu0 %v1662_v32  ;;  %v2012_v27 = vld [vmem:[#allocation11 + $0xec] sm:$0xf]  ;;  %v1878_v32 = vor.u32 %v2046_v61, %v1877_v22  ;;  %v1751_v33 = vld [vmem:[#allocation11 + $0xf8] sm:$0xf0] }
  0xbe   : > { %v543_v47 = vadd.f32 %v542_v43, %v173_v31  ;;  %v555_v48 = vpop.f32.mrf.mxu3  ;;  %v518_v59 = vpop.f32.mrf.mxu0  ;;  %v1645_v43 = vld [vmem:[#allocation11 + $0x20] sm:$0xf] }
  0xbf   : > { %2079 = vpow2.f32 %v1624_v44  ;;  %1103 = vmatpush.bf16.msra.mxu1 %v1790_v36  ;;  %v1646_v55 = vor.u32 %v1989_v46, %v1645_v43  ;;  %v2019_v59 = vld [vmem:[#allocation11 + $0x124] sm:$0xf]  ;;  %v2042_v43 = vld [vmem:[#allocation11 + $0x1d4] sm:$0xf0]  ;;  %v1734_v46 = vor.u32 %v2010_v39, %v1733_v38  ;;  %v2028_v39 = vld [vmem:[#allocation11 + $0x16c] sm:$0xf] }
  0xc0   : > { %v556_v58 = vadd.f32 %v555_v48, %v543_v47  ;;  %v1773_v47 = vld [vmem:[#allocation11 + $0x120] sm:$0xf]  ;;  %v2021_v48 = vld [vmem:[#allocation11 + $0x12c] sm:$0xf0]  ;;  %v1778_v0 = vor.u32 %v2019_v59, %v1775_v60  ;;  %v2006_v59 = vld [vmem:[#allocation11 + $0xb4] sm:$0xf0] }
  0xc1   : > { %1129 = vmatpush.bf16.msra.mxu3 %v1794_v45  ;;  %v1774_v56 = vor.u32 %v2021_v48, %v1773_v47  ;;  %1091 = vmatpush.bf16.msra.mxu0 %v1646_v55  ;;  %v2008_v45 = vld [vmem:[#allocation11 + $0xcc] sm:$0xf]  ;;  %v1735_v48 = vld [vmem:[#allocation11 + $0xd8] sm:$0xf0]  ;;  %v1845_v60 = vld [vmem:[#allocation11 + $0x1a8] sm:$0xf] }
  0xc2   : > { %v1625_v2 = vmul.f32 -1.442695, %v556_v58  ;;  %v531_v3 = vpop.f32.mrf.mxu1  ;;  %v1650_v58 = vor.u32 %v1987_v52, %v1647_v53  ;;  %v1738_v55 = vor.u32 %v2008_v45, %v1735_v48  ;;  %v1797_v45 = vld [vmem:[#allocation11 + $0x148] sm:$0xf]  ;;  %v1992_v48 = vld [vmem:[#allocation11 + $0x4c] sm:$0xf] }
  0xc3   : > { %1104 = vmatpush.bf16.msra.mxu1 %v1774_v56 }
  0xc4   : > { %2081 = vpow2.f32 %v1625_v2  ;;  %v1985_v2 = vld [vmem:[#allocation11 + $0xc] sm:$0xf0]  ;;  %1117 = vmatpush.bf16.msra.mxu2 %v1650_v58  ;;  %v1717_v58 = vld [vmem:[#allocation11 + $0xa8] sm:$0xf] }
  0xc5   : > { %v2080_v13 = vpop.eup %2079  ;;  %v544_v15 = vpop.f32.mrf.mxu2  ;;  %v1630_v4 = vor.u32 %v1985_v2, %v1629_v1  ;;  %1130 = vmatpush.bf16.msra.mxu3 %v1778_v0  ;;  %v1718_v1 = vor.u32 %v2006_v59, %v1717_v58  ;;  %v2038_v2 = vld [vmem:[#allocation11 + $0x1b4] sm:$0xf0]  ;;  %v1653_v58 = vld [vmem:[#allocation11 + $0x28] sm:$0xf] }
  0xc6   : > { %v2298_v19 = vadd.f32 1.0, %v2080_v13  ;;  %v557_v20 = vpop.f32.mrf.mxu3  ;;  %v1759_v13 = vld [vmem:[#allocation11 + $0x110] sm:$0xf0]  ;;  %v1846_v7 = vor.u32 %v2038_v2, %v1845_v60  ;;  %v1990_v59 = vld [vmem:[#allocation11 + $0x34] sm:$0xf0] }
  0xc7   : > { %v1762_v18 = vor.u32 %v2015_v12, %v1759_v13  ;;  %v1749_v20 = vld [vmem:[#allocation11 + $0xe8] sm:$0xf]  ;;  %1092 = vmatpush.bf16.msra.mxu0 %v1630_v4  ;;  %1105 = vmatpush.bf16.msra.mxu1 %v1758_v10  ;;  %v2004_v4 = vld [vmem:[#allocation11 + $0xac] sm:$0xf]  ;;  %v1847_v10 = vld [vmem:[#allocation11 + $0x1b8] sm:$0xf0] }
  0xc8   : > { %2083 = vrcp.f32 %v2298_v19  ;;  %v625_v42 = vand.u32 2147483647, %v2298_v19  ;;  %v627_v50 = vand.u32 2147483648, %v2298_v19  ;;  %vm621_vm0 = vweird.f32 %v2298_v19  ;;  %1118 = vmatpush.bf16.msra.mxu2 %v1634_v17  ;;  %v2034_v17 = vld [vmem:[#allocation11 + $0x194] sm:$0xf0] }
  0xc9   : > { %v1750_v26 = vor.u32 %v2014_v21, %v1749_v20  ;;  %1131 = vmatpush.bf16.msra.mxu3 %v1762_v18  ;;  %v1722_v13 = vor.u32 %v2004_v4, %v1719_v5  ;;  %v2000_v20 = vld [vmem:[#allocation11 + $0x8c] sm:$0xf]  ;;  %v1703_v21 = vld [vmem:[#allocation11 + $0x98] sm:$0xf0]  ;;  %v1654_v4 = vor.u32 %v1990_v59, %v1653_v58 }
  0xca   : > { %v2082_v31 = vpop.eup %2081  ;;  %vm2316_vm2 = vcmp.eq.f32.partialorder %v625_v42, 8.507059e+37  ;;  %v628_v25 = vor.u32 1.1754944e-38, %v627_v50  ;;  %v1861_v42 = vld [vmem:[#allocation11 + $0x1c8] sm:$0xf]  ;;  %v1863_v50 = vld [vmem:[#allocation11 + $0x1d8] sm:$0xf0] }
  0xcb   : > { %v2301_v35 = vadd.f32 1.0, %v2082_v31  ;;  %1137 = vmatpush.bf16.msrb.mxu0 %v1750_v26  ;;  %1150 = vmatpush.bf16.msrb.mxu1 %v1878_v32  ;;  %v1862_v47 = vor.u32 %v2042_v43, %v1861_v42  ;;  %v1998_v31 = vld [vmem:[#allocation11 + $0x74] sm:$0xf0]  ;;  %v1813_v32 = vld [vmem:[#allocation11 + $0x168] sm:$0xf] }
  0xcc   : > { %v1669_v42 = vld [vmem:[#allocation11 + $0x48] sm:$0xf]  ;;  %v1994_v43 = vld [vmem:[#allocation11 + $0x54] sm:$0xf0]  ;;  %v1655_v2 = vld [vmem:[#allocation11 + $0x38] sm:$0xf0] }
  0xcd   : > { %2085 = vrcp.f32 %v2301_v35  ;;  %v644_v54 = vand.u32 2147483647, %v2301_v35  ;;  %v646_v62 = vand.u32 2147483648, %v2301_v35  ;;  %vm640_vm3 = vweird.f32 %v2301_v35  ;;  %v2020_v5 = vld [vmem:[#allocation11 + $0x12c] sm:$0xf] }
  0xce   : > { %v2306_v44 = vpop.eup %2083 }
  0xcf   : > { %v617_v49 = vmul.f32 %v2306_v44, %v2298_v19  ;;  %vm622_vm1 = vweird.f32 %v2306_v44  ;;  %v2327_v23 = vor.u32 1.1754944e-38, %v646_v62  ;;  %vm2346_vm7 = vcmp.eq.f32.partialorder %v644_v54, 8.507059e+37  ;;  %v611_v62 = vld [vmem:[#allocation3 + $0x8] sm:$0xff]  ;;  %1138 = vmatpush.bf16.msrb.mxu0 %v1734_v46  ;;  %1151 = vmatpush.bf16.msrb.mxu1 %v1862_v47  ;;  %v2026_v47 = vld [vmem:[#allocation11 + $0x154] sm:$0xf0] }
  0xd0   : > { %vm2333_vm5 = vmor %vm621_vm0, %vm622_vm1 }
  0xd1   : > { %v618_v63 = vsub.f32 1.0, %v617_v49  ;;  %v2040_v49 = vld [vmem:[#allocation11 + $0x1cc] sm:$0xf] }
  0xd2   : > { %v1866_v56 = vor.u32 %v2040_v49, %v1863_v50  ;;  %v1671_v49 = vld [vmem:[#allocation11 + $0x58] sm:$0xf0] }
  0xd3   : > { %v2320_v8 = vpop.eup %2085  ;;  %v619_v9 = vmul.f32 %v2306_v44, %v618_v63  ;;  %1139 = vmatpush.bf16.msrb.mxu0 %v1718_v1  ;;  %1152 = vmatpush.bf16.msrb.mxu1 %v1846_v7  ;;  %v1674_v60 = vor.u32 %v1992_v48, %v1671_v49  ;;  %v1988_v1 = vld [vmem:[#allocation11 + $0x2c] sm:$0xf]  ;;  %v1637_v7 = vld [vmem:[#allocation11 + $0x8] sm:$0xf] }
  0xd4   : > { %v636_v15 = vmul.f32 %v2320_v8, %v2301_v35  ;;  %vm641_vm4 = vweird.f32 %v2320_v8  ;;  %v1754_v35 = vor.u32 %v2012_v27, %v1751_v33  ;;  %v1706_v27 = vor.u32 %v2000_v20, %v1703_v21 }
  0xd5   : > { %vm2341_vm6 = vmor %vm640_vm3, %vm641_vm4  ;;  %v620_v19 = vadd.f32 %v2306_v44, %v619_v9  ;;  %v2036_v9 = vld [vmem:[#allocation11 + $0x1ac] sm:$0xf] }
  0xd6   : > { %v568_v16 = vpop.f32.mrf.mxu0  ;;  %v637_v28 = vsub.f32 1.0, %v636_v15  ;;  %1163 = vmatpush.bf16.msrb.mxu2 %v1754_v35  ;;  %v2002_v15 = vld [vmem:[#allocation11 + $0x94] sm:$0xf0]  ;;  %v1850_v18 = vor.u32 %v2036_v9, %v1847_v10  ;;  %v1996_v35 = vld [vmem:[#allocation11 + $0x6c] sm:$0xf]  ;;  %v1658_v10 = vor.u32 %v1988_v1, %v1655_v2  ;;  %v2048_v2 = vld [vmem:[%s2419_s9 + $0x8] sm:$0xff] }
  0xd7   : > { %v569_v57 = vadd.f32 %v568_v16, %v174_v41  ;;  %v1882_v41 = vor.u32 %v2044_v34, %v1879_v37  ;;  %v624_v52 = vsel %vm2333_vm5, %v2306_v44, %v620_v19  ;;  %v1829_v16 = vld [vmem:[#allocation11 + $0x188] sm:$0xf]  ;;  %v1702_v3 = vor.u32 %v2002_v15, %v1701_v11  ;;  %v1687_v37 = vld [vmem:[#allocation11 + $0x78] sm:$0xf0]  ;;  %v1986_v9 = vld [vmem:[#allocation11 + $0x14] sm:$0xf0] }
  0xd8   : > { %v581_v30 = vpop.f32.mrf.mxu1  ;;  %v638_v40 = vmul.f32 %v2320_v8, %v637_v28  ;;  %v629_v14 = vsel %vm2316_vm2, %v628_v25, %v624_v52  ;;  %v1831_v25 = vld [vmem:[#allocation11 + $0x198] sm:$0xf0]  ;;  %v1685_v19 = vld [vmem:[#allocation11 + $0x68] sm:$0xf]  ;;  %v1670_v52 = vor.u32 %v1994_v43, %v1669_v42  ;;  %v1638_v15 = vor.u32 %v1986_v9, %v1637_v7 }
  0xd9   : > { %v582_v36 = vadd.f32 %v581_v30, %v569_v57  ;;  %1176 = vmatpush.bf16.msrb.mxu3 %v1882_v41  ;;  %v1834_v30 = vor.u32 %v2032_v24, %v1831_v25  ;;  %1140 = vmatpush.bf16.msrb.mxu0 %v1702_v3  ;;  %v1686_v34 = vor.u32 %v1998_v31, %v1685_v19  ;;  %v1765_v11 = vld [vmem:[#allocation11 + $0x108] sm:$0xf]  ;;  %v2047_v9 = vld [vmem:[%s2419_s9] sm:$0xff] }
  0xda   : > { %v639_v53 = vadd.f32 %v2320_v8, %v638_v40  ;;  %1164 = vmatpush.bf16.msrb.mxu2 %v1738_v55  ;;  %v1815_v40 = vld [vmem:[#allocation11 + $0x178] sm:$0xf0]  ;;  %v1690_v41 = vor.u32 %v1996_v35, %v1687_v37  ;;  %v2054_v35 = vld [vmem:[%s2419_s9 + $0x38] sm:$0xff]  ;;  %v2049_v1 = vld [vmem:[%s2419_s9 + $0x10] sm:$0xff] }
  0xdb   : > { %2087 = vtanh.f32 %v582_v36  ;;  %v2030_v36 = vld [vmem:[#allocation11 + $0x174] sm:$0xf0]  ;;  %v1818_v46 = vor.u32 %v2028_v39, %v1815_v40  ;;  %v2053_v40 = vld [vmem:[%s2419_s9 + $0x30] sm:$0xff] }
  0xdc   : > { %v643_v44 = vsel %vm2341_vm6, %v2320_v8, %v639_v53  ;;  %v1814_v38 = vor.u32 %v2030_v36, %v1813_v32  ;;  %v2024_v53 = vld [vmem:[#allocation11 + $0x14c] sm:$0xf]  ;;  %v748_v36 = vld [vmem:[%s2418_s8] sm:$0xf] }
  0xdd   : > { %v594_v54 = vpop.f32.mrf.mxu2  ;;  %1177 = vmatpush.bf16.msrb.mxu3 %v1866_v56  ;;  %1141 = vmatpush.bf16.msrb.mxu0 %v1686_v34  ;;  %v1798_v56 = vor.u32 %v2026_v47, %v1797_v45  ;;  %v750_v37 = vperm.slane %v748_v36, 0  ;;  %v751_v43 = vperm.slane %v748_v36, 1  ;;  %v2052_v45 = vld [vmem:[%s2419_s9 + $0x28] sm:$0xff] }
  0xde   : > { %v595_v63 = vadd.f32 %v594_v54, %v175_v51  ;;  %v607_v0 = vpop.f32.mrf.mxu3  ;;  %v570_v6 = vpop.f32.mrf.mxu0  ;;  %v648_v51 = vsel %vm2346_vm7, %v2327_v23, %v643_v44  ;;  %v1830_v23 = vor.u32 %v2034_v17, %v1829_v16  ;;  %1165 = vmatpush.bf16.msrb.mxu2 %v1722_v13  ;;  %v1799_v54 = vld [vmem:[#allocation11 + $0x158] sm:$0xf0]  ;;  %v2016_v16 = vld [vmem:[#allocation11 + $0x10c] sm:$0xf] }
  0xdf   : > { %v670_v26 = vmul.f32 %v648_v51, %v611_v62  ;;  %v1781_v62 = vld [vmem:[#allocation11 + $0x128] sm:$0xf]  ;;  %v1783_v44 = vld [vmem:[#allocation11 + $0x138] sm:$0xf0] }
  0xe0   : > { %v608_v12 = vadd.f32 %v607_v0, %v595_v63  ;;  %v583_v8 = vpop.f32.mrf.mxu1  ;;  %1153 = vmatpush.bf16.msrb.mxu1 %v1830_v23  ;;  %v2022_v63 = vld [vmem:[#allocation11 + $0x134] sm:$0xf0]  ;;  %v1802_v0 = vor.u32 %v2024_v53, %v1799_v54  ;;  %v1786_v51 = vor.u32 %v2020_v5, %v1783_v44  ;;  %v1639_v13 = vld [vmem:[#allocation11 + $0x18] sm:$0xf0]  ;;  %v753_v5 = vperm.slane %v748_v36, 3 }
  0xe1   : > { %v2088_v22 = vpop.eup %2087  ;;  %1178 = vmatpush.bf16.msrb.mxu3 %v1850_v18  ;;  %1142 = vmatpush.bf16.msrb.mxu0 %v1670_v52  ;;  %v1782_v6 = vor.u32 %v2022_v63, %v1781_v62  ;;  %v1767_v17 = vld [vmem:[#allocation11 + $0x118] sm:$0xf0] }
  0xe2   : > { %v1626_v57 = vmul.f32 -1.442695, %v608_v12  ;;  %v671_v61 = vmul.f32 %v2088_v22, %v629_v14  ;;  %1166 = vmatpush.bf16.msrb.mxu2 %v1706_v27  ;;  %v2018_v14 = vld [vmem:[#allocation11 + $0x114] sm:$0xf0]  ;;  %v1984_v12 = vld [vmem:[#allocation11 + $0xc] sm:$0xf]  ;;  %v1770_v22 = vor.u32 %v2016_v16, %v1767_v17 }
  0xe3   : > { %v1766_v18 = vor.u32 %v2018_v14, %v1765_v11  ;;  %v1642_v21 = vor.u32 %v1984_v12, %v1639_v13  ;;  %v2051_v53 = vld [vmem:[%s2419_s9 + $0x20] sm:$0xff] }
  0xe4   : > { %2089 = vpow2.f32 %v1626_v57  ;;  %v2365_v28 = vadd.f32 %v671_v61, %v670_v26  ;;  %1154 = vmatpush.bf16.msrb.mxu1 %v1814_v38 }
  0xe5   : > { %v596_v29 = vpop.f32.mrf.mxu2  ;;  %1179 = vmatpush.bf16.msrb.mxu3 %v1834_v30  ;;  %1143 = vmatpush.bf16.msrb.mxu0 %v1654_v4  ;;  %v680_v30 = vld [vmem:[#allocation2 + $0x8] sm:$0xff] }
  0xe6   : > { %v609_v33 = vpop.f32.mrf.mxu3  ;;  %676 = vst [vmem:[#allocation3 + $0x8] sm:$0xff] %v2365_v28  ;;  %1167 = vmatpush.bf16.msrb.mxu2 %v1690_v41 }
  0xe8   : > { %1155 = vmatpush.bf16.msrb.mxu1 %v1798_v56  ;;  %v2050_v56 = vld [vmem:[%s2419_s9 + $0x18] sm:$0xff] }
  0xe9   : > { %1180 = vmatpush.bf16.msrb.mxu3 %v1818_v46  ;;  %1144 = vmatpush.bf16.msrb.mxu0 %v1638_v15 }
  0xea   : > { %v2090_v50 = vpop.eup %2089  ;;  %1168 = vmatpush.bf16.msrb.mxu2 %v1674_v60 }
  0xeb   : > { %v654_v55 = vadd.f32 1.0, %v2090_v50 }
  0xec   : > { %1156 = vmatpush.bf16.msrb.mxu1 %v1782_v6  ;;  %v752_v6 = vperm.slane %v748_v36, 2 }
  0xed   : > { %2091 = vrcp.f32 %v654_v55  ;;  %1181 = vmatpush.bf16.msrb.mxu3 %v1802_v0  ;;  %v666_v3 = vand.u32 2147483648, %v654_v55  ;;  %v664_v25 = vand.u32 2147483647, %v654_v55  ;;  %vm660_vm9 = vweird.f32 %v654_v55 }
  0xee   : > { %1169 = vmatpush.bf16.msrb.mxu2 %v1658_v10  ;;  %2093 = vtanh.f32 %v2365_v28 }
  0xef   : > { %v667_v61 = vor.u32 1.1754944e-38, %v666_v3  ;;  %vm665_vm11 = vcmp.eq.f32.partialorder %v664_v25, 8.507059e+37 }
  0xf0   : > { %1157 = vmatpush.bf16.msrb.mxu1 %v1766_v18 }
  0xf1   : > { %1182 = vmatpush.bf16.msrb.mxu3 %v1786_v51 }
  0xf2   : > { %1170 = vmatpush.bf16.msrb.mxu2 %v1642_v21 }
  0xf3   : > { %v2092_v8 = vpop.eup %2091 }
  0xf4   : > { %v656_v20 = vmul.f32 %v2092_v8, %v654_v55  ;;  %vm661_vm8 = vweird.f32 %v2092_v8  ;;  %v2094_v27 = vpop.eup %2093 }
  0xf5   : > { %1183 = vmatpush.bf16.msrb.mxu3 %v1770_v22  ;;  %vm662_vm10 = vmor %vm660_vm9, %vm661_vm8 }
  0xf6   : > { %v657_v57 = vsub.f32 1.0, %v656_v20 }
  0xf8   : > { %v658_v24 = vmul.f32 %v2092_v8, %v657_v57 }
  0xfa   : > { %v659_v26 = vadd.f32 %v2092_v8, %v658_v24 }
  0xfc   : > { %v663_v23 = vsel %vm662_vm10, %v2092_v8, %v659_v26 }
  0xfd   : > { %v668_v29 = vsel %vm665_vm11, %v667_v61, %v663_v23 }
  0xfe   : > { %v674_v19 = vmul.f32 %v2094_v27, %v668_v29 }
 0x100   : > { %675 = vst [vmem:[#allocation2] sm:$0xff] %v674_v19  ;;  %v2063_v31 = vpack.c.bf16 %v680_v30, %v674_v19 }
 0x102   : > { %v759_v28 = vunpack.c.l.b16 %v2063_v31  ;;  %v760_v32 = vunpack.c.h.b16 %v2063_v31 }
 0x104   : > { %v761_v33 = vpack.c.b16 %v759_v28, %v759_v28  ;;  %v762_v34 = vpack.c.b16 %v760_v32, %v760_v32 }
 0x106   : > { %1093 = vmatmul.bf16.vlgmr.msra.gmra.mxu0 %v761_v33  ;;  %1106 = vmatmul.bf16.vlgmr.msra.gmra.mxu1 %v762_v34 }
 0x107   : > { %1119 = vmatmul.bf16.vlgmr.msra.gmra.mxu2 %v761_v33  ;;  %1132 = vmatmul.bf16.vlgmr.msra.gmra.mxu3 %v762_v34 }
 0x108   : > { %1325 = vmatpush.bf16.msra.mxu0 %v2054_v35 }
 0x10c   : > { %1326 = vmatpush.bf16.msra.mxu0 %v2053_v40 }
 0x110   : > { %1327 = vmatpush.bf16.msra.mxu0 %v2052_v45 }
 0x114   : > { %1328 = vmatpush.bf16.msra.mxu0 %v2051_v53 }
 0x116   : > { %1145 = vmatmul.bf16.vlgmr.msrb.gmra.mxu0 %v761_v33  ;;  %1158 = vmatmul.bf16.vlgmr.msrb.gmra.mxu1 %v762_v34 }
 0x117   : > { %1171 = vmatmul.bf16.vlgmr.msrb.gmra.mxu2 %v761_v33  ;;  %1184 = vmatmul.bf16.vlgmr.msrb.gmra.mxu3 %v762_v34  ;;  %v1190_v33 = vld [vmem:[#allocation3] sm:$0xff] }
 0x118   : > { %1329 = vmatpush.bf16.msra.mxu0 %v2050_v56 }
 0x11c   : > { %1330 = vmatpush.bf16.msra.mxu0 %v2049_v1 }
 0x120   : > { %1331 = vmatpush.bf16.msra.mxu0 %v2048_v2 }
 0x124   : > { %1332 = vmatpush.bf16.msra.mxu0 %v2047_v9 }
 0x183   : > { %v1094_v38 = vpop.f32.mrf.mxu0  ;;  %v1107_v39 = vpop.f32.mrf.mxu1 }
 0x184   : > { %v1095_v41 = vadd.f32 %v1094_v38, %v750_v37 }
 0x186   : > { %v1108_v42 = vadd.f32 %v1107_v39, %v1095_v41 }
 0x188   : > { %v1883_v46 = vmul.f32 -1.442695, %v1108_v42 }
 0x18a   : > { %2095 = vpow2.f32 %v1883_v46  ;;  %v1120_v47 = vpop.f32.mrf.mxu2  ;;  %v1133_v48 = vpop.f32.mrf.mxu3 }
 0x18b   : > { %v1121_v49 = vadd.f32 %v1120_v47, %v751_v43  ;;  %v1096_v50 = vpop.f32.mrf.mxu0  ;;  %v1109_v52 = vpop.f32.mrf.mxu1 }
 0x18d   : > { %v1134_v54 = vadd.f32 %v1133_v48, %v1121_v49 }
 0x18f   : > { %v1884_v55 = vmul.f32 -1.442695, %v1134_v54 }
 0x190   : > { %v2096_v58 = vpop.eup %2095 }
 0x191   : > { %v1194_v59 = vadd.f32 1.0, %v2096_v58  ;;  %2097 = vpow2.f32 %v1884_v55  ;;  %v2078_v58 = vld [vmem:[%s2420_s10] ss:$0 sm:$0xff] }
 0x192   : > { %v1122_v60 = vpop.f32.mrf.mxu2  ;;  %v1135_v62 = vpop.f32.mrf.mxu3 }
 0x193   : > { %2099 = vrcp.f32 %v1194_v59  ;;  %v1146_v63 = vpop.f32.mrf.mxu0  ;;  %v1159_v0 = vpop.f32.mrf.mxu1  ;;  %v1206_v3 = vand.u32 2147483648, %v1194_v59  ;;  %vm1200_vm13 = vweird.f32 %v1194_v59  ;;  %v1204_v61 = vand.u32 2147483647, %v1194_v59 }
 0x194   : > { %v1147_v16 = vadd.f32 %v1146_v63, %v752_v6  ;;  %v1345_v60 = vstv %s1342_s19  ;;  %v1348_v63 = vstv %s1347_s4 }
 0x195   : > { %v1207_v19 = vor.u32 1.1754944e-38, %v1206_v3  ;;  %vm1205_vm1 = vcmp.eq.f32.partialorder %v1204_v61, 8.507059e+37 }
 0x196   : > { %v1160_v21 = vadd.f32 %v1159_v0, %v1147_v16 }
 0x197   : > { %v2098_v4 = vpop.eup %2097 }
 0x198   : > { %v1213_v44 = vadd.f32 1.0, %v2098_v4 }
 0x199   : > { %v2100_v7 = vpop.eup %2099 }
 0x19a   : > { %v1196_v10 = vmul.f32 %v2100_v7, %v1194_v59  ;;  %2101 = vrcp.f32 %v1213_v44  ;;  %v1172_v11 = vpop.f32.mrf.mxu2  ;;  %v1185_v14 = vpop.f32.mrf.mxu3  ;;  %vm1201_vm12 = vweird.f32 %v2100_v7  ;;  %v1225_v23 = vand.u32 2147483648, %v1213_v44  ;;  %v1344_v59 = vld [vmem:[%s1343_s3] sm:$0xff] }
 0x19b   : > { %v1173_v51 = vadd.f32 %v1172_v11, %v753_v5  ;;  %v1148_v12 = vpop.f32.mrf.mxu0  ;;  %v1161_v13 = vpop.f32.mrf.mxu1  ;;  %vm1202_vm14 = vmor %vm1200_vm13, %vm1201_vm12  ;;  %v1223_v30 = vand.u32 2147483647, %v1213_v44  ;;  %vm1219_vm0 = vweird.f32 %v1213_v44  ;;  %v1346_v1 = vmul.f32 %v1345_v60, %v1344_v59 }
 0x19c   : > { %v1197_v15 = vsub.f32 1.0, %v1196_v10  ;;  %v1226_v32 = vor.u32 1.1754944e-38, %v1225_v23 }
 0x19d   : > { %v1186_v17 = vadd.f32 %v1185_v14, %v1173_v51  ;;  %vm1224_vm3 = vcmp.eq.f32.partialorder %v1223_v30, 8.507059e+37 }
 0x19e   : > { %v1198_v8 = vmul.f32 %v2100_v7, %v1197_v15 }
 0x19f   : > { %v1885_v18 = vmul.f32 -1.442695, %v1186_v17 }
 0x1a0   : > { %v2102_v20 = vpop.eup %2101  ;;  %v1199_v57 = vadd.f32 %v2100_v7, %v1198_v8 }
 0x1a1   : > { %v1215_v22 = vmul.f32 %v2102_v20, %v1213_v44  ;;  %2103 = vpow2.f32 %v1885_v18  ;;  %vm1220_vm15 = vweird.f32 %v2102_v20 }
 0x1a2   : > { %v1174_v24 = vpop.f32.mrf.mxu2  ;;  %v1187_v25 = vpop.f32.mrf.mxu3  ;;  %2105 = vtanh.f32 %v1160_v21  ;;  %v1203_v29 = vsel %vm1202_vm14, %v2100_v7, %v1199_v57  ;;  %vm1221_vm2 = vmor %vm1219_vm0, %vm1220_vm15 }
 0x1a3   : > { %v1216_v26 = vsub.f32 1.0, %v1215_v22  ;;  %v1208_v34 = vsel %vm1205_vm1, %v1207_v19, %v1203_v29 }
 0x1a5   : > { %v1217_v27 = vmul.f32 %v2102_v20, %v1216_v26 }
 0x1a7   : > { %v2104_v31 = vpop.eup %2103  ;;  %v1218_v28 = vadd.f32 %v2102_v20, %v1217_v27 }
 0x1a8   : > { %v1233_v36 = vadd.f32 1.0, %v2104_v31  ;;  %v2106_v37 = vpop.eup %2105 }
 0x1a9   : > { %v1222_v35 = vsel %vm1221_vm2, %v2102_v20, %v1218_v28  ;;  %v1250_v40 = vmul.f32 %v2106_v37, %v1208_v34 }
 0x1aa   : > { %v1227_v38 = vsel %vm1224_vm3, %v1226_v32, %v1222_v35  ;;  %2107 = vrcp.f32 %v1233_v36  ;;  %v1245_v46 = vand.u32 2147483648, %v1233_v36  ;;  %v1243_v48 = vand.u32 2147483647, %v1233_v36 }
 0x1ab   : > { %v1249_v39 = vmul.f32 %v1227_v38, %v1190_v33  ;;  %vm1239_vm5 = vweird.f32 %v1233_v36 }
 0x1ac   : > { %v1246_v50 = vor.u32 1.1754944e-38, %v1245_v46  ;;  %vm1244_vm7 = vcmp.eq.f32.partialorder %v1243_v48, 8.507059e+37 }
 0x1ad   : > { %v1251_v41 = vadd.f32 %v1250_v40, %v1249_v39 }
 0x1af   : > { %1255 = vst [vmem:[#allocation3] sm:$0xff] %v1251_v41  ;;  %2109 = vtanh.f32 %v1251_v41 }
 0x1b0   : > { %v2108_v42 = vpop.eup %2107 }
 0x1b1   : > { %v1235_v43 = vmul.f32 %v2108_v42, %v1233_v36  ;;  %vm1240_vm4 = vweird.f32 %v2108_v42 }
 0x1b2   : > { %vm1241_vm6 = vmor %vm1239_vm5, %vm1240_vm4 }
 0x1b3   : > { %v1236_v45 = vsub.f32 1.0, %v1235_v43 }
 0x1b5   : > { %v1237_v47 = vmul.f32 %v2108_v42, %v1236_v45  ;;  %v2110_v53 = vpop.eup %2109 }
 0x1b7   : > { %v1238_v49 = vadd.f32 %v2108_v42, %v1237_v47 }
 0x1b9   : > { %v1242_v52 = vsel %vm1241_vm6, %v2108_v42, %v1238_v49 }
 0x1ba   : > { %v1247_v54 = vsel %vm1244_vm7, %v1246_v50, %v1242_v52 }
 0x1bb   : > { %v1253_v55 = vmul.f32 %v2110_v53, %v1247_v54 }
 0x1bd   : > { %1254 = vst [vmem:[#allocation2 + $0x8] sm:$0xff] %v1253_v55  ;;  %v1256_v56 = vpack.c.bf16 %v1253_v55, %v1253_v55 }
 0x1bf   : > { %1333 = vmatmul.bf16.vlgmr.msra.gmra.mxu0 %v1256_v56 }
 0x23c   : > { %v1334_v62 = vpop.f32.mrf.mxu0 }
 0x23d   : > { %v1335_v0 = vadd.f32 %v2078_v58, %v1334_v62 }
 0x23f   : > { %1340 = vst [vmem:[%s1339_s26] sm:$0xff] %v1335_v0  ;;  %v1349_v2 = vmul.f32 %v1348_v63, %v1335_v0 }
 0x240   :  { %97 = sbr.rel (!%p95_p0) target bundleno = 23 (0x17), region = 87 }
 0x241   : > { %v1350_v4 = vadd.f32 %v1349_v2, %v1346_v1 }
 0x243   : > { %1351 = vst [vmem:[#allocation4] sm:$0xff] %v1350_v4 }
 0x244   : > { %v1336_v5 = vpop.f32.mrf.mxu0 }
 0x245   :  { %1356 = vsyncpa [#allocation8], 1 }
 0x246   :  { %1357 = vsyncpa [#allocation12], 1 }
 0x247   :  { %1358 = vsyncpa [#allocation9], 1 }

</bundles_post_ra>
